<compile_context>
chip_gen: v6e
topology: v6e:2x2x1
jax: 0.10.0
libtpu: 0.0.40
codegen_flags: <defaults>
</compile_context>

<pallas_src>
import numpy as np
import jax
import jax.numpy as jnp
from jax.experimental import pallas as pl
from jax.experimental.pallas import tpu as pltpu


# ---------------------------------------------------------------------------
# Pallas kernel: full forward, everything VMEM-resident
# ---------------------------------------------------------------------------

def _disc_fused_kernel(x_ref,
                       a1_ref, a2_ref, a3_ref, a4_ref,
                       p1_ref, p2_ref, p3_ref, p4_ref,
                       wl_ref, bl_ref,
                       o_ref):
    """4x [dense-conv matmul + bias + LeakyReLU(0.2) + BN(eval)] -> Linear -> Sigmoid."""
    z = x_ref[...]                                        # (N, H*W*Cin) f32
    for a_ref, p_ref in ((a1_ref, p1_ref), (a2_ref, p2_ref),
                         (a3_ref, p3_ref), (a4_ref, p4_ref)):
        # Conv2d(3,3, s=2, p=1) as a single MXU matmul on the NHWC-flat layout.
        z = jnp.dot(z.astype(jnp.bfloat16), a_ref[...],
                    preferred_element_type=jnp.float32)
        z = z + p_ref[0:1, :]                             # bias (pre-tiled per position)
        z = jnp.where(z >= 0.0, z, 0.2 * z)               # LeakyReLU(0.2)
        # Dropout2d(0.25) is identity in eval mode.
        z = z * p_ref[1:2, :] + p_ref[2:3, :]             # BatchNorm2d eval (1/0 if no BN)
    v = jnp.dot(z, wl_ref[...], preferred_element_type=jnp.float32) + bl_ref[...]
    o_ref[...] = 1.0 / (1.0 + jnp.exp(-v))                # Sigmoid (exact, exp -> EUP)


def _full_spec(shape):
    # Tiny problem: each operand is a single whole-array VMEM block (grid=()).
    return pl.BlockSpec(shape, lambda: (0,) * len(shape))


def disc_fused_forward(x_flat, a_mats, packed, lin_w, lin_b):
    n = x_flat.shape[0]
    operands = (x_flat, *a_mats, *packed, lin_w, lin_b)
    # TODO(synk): for large batch, add a grid over the batch dim with
    #             dimension_semantics=("parallel",) to engage both v7x TensorCores.
    return pl.pallas_call(
        _disc_fused_kernel,
        out_shape=jax.ShapeDtypeStruct((n, 1), jnp.float32),
        in_specs=[_full_spec(op.shape) for op in operands],
        out_specs=_full_spec((n, 1)),
        compiler_params=pltpu.CompilerParams(vmem_limit_bytes=32 * 1024 * 1024),
    )(*operands)


# ---------------------------------------------------------------------------
# Parameter prep (host-side, once): fold conv -> dense operator, tile BN/bias
# ---------------------------------------------------------------------------

def _conv_as_dense(wt, h, w, stride=2, pad=1):
    """wt: (Cout, Cin, 3, 3) torch-layout conv weight.
    Returns A such that out_flat = x_flat @ A with both flats in NHWC order."""
    cout, cin, kh_sz, kw_sz = wt.shape
    oh = (h + 2 * pad - kh_sz) // stride + 1
    ow = (w + 2 * pad - kw_sz) // stride + 1
    a = np.zeros((h * w * cin, oh * ow * cout), np.float32)
    for i in range(oh):
        for j in range(ow):
            col0 = (i * ow + j) * cout
            for kh in range(kh_sz):
                hin = i * stride + kh - pad
                if hin < 0 or hin >= h:
                    continue
                for kw in range(kw_sz):
                    win = j * stride + kw - pad
                    if win < 0 or win >= w:
                        continue
                    row0 = (hin * w + win) * cin
                    a[row0:row0 + cin, col0:col0 + cout] += wt[:, :, kh, kw].T
    return a, oh, ow
# TODO(synk): for img_size >> 16 the dense operator grows O((H*W)^2); switch to
#             in-kernel shifted matmuls over a VMEM-resident padded activation.


def make_params(key, in_channels, img_size):
    """Deterministic synthetic parameters, pre-folded for the fused kernel."""
    layer_defs = [(in_channels, 16, False), (16, 32, True),
                  (32, 64, True), (64, 128, True)]
    h = w = img_size
    a_mats, packed = [], []
    for cin, cout, bn in layer_defs:
        key, k_w = jax.random.split(key)
        wt = 0.05 * jax.random.normal(k_w, (cout, cin, 3, 3), jnp.float32)
        b = np.zeros((cout,), np.float32)
        a, oh, ow = _conv_as_dense(np.asarray(wt), h, w)
        if bn:
            gamma = np.ones((cout,), np.float32)
            beta = np.zeros((cout,), np.float32)
            run_mean = np.zeros((cout,), np.float32)
            run_var = np.ones((cout,), np.float32)
            eps = 0.8                      # nn.BatchNorm2d(out_feat, 0.8) -> eps=0.8
            scale = gamma / np.sqrt(run_var + eps)
            shift = beta - run_mean * scale
        else:
            scale = np.ones((cout,), np.float32)
            shift = np.zeros((cout,), np.float32)
        p = np.stack([np.tile(b, oh * ow),
                      np.tile(scale, oh * ow),
                      np.tile(shift, oh * ow)]).astype(np.float32)
        a_mats.append(jnp.asarray(a, dtype=jnp.bfloat16))   # bf16 MXU operand
        packed.append(jnp.asarray(p))
        h, w = oh, ow

    # adv_layer: Linear(128*ds**2, 1) + Sigmoid.  PyTorch's out.view(N, -1) is a
    # NCHW (channel-major) flatten; permute the weight rows once here so the
    # kernel can consume the NHWC-flattened activation directly (identity at ds=1).
    ds = img_size // 2 ** 4
    feat = 128 * ds * ds
    key, k_l = jax.random.split(key)
    lin_w_torch = 0.05 * jax.random.normal(k_l, (1, feat), jnp.float32)
    wl = (np.asarray(lin_w_torch)[0]
          .reshape(128, ds, ds).transpose(1, 2, 0).reshape(feat, 1))
    lin_w = jnp.asarray(wl, dtype=jnp.float32)
    lin_b = jnp.zeros((1, 1), jnp.float32)
    return tuple(a_mats), tuple(packed), lin_w, lin_b, key


# ---------------------------------------------------------------------------
# Forward (only per-call XLA glue: channel concat + flatten, ~8 KB)
# ---------------------------------------------------------------------------

@jax.jit
def discriminator_forward(img_real_nhwc, img_cond_nhwc, a_mats, packed, lin_w, lin_b):
    # torch.cat(dim=1) on NCHW == channel concat == last axis in NHWC.
    x = jnp.concatenate([img_real_nhwc, img_cond_nhwc], axis=-1)
    n = x.shape[0]
    x_flat = x.reshape(n, -1)            # NHWC flatten: index = (h*W + w)*C + c
    return disc_fused_forward(x_flat, a_mats, packed, lin_w, lin_b)


# ---------------------------------------------------------------------------
# Main
# ---------------------------------------------------------------------------

if __name__ == "__main__":
    # Small config: img_size=16 (divisible by 2**4), batch=2,
    # img_real has 2 channels, img_condition has 2 channels -> in_channels=4.
    batch, c_real, c_cond, img_size = 2, 2, 2, 16
    in_channels = c_real + c_cond

    key = jax.random.PRNGKey(0)
    key, k1, k2, k3 = jax.random.split(key, 4)
    img_real = jax.random.normal(k1, (batch, img_size, img_size, c_real), jnp.float32)
    img_cond = jax.random.normal(k2, (batch, img_size, img_size, c_cond), jnp.float32)

    a_mats, packed, lin_w, lin_b, _ = make_params(k3, in_channels, img_size)

    validity = discriminator_forward(img_real, img_cond, a_mats, packed, lin_w, lin_b)
    jax.block_until_ready(validity)

    assert validity.shape == (batch, 1)
    assert bool(jnp.all(jnp.isfinite(validity)))
    assert bool(jnp.all((validity >= 0.0) & (validity <= 1.0)))
    print("KERNEL_OK")
</pallas_src>

<mosaic_0001>
module attributes {stable_mosaic.version = 11 : i64} {
  func.func @_disc_fused_kernel(%arg0: memref<2x1024xf32, #tpu.memory_space<vmem>>, %arg1: memref<1024x1024xbf16, #tpu.memory_space<vmem>>, %arg2: memref<1024x512xbf16, #tpu.memory_space<vmem>>, %arg3: memref<512x256xbf16, #tpu.memory_space<vmem>>, %arg4: memref<256x128xbf16, #tpu.memory_space<vmem>>, %arg5: memref<3x1024xf32, #tpu.memory_space<vmem>>, %arg6: memref<3x512xf32, #tpu.memory_space<vmem>>, %arg7: memref<3x256xf32, #tpu.memory_space<vmem>>, %arg8: memref<3x128xf32, #tpu.memory_space<vmem>>, %arg9: memref<128x1xf32, #tpu.memory_space<vmem>>, %arg10: memref<1x1xf32, #tpu.memory_space<vmem>>, %arg11: memref<2x1xf32, #tpu.memory_space<vmem>>) attributes {dimension_semantics = [], scalar_prefetch = 0 : i64, scratch_operands = 0 : i64, tpu.core_type = #tpu.core_type<tc>} {
    %c0 = arith.constant 0 : index
    %c0_0 = arith.constant 0 : index
    %0 = vector.load %arg0[%c0, %c0_0] : memref<2x1024xf32, #tpu.memory_space<vmem>>, vector<2x1024xf32>
    %1 = arith.truncf %0 : vector<2x1024xf32> to vector<2x1024xbf16>
    %c0_1 = arith.constant 0 : index
    %c0_2 = arith.constant 0 : index
    %2 = vector.load %arg1[%c0_1, %c0_2] : memref<1024x1024xbf16, #tpu.memory_space<vmem>>, vector<1024x1024xbf16>
    %cst = arith.constant dense<0.000000e+00> : vector<2x1024xf32>
    %3 = tpu.matmul %1, %2, %cst {dimension_numbers = #tpu.dot_dimension_numbers<[1], [0], [0], [1], [0, 0, 1, 1], [], []>} : vector<2x1024xbf16>, vector<1024x1024xbf16>, vector<2x1024xf32> -> vector<2x1024xf32>
    %c0_3 = arith.constant 0 : index
    %c0_4 = arith.constant 0 : index
    %4 = vector.load %arg5[%c0_3, %c0_4] : memref<3x1024xf32, #tpu.memory_space<vmem>>, vector<1x1024xf32>
    %5 = vector.broadcast %4 : vector<1x1024xf32> to vector<2x1024xf32>
    %6 = arith.addf %3, %5 : vector<2x1024xf32>
    %cst_5 = arith.constant 0.000000e+00 : f32
    %7 = vector.broadcast %cst_5 : f32 to vector<2x1024xf32>
    %8 = arith.cmpf oge, %6, %7 : vector<2x1024xf32>
    %cst_6 = arith.constant 2.000000e-01 : f32
    %9 = vector.broadcast %cst_6 : f32 to vector<2x1024xf32>
    %10 = arith.mulf %9, %6 : vector<2x1024xf32>
    %11 = arith.select %8, %6, %10 : vector<2x1024xi1>, vector<2x1024xf32>
    %c1 = arith.constant 1 : index
    %c0_7 = arith.constant 0 : index
    %12 = vector.load %arg5[%c1, %c0_7] : memref<3x1024xf32, #tpu.memory_space<vmem>>, vector<1x1024xf32>
    %13 = vector.broadcast %12 : vector<1x1024xf32> to vector<2x1024xf32>
    %14 = arith.mulf %11, %13 : vector<2x1024xf32>
    %c2 = arith.constant 2 : index
    %c0_8 = arith.constant 0 : index
    %15 = vector.load %arg5[%c2, %c0_8] : memref<3x1024xf32, #tpu.memory_space<vmem>>, vector<1x1024xf32>
    %16 = vector.broadcast %15 : vector<1x1024xf32> to vector<2x1024xf32>
    %17 = arith.addf %14, %16 : vector<2x1024xf32>
    %18 = arith.truncf %17 : vector<2x1024xf32> to vector<2x1024xbf16>
    %c0_9 = arith.constant 0 : index
    %c0_10 = arith.constant 0 : index
    %19 = vector.load %arg2[%c0_9, %c0_10] : memref<1024x512xbf16, #tpu.memory_space<vmem>>, vector<1024x512xbf16>
    %cst_11 = arith.constant dense<0.000000e+00> : vector<2x512xf32>
    %20 = tpu.matmul %18, %19, %cst_11 {dimension_numbers = #tpu.dot_dimension_numbers<[1], [0], [0], [1], [0, 0, 1, 1], [], []>} : vector<2x1024xbf16>, vector<1024x512xbf16>, vector<2x512xf32> -> vector<2x512xf32>
    %c0_12 = arith.constant 0 : index
    %c0_13 = arith.constant 0 : index
    %21 = vector.load %arg6[%c0_12, %c0_13] : memref<3x512xf32, #tpu.memory_space<vmem>>, vector<1x512xf32>
    %22 = vector.broadcast %21 : vector<1x512xf32> to vector<2x512xf32>
    %23 = arith.addf %20, %22 : vector<2x512xf32>
    %cst_14 = arith.constant 0.000000e+00 : f32
    %24 = vector.broadcast %cst_14 : f32 to vector<2x512xf32>
    %25 = arith.cmpf oge, %23, %24 : vector<2x512xf32>
    %cst_15 = arith.constant 2.000000e-01 : f32
    %26 = vector.broadcast %cst_15 : f32 to vector<2x512xf32>
    %27 = arith.mulf %26, %23 : vector<2x512xf32>
    %28 = arith.select %25, %23, %27 : vector<2x512xi1>, vector<2x512xf32>
    %c1_16 = arith.constant 1 : index
    %c0_17 = arith.constant 0 : index
    %29 = vector.load %arg6[%c1_16, %c0_17] : memref<3x512xf32, #tpu.memory_space<vmem>>, vector<1x512xf32>
    %30 = vector.broadcast %29 : vector<1x512xf32> to vector<2x512xf32>
    %31 = arith.mulf %28, %30 : vector<2x512xf32>
    %c2_18 = arith.constant 2 : index
    %c0_19 = arith.constant 0 : index
    %32 = vector.load %arg6[%c2_18, %c0_19] : memref<3x512xf32, #tpu.memory_space<vmem>>, vector<1x512xf32>
    %33 = vector.broadcast %32 : vector<1x512xf32> to vector<2x512xf32>
    %34 = arith.addf %31, %33 : vector<2x512xf32>
    %35 = arith.truncf %34 : vector<2x512xf32> to vector<2x512xbf16>
    %c0_20 = arith.constant 0 : index
    %c0_21 = arith.constant 0 : index
    %36 = vector.load %arg3[%c0_20, %c0_21] : memref<512x256xbf16, #tpu.memory_space<vmem>>, vector<512x256xbf16>
    %cst_22 = arith.constant dense<0.000000e+00> : vector<2x256xf32>
    %37 = tpu.matmul %35, %36, %cst_22 {dimension_numbers = #tpu.dot_dimension_numbers<[1], [0], [0], [1], [0, 0, 1, 1], [], []>} : vector<2x512xbf16>, vector<512x256xbf16>, vector<2x256xf32> -> vector<2x256xf32>
    %c0_23 = arith.constant 0 : index
    %c0_24 = arith.constant 0 : index
    %38 = vector.load %arg7[%c0_23, %c0_24] : memref<3x256xf32, #tpu.memory_space<vmem>>, vector<1x256xf32>
    %39 = vector.broadcast %38 : vector<1x256xf32> to vector<2x256xf32>
    %40 = arith.addf %37, %39 : vector<2x256xf32>
    %cst_25 = arith.constant 0.000000e+00 : f32
    %41 = vector.broadcast %cst_25 : f32 to vector<2x256xf32>
    %42 = arith.cmpf oge, %40, %41 : vector<2x256xf32>
    %cst_26 = arith.constant 2.000000e-01 : f32
    %43 = vector.broadcast %cst_26 : f32 to vector<2x256xf32>
    %44 = arith.mulf %43, %40 : vector<2x256xf32>
    %45 = arith.select %42, %40, %44 : vector<2x256xi1>, vector<2x256xf32>
    %c1_27 = arith.constant 1 : index
    %c0_28 = arith.constant 0 : index
    %46 = vector.load %arg7[%c1_27, %c0_28] : memref<3x256xf32, #tpu.memory_space<vmem>>, vector<1x256xf32>
    %47 = vector.broadcast %46 : vector<1x256xf32> to vector<2x256xf32>
    %48 = arith.mulf %45, %47 : vector<2x256xf32>
    %c2_29 = arith.constant 2 : index
    %c0_30 = arith.constant 0 : index
    %49 = vector.load %arg7[%c2_29, %c0_30] : memref<3x256xf32, #tpu.memory_space<vmem>>, vector<1x256xf32>
    %50 = vector.broadcast %49 : vector<1x256xf32> to vector<2x256xf32>
    %51 = arith.addf %48, %50 : vector<2x256xf32>
    %52 = arith.truncf %51 : vector<2x256xf32> to vector<2x256xbf16>
    %c0_31 = arith.constant 0 : index
    %c0_32 = arith.constant 0 : index
    %53 = vector.load %arg4[%c0_31, %c0_32] : memref<256x128xbf16, #tpu.memory_space<vmem>>, vector<256x128xbf16>
    %cst_33 = arith.constant dense<0.000000e+00> : vector<2x128xf32>
    %54 = tpu.matmul %52, %53, %cst_33 {dimension_numbers = #tpu.dot_dimension_numbers<[1], [0], [0], [1], [0, 0, 1, 1], [], []>} : vector<2x256xbf16>, vector<256x128xbf16>, vector<2x128xf32> -> vector<2x128xf32>
    %c0_34 = arith.constant 0 : index
    %c0_35 = arith.constant 0 : index
    %55 = vector.load %arg8[%c0_34, %c0_35] : memref<3x128xf32, #tpu.memory_space<vmem>>, vector<1x128xf32>
    %56 = vector.broadcast %55 : vector<1x128xf32> to vector<2x128xf32>
    %57 = arith.addf %54, %56 : vector<2x128xf32>
    %cst_36 = arith.constant 0.000000e+00 : f32
    %58 = vector.broadcast %cst_36 : f32 to vector<2x128xf32>
    %59 = arith.cmpf oge, %57, %58 : vector<2x128xf32>
    %cst_37 = arith.constant 2.000000e-01 : f32
    %60 = vector.broadcast %cst_37 : f32 to vector<2x128xf32>
    %61 = arith.mulf %60, %57 : vector<2x128xf32>
    %62 = arith.select %59, %57, %61 : vector<2x128xi1>, vector<2x128xf32>
    %c1_38 = arith.constant 1 : index
    %c0_39 = arith.constant 0 : index
    %63 = vector.load %arg8[%c1_38, %c0_39] : memref<3x128xf32, #tpu.memory_space<vmem>>, vector<1x128xf32>
    %64 = vector.broadcast %63 : vector<1x128xf32> to vector<2x128xf32>
    %65 = arith.mulf %62, %64 : vector<2x128xf32>
    %c2_40 = arith.constant 2 : index
    %c0_41 = arith.constant 0 : index
    %66 = vector.load %arg8[%c2_40, %c0_41] : memref<3x128xf32, #tpu.memory_space<vmem>>, vector<1x128xf32>
    %67 = vector.broadcast %66 : vector<1x128xf32> to vector<2x128xf32>
    %68 = arith.addf %65, %67 : vector<2x128xf32>
    %c0_42 = arith.constant 0 : index
    %c0_43 = arith.constant 0 : index
    %69 = vector.load %arg9[%c0_42, %c0_43] : memref<128x1xf32, #tpu.memory_space<vmem>>, vector<128x1xf32>
    %cst_44 = arith.constant dense<0.000000e+00> : vector<2x1xf32>
    %70 = tpu.matmul %68, %69, %cst_44 {dimension_numbers = #tpu.dot_dimension_numbers<[1], [0], [0], [1], [0, 0, 1, 1], [], []>} : vector<2x128xf32>, vector<128x1xf32>, vector<2x1xf32> -> vector<2x1xf32>
    %c0_45 = arith.constant 0 : index
    %c0_46 = arith.constant 0 : index
    %71 = vector.load %arg10[%c0_45, %c0_46] : memref<1x1xf32, #tpu.memory_space<vmem>>, vector<1x1xf32>
    %72 = vector.broadcast %71 : vector<1x1xf32> to vector<2x1xf32>
    %73 = arith.addf %70, %72 : vector<2x1xf32>
    %cst_47 = arith.constant 0.000000e+00 : f32
    %74 = vector.broadcast %cst_47 : f32 to vector<2x1xf32>
    %75 = arith.subf %74, %73 : vector<2x1xf32>
    %76 = math.exp %75 : vector<2x1xf32>
    %cst_48 = arith.constant 1.000000e+00 : f32
    %77 = vector.broadcast %cst_48 : f32 to vector<2x1xf32>
    %78 = arith.addf %77, %76 : vector<2x1xf32>
    %cst_49 = arith.constant 1.000000e+00 : f32
    %79 = vector.broadcast %cst_49 : f32 to vector<2x1xf32>
    %80 = arith.divf %79, %78 : vector<2x1xf32>
    %c0_50 = arith.constant 0 : index
    %c0_51 = arith.constant 0 : index
    %81 = vector.load %arg11[%c0_50, %c0_51] : memref<2x1xf32, #tpu.memory_space<vmem>>, vector<2x1xf32>
    tpu.vector_store %arg11[%c0_50, %c0_51], %80 {strides = array<i32>} : memref<2x1xf32, #tpu.memory_space<vmem>>, vector<2x1xf32>,
    return
  }
}

</mosaic_0001>

<bundles_post_ra>
// kernel: discriminator_forward.1
= control target key start
LH: loop header
LB: loop body
LE: loop exit
PB: predicated region body
PF: predicated region fallthrough
CT: control target
= control target key end

     0   :  { %s8959_s0 = inlined_call_operand.vmem [shape: f32[2,1024], index: 0, kind: input, shape index: {}]   ;;  %s8960_s1 = inlined_call_operand.hbm [shape: bf16[1024,1024], index: 1, kind: input, shape index: {}]   ;;  %s8961_s2 = inlined_call_operand.hbm [shape: bf16[1024,512], index: 2, kind: input, shape index: {}]   ;;  %s8962_s3 = inlined_call_operand.hbm [shape: bf16[512,256], index: 3, kind: input, shape index: {}]   ;;  %s8963_s4 = inlined_call_operand.hbm [shape: bf16[256,128], index: 4, kind: input, shape index: {}]   ;;  %s8964_s5 = inlined_call_operand.hbm [shape: f32[3,1024], index: 5, kind: input, shape index: {}]   ;;  %s8965_s6 = inlined_call_operand.hbm [shape: f32[3,512], index: 6, kind: input, shape index: {}]   ;;  %s8966_s7 = inlined_call_operand.hbm [shape: f32[3,256], index: 7, kind: input, shape index: {}]   ;;  %s8967_s8 = inlined_call_operand.hbm [shape: f32[3,128], index: 8, kind: input, shape index: {}]   ;;  %s8968_s9 = inlined_call_operand.vmem [shape: f32[128,1], index: 9, kind: input, shape index: {}]   ;;  %s8969_s10 = inlined_call_operand.<no memory space> [shape: f32[1,1], index: 10, kind: input, shape index: {}]   ;;  %s8970_s11 = inlined_call_operand.vmem [shape: f32[2,1], index: 11, kind: output, shape index: {}]  }
   0x1   :  { %v16_v0 = vstv %s8969_s10 }
   0x2   :  { %17 = vst [vmem:[#allocation2] sm:$0x1] %v16_v0 }
   0x3   :  { %18 = vsyncpa [#allocation4], 0 }
   0x4   :  { %19 = vsyncpa [#allocation6], 0 }
   0x5   :  { %20 = vsyncpa [#allocation9], 0 }
   0x6   :  { %21 = vsyncpa [#allocation12], 0 }
   0x7   :  { %22 = vsyncpa [#allocation15], 0  ;;  %s8488_s19 = smov [#allocation5]  }
   0x8   :  { %s42_s20 = sshll.u32 %s8488_s19, 4  ;;  %s43_s20 = int_to_ptr.vmem [resolvable:$true] %s42_s20 }
   0x9   :  { %s8326_s21 = scalar_lea.vmem %s43_s20, 32768  ;;  %p8331_p1 = scmp.lt.s32.totalorder %s43_s20, %s43_s20 }
   0xa   :  { %p8327_p0 = scmp.ne.s32.totalorder %s43_s20, %s8326_s21  ;;  %p8332_p2 = scmp.lt.s32.totalorder %s8326_s21, %s8326_s21 }
   0xc   :  { %p8333_p3 = por %p8332_p2, %p8331_p1 }
   0xe   :  { %p8334_p4 = pnand %p8333_p3, %p8327_p0 }
  0x10   :  { %8337 = shalt.err (!%p8334_p4)
}
  0x11   :  { %s8489_s22 = smov 256   ;;  %s8490_s23 = smov 16  }
  0x12   :  { %48 = dma.hbm_to_vmem [thread:$0]  %s8961_s2, 32768, %s43_s20, [#allocation6], %s8489_s22, %s8489_s22, %s8490_s23  }
  0x13   :  { %s8491_s25 = smov [#allocation8]  }
  0x14   :  { %s66_s26 = sshll.u32 %s8491_s25, 4  ;;  %s67_s26 = int_to_ptr.vmem [resolvable:$true] %s66_s26 }
  0x15   :  { %s8346_s27 = scalar_lea.vmem %s67_s26, 2048  ;;  %p8351_p6 = scmp.lt.s32.totalorder %s67_s26, %s67_s26 }
  0x16   :  { %p8347_p5 = scmp.ne.s32.totalorder %s67_s26, %s8346_s27  ;;  %p8352_p7 = scmp.lt.s32.totalorder %s8346_s27, %s8346_s27 }
  0x18   :  { %p8353_p8 = por %p8352_p7, %p8351_p6 }
  0x1a   :  { %p8354_p9 = pnand %p8353_p8, %p8347_p5 }
  0x1c   :  { %8357 = shalt.err (!%p8354_p9)
}
  0x1d   :  { %s8492_s28 = smov 64   ;;  %s8493_s29 = smov 4  }
  0x1e   :  { %72 = dma.hbm_to_vmem [thread:$0]  %s8963_s4, 2048, %s67_s26, [#allocation9], %s8492_s28, %s8492_s28, %s8493_s29  }
  0x1f   :  { %s8494_s13 = smov [#allocation11]   ;;  %s8495_s15 = smov [#allocation3]  }
  0x20   :  { %s89_s14 = sshll.u32 %s8494_s13, 4  ;;  %s30_s2 = sshll.u32 %s8495_s15, 4  ;;  %s90_s14 = int_to_ptr.vmem [resolvable:$true] %s89_s14  ;;  %s31_s2 = int_to_ptr.vmem [resolvable:$true] %s30_s2 }
  0x21   :  { %s8366_s16 = scalar_lea.vmem %s90_s14, 256  ;;  %p8371_p11 = scmp.lt.s32.totalorder %s90_s14, %s90_s14 }
  0x22   :  { %p8367_p10 = scmp.ne.s32.totalorder %s90_s14, %s8366_s16  ;;  %p8372_p12 = scmp.lt.s32.totalorder %s8366_s16, %s8366_s16 }
  0x24   :  { %p8373_p13 = por %p8372_p12, %p8371_p11 }
  0x26   :  { %p8374_p0 = pnand %p8373_p13, %p8367_p10 }
  0x28   :  { %8377 = shalt.err (!%p8374_p0)
}
  0x29   :  { %92 = dma.hbm_to_vmem [thread:$0]  %s8965_s6, 256, %s90_s14, [#allocation12]  }
  0x2a   :  { %s8386_s19 = scalar_lea.vmem %s31_s2, 65536  ;;  %p8391_p2 = scmp.lt.s32.totalorder %s31_s2, %s31_s2 }
  0x2b   :  { %p8387_p1 = scmp.ne.s32.totalorder %s31_s2, %s8386_s19  ;;  %p8392_p3 = scmp.lt.s32.totalorder %s8386_s19, %s8386_s19 }
  0x2d   :  { %p8393_p4 = por %p8392_p3, %p8391_p2 }
  0x2f   :  { %p8394_p5 = pnand %p8393_p4, %p8387_p1 }
  0x31   :  { %8397 = shalt.err (!%p8394_p5)
}
  0x32   :  { %s8496_s4 = smov 512   ;;  %s8497_s20 = smov 32  }
  0x33   :  { %36 = dma.hbm_to_vmem [thread:$0]  %s8960_s1, 65536, %s31_s2, [#allocation4], %s8496_s4, %s8496_s4, %s8497_s20  }
  0x34   :  { %s8498_s23 = smov [#allocation7]  }
  0x35   :  { %s54_s24 = sshll.u32 %s8498_s23, 4  ;;  %s55_s24 = int_to_ptr.vmem [resolvable:$true] %s54_s24 }
  0x36   :  { %s8406_s10 = scalar_lea.vmem %s55_s24, 8192  ;;  %p8411_p7 = scmp.lt.s32.totalorder %s55_s24, %s55_s24 }
  0x37   :  { %p8407_p6 = scmp.ne.s32.totalorder %s55_s24, %s8406_s10  ;;  %p8412_p8 = scmp.lt.s32.totalorder %s8406_s10, %s8406_s10 }
  0x39   :  { %p8413_p9 = por %p8412_p8, %p8411_p7 }
  0x3b   :  { %p8414_p10 = pnand %p8413_p9, %p8407_p6 }
  0x3d   :  { %8417 = shalt.err (!%p8414_p10)
}
  0x3e   :  { %s8499_s6 = smov 128   ;;  %s8500_s25 = smov 8  }
  0x3f   :  { %60 = dma.hbm_to_vmem [thread:$0]  %s8962_s3, 8192, %s55_s24, [#allocation6], %s8499_s6, %s8499_s6, %s8500_s25  }
  0x40   :  { %s8501_s28 = smov [#allocation10]   ;;  %s8502_s1 = smov [#allocation13]  }
  0x41   :  { %s79_s29 = sshll.u32 %s8501_s28, 4  ;;  %s99_s30 = sshll.u32 %s8502_s1, 4  ;;  %s80_s29 = int_to_ptr.vmem [resolvable:$true] %s79_s29  ;;  %s100_s30 = int_to_ptr.vmem [resolvable:$true] %s99_s30 }
  0x42   :  { %s8426_s12 = scalar_lea.vmem %s80_s29, 512  ;;  %p8431_p12 = scmp.lt.s32.totalorder %s80_s29, %s80_s29 }
  0x43   :  { %p8427_p11 = scmp.ne.s32.totalorder %s80_s29, %s8426_s12  ;;  %p8432_p13 = scmp.lt.s32.totalorder %s8426_s12, %s8426_s12 }
  0x45   :  { %p8433_p0 = por %p8432_p13, %p8431_p12 }
  0x47   :  { %p8434_p1 = pnand %p8433_p0, %p8427_p11 }
  0x49   :  { %8437 = shalt.err (!%p8434_p1)
}
  0x4a   :  { %82 = dma.hbm_to_vmem [thread:$0]  %s8964_s5, 512, %s80_s29, [#allocation9]  }
  0x4b   :  { %s8446_s15 = scalar_lea.vmem %s100_s30, 128  ;;  %p8451_p3 = scmp.lt.s32.totalorder %s100_s30, %s100_s30 }
  0x4c   :  { %p8447_p2 = scmp.ne.s32.totalorder %s100_s30, %s8446_s15  ;;  %p8452_p4 = scmp.lt.s32.totalorder %s8446_s15, %s8446_s15 }
  0x4e   :  { %p8453_p5 = por %p8452_p4, %p8451_p3 }
  0x50   :  { %p8454_p6 = pnand %p8453_p5, %p8447_p2 }
  0x52   :  { %8457 = shalt.err (!%p8454_p6)
}
  0x53   :  { %102 = dma.hbm_to_vmem [thread:$0]  %s8966_s7, 128, %s100_s30, [#allocation12]  }
  0x54   :  { %s8503_s16 = smov [#allocation14]  }
  0x55   :  { %s109_s17 = sshll.u32 %s8503_s16, 4  ;;  %s110_s17 = int_to_ptr.vmem [resolvable:$true] %s109_s17 }
  0x56   :  { %s8466_s18 = scalar_lea.vmem %s110_s17, 64  ;;  %p8471_p8 = scmp.lt.s32.totalorder %s110_s17, %s110_s17 }
  0x57   :  { %p8467_p7 = scmp.ne.s32.totalorder %s110_s17, %s8466_s18  ;;  %p8472_p9 = scmp.lt.s32.totalorder %s8466_s18, %s8466_s18 }
  0x59   :  { %p8473_p10 = por %p8472_p9, %p8471_p8 }
  0x5b   :  { %p8474_p11 = pnand %p8473_p10, %p8467_p7 }
  0x5d   :  { %8477 = shalt.err (!%p8474_p11)
}
  0x5e   :  { %112 = dma.hbm_to_vmem [thread:$0]  %s8967_s8, 64, %s110_s17, [#allocation15]  }
  0x5f   :  { %8478 = dma.done.wait [#allocation4], 65536  }
  0x60   :  { %8479 = vsyncadd [#allocation4], 4294901760 }
  0x61   :  { %8480 = dma.done.wait [#allocation6], 40960  }
  0x62   :  { %8481 = vsyncadd [#allocation6], 4294926336 }
  0x63   :  { %8482 = dma.done.wait [#allocation9], 2560  }
  0x64   :  { %8483 = vsyncadd [#allocation9], 4294964736 }
  0x65   :  { %8484 = dma.done.wait [#allocation12], 384  }
  0x66   :  { %8485 = vsyncadd [#allocation12], 4294966912 }
  0x67   :  { %8486 = dma.done.wait [#allocation15], 64  }
  0x68   :  { %8487 = vsyncadd [#allocation15], 4294967232  ;;  %v252_v1 = vld [vmem:[#allocation3 + $0x1c0] sm:$0xff]  ;;  %v8504_v33 = vmov 1983009808   ;;  %v150_v35 = vlaneseq  ;;  %vm8506_vm14 = vmmov 0  }
  0x69   :  { %v256_v2 = vld [vmem:[#allocation3 + $0x1e0] sm:$0xff]  ;;  %v148_v34 = vunpack.c.l.s4 %v8504_v33 }
  0x6a   :  { %v380_v3 = vld [vmem:[#allocation3 + $0x5c0] sm:$0xff]  ;;  %v6927_v4 = vcombine.high %v252_v1, %v256_v2  ;;  %v6926_v6 = vcombine.low %v252_v1, %v256_v2  ;;  %v8594_v45 = vshrl.u32 %v150_v35, 7 }
  0x6b   :  { %v384_v5 = vld [vmem:[#allocation3 + $0x5e0] sm:$0xff]  ;;  %v149_v44 = vunpack.c.0.s8 %v148_v34 }
  0x6c   :  { %v244_v7 = vld [vmem:[#allocation3 + $0x180] sm:$0xff]  ;;  %v7055_v9 = vcombine.high %v380_v3, %v384_v5  ;;  %v7054_v10 = vcombine.low %v380_v3, %v384_v5  ;;  %3310 = vmatprep.subr.bf16.mxu0 %v6927_v4 }
  0x6d   :  { %v248_v8 = vld [vmem:[#allocation3 + $0x1a0] sm:$0xff]  ;;  %3311 = vmatpush1.bf16.msra.mxu0 %v6926_v6  ;;  %v8597_v54 = vsub.s32 %v149_v44, %v8594_v45 }
  0x6e   :  { %v6919_v11 = vcombine.high %v244_v7, %v248_v8  ;;  %v372_v12 = vld [vmem:[#allocation3 + $0x580] sm:$0xff]  ;;  %3351 = vmatprep.subr.bf16.mxu1 %v7055_v9  ;;  %v6918_v19 = vcombine.low %v244_v7, %v248_v8 }
  0x6f   :  { %v376_v13 = vld [vmem:[#allocation3 + $0x5a0] sm:$0xff]  ;;  %3352 = vmatpush1.bf16.msra.mxu1 %v7054_v10 }
  0x70   :  { %v236_v14 = vld [vmem:[#allocation3 + $0x140] sm:$0xff]  ;;  %v7047_v15 = vcombine.high %v372_v12, %v376_v13  ;;  %3312 = vmatprep.subr.bf16.mxu0 %v6919_v11  ;;  %v7046_v20 = vcombine.low %v372_v12, %v376_v13 }
  0x71   :  { %v240_v16 = vld [vmem:[#allocation3 + $0x160] sm:$0xff]  ;;  %3313 = vmatpush1.bf16.msra.mxu0 %v6918_v19 }
  0x72   :  { %v364_v17 = vld [vmem:[#allocation3 + $0x540] sm:$0xff]  ;;  %v6911_v21 = vcombine.high %v236_v14, %v240_v16  ;;  %3353 = vmatprep.subr.bf16.mxu1 %v7047_v15  ;;  %v6910_v27 = vcombine.low %v236_v14, %v240_v16 }
  0x73   :  { %v368_v18 = vld [vmem:[#allocation3 + $0x560] sm:$0xff]  ;;  %3354 = vmatpush1.bf16.msra.mxu1 %v7046_v20 }
  0x74   :  { %v7039_v22 = vcombine.high %v364_v17, %v368_v18  ;;  %v228_v23 = vld [vmem:[#allocation3 + $0x100] sm:$0xff]  ;;  %3314 = vmatprep.subr.bf16.mxu0 %v6911_v21  ;;  %v7038_v28 = vcombine.low %v364_v17, %v368_v18 }
  0x75   :  { %v232_v24 = vld [vmem:[#allocation3 + $0x120] sm:$0xff]  ;;  %3315 = vmatpush1.bf16.msra.mxu0 %v6910_v27 }
  0x76   :  { %v356_v25 = vld [vmem:[#allocation3 + $0x500] sm:$0xff]  ;;  %v6903_v29 = vcombine.high %v228_v23, %v232_v24  ;;  %3355 = vmatprep.subr.bf16.mxu1 %v7039_v22  ;;  %v6902_v38 = vcombine.low %v228_v23, %v232_v24 }
  0x77   :  { %v360_v26 = vld [vmem:[#allocation3 + $0x520] sm:$0xff]  ;;  %3356 = vmatpush1.bf16.msra.mxu1 %v7038_v28 }
  0x78   :  { %v7031_v30 = vcombine.high %v356_v25, %v360_v26  ;;  %v220_v31 = vld [vmem:[#allocation3 + $0xc0] sm:$0xff]  ;;  %3316 = vmatprep.subr.bf16.mxu0 %v6903_v29  ;;  %v7030_v39 = vcombine.low %v356_v25, %v360_v26 }
  0x79   :  { %v224_v32 = vld [vmem:[#allocation3 + $0xe0] sm:$0xff]  ;;  %3317 = vmatpush1.bf16.msra.mxu0 %v6902_v38 }
  0x7a   :  { %v348_v36 = vld [vmem:[#allocation3 + $0x4c0] sm:$0xff]  ;;  %v6895_v40 = vcombine.high %v220_v31, %v224_v32  ;;  %3357 = vmatprep.subr.bf16.mxu1 %v7031_v30  ;;  %v6894_v48 = vcombine.low %v220_v31, %v224_v32 }
  0x7b   :  { %v352_v37 = vld [vmem:[#allocation3 + $0x4e0] sm:$0xff]  ;;  %3358 = vmatpush1.bf16.msra.mxu1 %v7030_v39 }
  0x7c   :  { %v7023_v41 = vcombine.high %v348_v36, %v352_v37  ;;  %v212_v42 = vld [vmem:[#allocation3 + $0x80] sm:$0xff]  ;;  %3318 = vmatprep.subr.bf16.mxu0 %v6895_v40  ;;  %v7022_v49 = vcombine.low %v348_v36, %v352_v37 }
  0x7d   :  { %v216_v43 = vld [vmem:[#allocation3 + $0xa0] sm:$0xff]  ;;  %3319 = vmatpush1.bf16.msra.mxu0 %v6894_v48 }
  0x7e   :  { %v340_v46 = vld [vmem:[#allocation3 + $0x480] sm:$0xff]  ;;  %v6887_v50 = vcombine.high %v212_v42, %v216_v43  ;;  %3359 = vmatprep.subr.bf16.mxu1 %v7023_v41  ;;  %v6886_v57 = vcombine.low %v212_v42, %v216_v43 }
  0x7f   :  { %v344_v47 = vld [vmem:[#allocation3 + $0x4a0] sm:$0xff]  ;;  %3360 = vmatpush1.bf16.msra.mxu1 %v7022_v49 }
  0x80   :  { %v7015_v51 = vcombine.high %v340_v46, %v344_v47  ;;  %v204_v52 = vld [vmem:[#allocation3 + $0x40] sm:$0xff]  ;;  %3320 = vmatprep.subr.bf16.mxu0 %v6887_v50  ;;  %v7014_v58 = vcombine.low %v340_v46, %v344_v47 }
  0x81   :  { %v208_v53 = vld [vmem:[#allocation3 + $0x60] sm:$0xff]  ;;  %3321 = vmatpush1.bf16.msra.mxu0 %v6886_v57 }
  0x82   :  { %v332_v55 = vld [vmem:[#allocation3 + $0x440] sm:$0xff]  ;;  %v6879_v59 = vcombine.high %v204_v52, %v208_v53  ;;  %3361 = vmatprep.subr.bf16.mxu1 %v7015_v51  ;;  %v6878_v4 = vcombine.low %v204_v52, %v208_v53 }
  0x83   :  { %v336_v56 = vld [vmem:[#allocation3 + $0x460] sm:$0xff]  ;;  %3362 = vmatpush1.bf16.msra.mxu1 %v7014_v58 }
  0x84   :  { %v142_v60 = vld [vmem:[%s8959_s0] sm:$0xff]  ;;  %v7007_v61 = vcombine.high %v332_v55, %v336_v56  ;;  %3322 = vmatprep.subr.bf16.mxu0 %v6879_v59  ;;  %v7006_v7 = vcombine.low %v332_v55, %v336_v56 }
  0x85   :  { %v196_v62 = vld [vmem:[#allocation3] sm:$0xff]  ;;  %v8603_v0 = vrot.slane %v142_v60, %v8597_v54  ;;  %v146_v1 = vcombine.high %v142_v60, %v142_v60  ;;  %3323 = vmatpush1.bf16.msra.mxu0 %v6878_v4 }
  0x86   :  { %v200_v63 = vld [vmem:[#allocation3 + $0x20] sm:$0xff]  ;;  %3363 = vmatprep.subr.bf16.mxu1 %v7007_v61 }
  0x87   :  { %v324_v2 = vld [vmem:[#allocation3 + $0x400] sm:$0xff]  ;;  %v161_v5 = vcombine.high %v8603_v0, %v8603_v0  ;;  %v8608_v6 = vrot.slane %v146_v1, %v8597_v54  ;;  %v6871_v8 = vcombine.high %v196_v62, %v200_v63  ;;  %v6870_v16 = vcombine.low %v196_v62, %v200_v63  ;;  %3364 = vmatpush1.bf16.msra.mxu1 %v7006_v7 }
  0x88   :  { %v328_v3 = vld [vmem:[#allocation3 + $0x420] sm:$0xff] }
  0x89   :  { %v6999_v9 = vcombine.high %v324_v2, %v328_v3  ;;  %v316_v10 = vld [vmem:[#allocation3 + $0x3c0] sm:$0xff]  ;;  %v8610_v12 = vpack.c.bf16 %v161_v5, %v161_v5  ;;  %v162_v13 = vcombine.high %v8608_v6, %v8608_v6  ;;  %3324 = vmatprep.subr.bf16.mxu0 %v6871_v8  ;;  %v6998_v18 = vcombine.low %v324_v2, %v328_v3 }
  0x8a   :  { %v320_v11 = vld [vmem:[#allocation3 + $0x3e0] sm:$0xff]  ;;  %3325 = vmatpush1.bf16.msra.mxu0 %v6870_v16 }
  0x8b   :  { %v444_v14 = vld [vmem:[#allocation3 + $0x7c0] sm:$0xff]  ;;  %3342 = vmatprep.mubr.bf16.mxu0 %v8610_v12  ;;  %v8615_v17 = vpack.c.bf16 %v162_v13, %v162_v13  ;;  %v6991_v19 = vcombine.high %v316_v10, %v320_v11  ;;  %3365 = vmatprep.subr.bf16.mxu1 %v6999_v9  ;;  %v6990_v25 = vcombine.low %v316_v10, %v320_v11 }
  0x8c   :  { %v448_v15 = vld [vmem:[#allocation3 + $0x7e0] sm:$0xff]  ;;  %3366 = vmatpush1.bf16.msra.mxu1 %v6998_v18 }
  0x8d   :  { %v7119_v20 = vcombine.high %v444_v14, %v448_v15  ;;  %v308_v21 = vld [vmem:[#allocation3 + $0x380] sm:$0xff]  ;;  %3383 = vmatprep.mubr.bf16.mxu1 %v8615_v17  ;;  %3326 = vmatprep.subr.bf16.mxu0 %v6991_v19  ;;  %v7118_v26 = vcombine.low %v444_v14, %v448_v15 }
  0x8e   :  { %v312_v22 = vld [vmem:[#allocation3 + $0x3a0] sm:$0xff]  ;;  %3327 = vmatpush2.bf16.msra.mxu0 %v6990_v25 }
  0x8f   :  { %v436_v23 = vld [vmem:[#allocation3 + $0x780] sm:$0xff]  ;;  %v6983_v27 = vcombine.high %v308_v21, %v312_v22  ;;  %3367 = vmatprep.subr.bf16.mxu1 %v7119_v20  ;;  %v6982_v33 = vcombine.low %v308_v21, %v312_v22 }
  0x90   :  { %v440_v24 = vld [vmem:[#allocation3 + $0x7a0] sm:$0xff]  ;;  %3368 = vmatpush2.bf16.msra.mxu1 %v7118_v26 }
  0x91   :  { %v7111_v28 = vcombine.high %v436_v23, %v440_v24  ;;  %v300_v29 = vld [vmem:[#allocation3 + $0x340] sm:$0xff]  ;;  %3328 = vmatprep.subr.bf16.mxu0 %v6983_v27  ;;  %v7110_v34 = vcombine.low %v436_v23, %v440_v24 }
  0x92   :  { %v304_v30 = vld [vmem:[#allocation3 + $0x360] sm:$0xff]  ;;  %3329 = vmatpush2.bf16.msra.mxu0 %v6982_v33 }
  0x93   :  { %v428_v31 = vld [vmem:[#allocation3 + $0x740] sm:$0xff]  ;;  %v6975_v35 = vcombine.high %v300_v29, %v304_v30  ;;  %3369 = vmatprep.subr.bf16.mxu1 %v7111_v28  ;;  %v6974_v41 = vcombine.low %v300_v29, %v304_v30 }
  0x94   :  { %v432_v32 = vld [vmem:[#allocation3 + $0x760] sm:$0xff]  ;;  %3370 = vmatpush2.bf16.msra.mxu1 %v7110_v34  ;;  %v8631_v34 = vpack.c.bf16 %v8603_v0, %v8603_v0 }
  0x95   :  { %v7103_v36 = vcombine.high %v428_v31, %v432_v32  ;;  %v292_v37 = vld [vmem:[#allocation3 + $0x300] sm:$0xff]  ;;  %3330 = vmatprep.subr.bf16.mxu0 %v6975_v35  ;;  %v7102_v42 = vcombine.low %v428_v31, %v432_v32 }
  0x96   :  { %v296_v38 = vld [vmem:[#allocation3 + $0x320] sm:$0xff]  ;;  %3331 = vmatpush2.bf16.msra.mxu0 %v6974_v41 }
  0x97   :  { %v420_v39 = vld [vmem:[#allocation3 + $0x700] sm:$0xff]  ;;  %v6967_v43 = vcombine.high %v292_v37, %v296_v38  ;;  %3371 = vmatprep.subr.bf16.mxu1 %v7103_v36  ;;  %v6966_v50 = vcombine.low %v292_v37, %v296_v38  ;;  %v8637_v37 = vpack.c.bf16 %v8608_v6, %v8608_v6 }
  0x98   :  { %v424_v40 = vld [vmem:[#allocation3 + $0x720] sm:$0xff]  ;;  %3372 = vmatpush2.bf16.msra.mxu1 %v7102_v42 }
  0x99   :  { %v7095_v44 = vcombine.high %v420_v39, %v424_v40  ;;  %v284_v46 = vld [vmem:[#allocation3 + $0x2c0] sm:$0xff]  ;;  %3332 = vmatprep.subr.bf16.mxu0 %v6967_v43  ;;  %v7094_v51 = vcombine.low %v420_v39, %v424_v40 }
  0x9a   :  { %v288_v47 = vld [vmem:[#allocation3 + $0x2e0] sm:$0xff]  ;;  %3333 = vmatpush2.bf16.msra.mxu0 %v6966_v50 }
  0x9b   :  { %v412_v48 = vld [vmem:[#allocation3 + $0x6c0] sm:$0xff]  ;;  %v6959_v52 = vcombine.high %v284_v46, %v288_v47  ;;  %3373 = vmatprep.subr.bf16.mxu1 %v7095_v44  ;;  %v6958_v59 = vcombine.low %v284_v46, %v288_v47 }
  0x9c   :  { %v416_v49 = vld [vmem:[#allocation3 + $0x6e0] sm:$0xff]  ;;  %3374 = vmatpush2.bf16.msra.mxu1 %v7094_v51 }
  0x9d   :  { %v7087_v53 = vcombine.high %v412_v48, %v416_v49  ;;  %v276_v55 = vld [vmem:[#allocation3 + $0x280] sm:$0xff]  ;;  %3334 = vmatprep.subr.bf16.mxu0 %v6959_v52  ;;  %v7086_v60 = vcombine.low %v412_v48, %v416_v49 }
  0x9e   :  { %v280_v56 = vld [vmem:[#allocation3 + $0x2a0] sm:$0xff]  ;;  %3335 = vmatpush2.bf16.msra.mxu0 %v6958_v59 }
  0x9f   :  { %v404_v57 = vld [vmem:[#allocation3 + $0x680] sm:$0xff]  ;;  %v6951_v61 = vcombine.high %v276_v55, %v280_v56  ;;  %3375 = vmatprep.subr.bf16.mxu1 %v7087_v53  ;;  %v6950_v4 = vcombine.low %v276_v55, %v280_v56 }
  0xa0   :  { %v408_v58 = vld [vmem:[#allocation3 + $0x6a0] sm:$0xff]  ;;  %3376 = vmatpush2.bf16.msra.mxu1 %v7086_v60 }
  0xa1   :  { %v7079_v62 = vcombine.high %v404_v57, %v408_v58  ;;  %v268_v63 = vld [vmem:[#allocation3 + $0x240] sm:$0xff]  ;;  %3336 = vmatprep.subr.bf16.mxu0 %v6951_v61  ;;  %v7078_v7 = vcombine.low %v404_v57, %v408_v58 }
  0xa2   :  { %v272_v1 = vld [vmem:[#allocation3 + $0x260] sm:$0xff]  ;;  %3337 = vmatpush2.bf16.msra.mxu0 %v6950_v4 }
  0xa3   :  { %v396_v2 = vld [vmem:[#allocation3 + $0x640] sm:$0xff]  ;;  %v6943_v8 = vcombine.high %v268_v63, %v272_v1  ;;  %3377 = vmatprep.subr.bf16.mxu1 %v7079_v62  ;;  %v6942_v16 = vcombine.low %v268_v63, %v272_v1 }
  0xa4   :  { %v400_v3 = vld [vmem:[#allocation3 + $0x660] sm:$0xff]  ;;  %3378 = vmatpush2.bf16.msra.mxu1 %v7078_v7 }
  0xa5   :  { %v143_v5 = vld [vmem:[%s8959_s0 + $0x8] sm:$0xff]  ;;  %v7071_v9 = vcombine.high %v396_v2, %v400_v3  ;;  %3338 = vmatprep.subr.bf16.mxu0 %v6943_v8  ;;  %v7070_v18 = vcombine.low %v396_v2, %v400_v3 }
  0xa6   :  { %v260_v10 = vld [vmem:[#allocation3 + $0x200] sm:$0xff]  ;;  %v163_v15 = vcombine.high %v143_v5, %v143_v5  ;;  %v8622_v23 = vrot.slane %v143_v5, %v8597_v54  ;;  %3339 = vmatpush2.bf16.msra.mxu0 %v6942_v16 }
  0xa7   :  { %v264_v11 = vld [vmem:[#allocation3 + $0x220] sm:$0xff]  ;;  %3379 = vmatprep.subr.bf16.mxu1 %v7071_v9 }
  0xa8   :  { %v388_v13 = vld [vmem:[#allocation3 + $0x600] sm:$0xff]  ;;  %v6935_v19 = vcombine.high %v260_v10, %v264_v11  ;;  %v8625_v26 = vrot.slane %v163_v15, %v8597_v54  ;;  %v6934_v27 = vcombine.low %v260_v10, %v264_v11  ;;  %3380 = vmatpush2.bf16.msra.mxu1 %v7070_v18  ;;  %v178_v33 = vcombine.high %v8622_v23, %v8622_v23 }
  0xa9   :  { %v392_v14 = vld [vmem:[#allocation3 + $0x620] sm:$0xff] }
  0xaa   :  { %v7063_v20 = vcombine.high %v388_v13, %v392_v14  ;;  %v508_v21 = vld [vmem:[#allocation3 + $0x9c0] sm:$0xff]  ;;  %3340 = vmatprep.subr.bf16.mxu0 %v6935_v19  ;;  %v7062_v28 = vcombine.low %v388_v13, %v392_v14  ;;  %v179_v36 = vcombine.high %v8625_v26, %v8625_v26  ;;  %v8639_v46 = vpack.c.bf16 %v178_v33, %v178_v33 }
  0xab   :  { %v512_v22 = vld [vmem:[#allocation3 + $0x9e0] sm:$0xff]  ;;  %3341 = vmatpush2.bf16.msra.mxu0 %v6934_v27 }
  0xac   :  { %v636_v24 = vld [vmem:[#allocation3 + $0xdc0] sm:$0xff]  ;;  %v7183_v29 = vcombine.high %v508_v21, %v512_v22  ;;  %3381 = vmatprep.subr.bf16.mxu1 %v7063_v20  ;;  %v7182_v38 = vcombine.low %v508_v21, %v512_v22  ;;  %v8642_v47 = vpack.c.bf16 %v179_v36, %v179_v36 }
  0xad   :  { %v640_v25 = vld [vmem:[#allocation3 + $0xde0] sm:$0xff]  ;;  %3382 = vmatpush2.bf16.msra.mxu1 %v7062_v28 }
  0xae   :  { %v7311_v30 = vcombine.high %v636_v24, %v640_v25  ;;  %v500_v31 = vld [vmem:[#allocation3 + $0x980] sm:$0xff]  ;;  %3392 = vmatprep.subr.bf16.mxu0 %v7183_v29  ;;  %v7310_v39 = vcombine.low %v636_v24, %v640_v25  ;;  %3343 = vmatmul.mubr.bf16.vlgmr.msra.gmra.mxu0 %v8631_v34 }
  0xaf   :  { %v504_v32 = vld [vmem:[#allocation3 + $0x9a0] sm:$0xff]  ;;  %3393 = vmatpush1.bf16.msra.mxu0 %v7182_v38  ;;  %3424 = vmatprep.mubr.bf16.mxu0 %v8639_v46 }
  0xb0   :  { %v628_v35 = vld [vmem:[#allocation3 + $0xd80] sm:$0xff]  ;;  %v7175_v40 = vcombine.high %v500_v31, %v504_v32  ;;  %3433 = vmatprep.subr.bf16.mxu1 %v7311_v30  ;;  %3384 = vmatmul.mubr.bf16.vlgmr.msra.gmra.mxu1 %v8637_v37  ;;  %v7174_v6 = vcombine.low %v500_v31, %v504_v32 }
  0xb1   :  { %v632_v54 = vld [vmem:[#allocation3 + $0xda0] sm:$0xff]  ;;  %3434 = vmatpush1.bf16.msra.mxu1 %v7310_v39  ;;  %3465 = vmatprep.mubr.bf16.mxu1 %v8642_v47 }
  0xb2   :  { %v492_v41 = vld [vmem:[#allocation3 + $0x940] sm:$0xff]  ;;  %v7303_v0 = vcombine.high %v628_v35, %v632_v54  ;;  %3394 = vmatprep.subr.bf16.mxu0 %v7175_v40  ;;  %v7302_v48 = vcombine.low %v628_v35, %v632_v54 }
  0xb3   :  { %v496_v42 = vld [vmem:[#allocation3 + $0x960] sm:$0xff]  ;;  %3395 = vmatpush1.bf16.msra.mxu0 %v7174_v6 }
  0xb4   :  { %v620_v43 = vld [vmem:[#allocation3 + $0xd40] sm:$0xff]  ;;  %v7167_v49 = vcombine.high %v492_v41, %v496_v42  ;;  %3435 = vmatprep.subr.bf16.mxu1 %v7303_v0  ;;  %v7166_v56 = vcombine.low %v492_v41, %v496_v42 }
  0xb5   :  { %v624_v44 = vld [vmem:[#allocation3 + $0xd60] sm:$0xff]  ;;  %3436 = vmatpush1.bf16.msra.mxu1 %v7302_v48 }
  0xb6   :  { %v484_v50 = vld [vmem:[#allocation3 + $0x900] sm:$0xff]  ;;  %v7295_v53 = vcombine.high %v620_v43, %v624_v44  ;;  %3396 = vmatprep.subr.bf16.mxu0 %v7167_v49  ;;  %v7294_v57 = vcombine.low %v620_v43, %v624_v44 }
  0xb7   :  { %v488_v51 = vld [vmem:[#allocation3 + $0x920] sm:$0xff]  ;;  %3397 = vmatpush1.bf16.msra.mxu0 %v7166_v56 }
  0xb8   :  { %v612_v52 = vld [vmem:[#allocation3 + $0xd00] sm:$0xff]  ;;  %v7159_v58 = vcombine.high %v484_v50, %v488_v51  ;;  %3437 = vmatprep.subr.bf16.mxu1 %v7295_v53  ;;  %v7158_v1 = vcombine.low %v484_v50, %v488_v51 }
  0xb9   :  { %v616_v55 = vld [vmem:[#allocation3 + $0xd20] sm:$0xff]  ;;  %3438 = vmatpush1.bf16.msra.mxu1 %v7294_v57 }
  0xba   :  { %v476_v59 = vld [vmem:[#allocation3 + $0x8c0] sm:$0xff]  ;;  %v7287_v62 = vcombine.high %v612_v52, %v616_v55  ;;  %3398 = vmatprep.subr.bf16.mxu0 %v7159_v58  ;;  %v7286_v2 = vcombine.low %v612_v52, %v616_v55 }
  0xbb   :  { %v480_v60 = vld [vmem:[#allocation3 + $0x8e0] sm:$0xff]  ;;  %3399 = vmatpush1.bf16.msra.mxu0 %v7158_v1 }
  0xbc   :  { %v604_v61 = vld [vmem:[#allocation3 + $0xcc0] sm:$0xff]  ;;  %v7151_v3 = vcombine.high %v476_v59, %v480_v60  ;;  %3439 = vmatprep.subr.bf16.mxu1 %v7287_v62  ;;  %v7150_v10 = vcombine.low %v476_v59, %v480_v60 }
  0xbd   :  { %v608_v63 = vld [vmem:[#allocation3 + $0xce0] sm:$0xff]  ;;  %3440 = vmatpush1.bf16.msra.mxu1 %v7286_v2 }
  0xbe   :  { %v468_v4 = vld [vmem:[#allocation3 + $0x880] sm:$0xff]  ;;  %v7279_v8 = vcombine.high %v604_v61, %v608_v63  ;;  %3400 = vmatprep.subr.bf16.mxu0 %v7151_v3  ;;  %v7278_v11 = vcombine.low %v604_v61, %v608_v63 }
  0xbf   :  { %v472_v5 = vld [vmem:[#allocation3 + $0x8a0] sm:$0xff]  ;;  %3401 = vmatpush1.bf16.msra.mxu0 %v7150_v10 }
  0xc0   :  { %v596_v7 = vld [vmem:[#allocation3 + $0xc80] sm:$0xff]  ;;  %v7143_v13 = vcombine.high %v468_v4, %v472_v5  ;;  %3441 = vmatprep.subr.bf16.mxu1 %v7279_v8  ;;  %v7142_v20 = vcombine.low %v468_v4, %v472_v5 }
  0xc1   :  { %v600_v9 = vld [vmem:[#allocation3 + $0xca0] sm:$0xff]  ;;  %3442 = vmatpush1.bf16.msra.mxu1 %v7278_v11 }
  0xc2   :  { %v460_v14 = vld [vmem:[#allocation3 + $0x840] sm:$0xff]  ;;  %v7271_v18 = vcombine.high %v596_v7, %v600_v9  ;;  %3402 = vmatprep.subr.bf16.mxu0 %v7143_v13  ;;  %v7270_v21 = vcombine.low %v596_v7, %v600_v9 }
  0xc3   :  { %v464_v15 = vld [vmem:[#allocation3 + $0x860] sm:$0xff]  ;;  %3403 = vmatpush1.bf16.msra.mxu0 %v7142_v20 }
  0xc4   :  { %v588_v16 = vld [vmem:[#allocation3 + $0xc40] sm:$0xff]  ;;  %v7135_v22 = vcombine.high %v460_v14, %v464_v15  ;;  %3443 = vmatprep.subr.bf16.mxu1 %v7271_v18  ;;  %v7134_v30 = vcombine.low %v460_v14, %v464_v15 }
  0xc5   :  { %v592_v19 = vld [vmem:[#allocation3 + $0xc60] sm:$0xff]  ;;  %3444 = vmatpush1.bf16.msra.mxu1 %v7270_v21 }
  0xc6   :  { %v452_v24 = vld [vmem:[#allocation3 + $0x800] sm:$0xff]  ;;  %v7263_v28 = vcombine.high %v588_v16, %v592_v19  ;;  %3404 = vmatprep.subr.bf16.mxu0 %v7135_v22  ;;  %v7262_v31 = vcombine.low %v588_v16, %v592_v19 }
  0xc7   :  { %v456_v25 = vld [vmem:[#allocation3 + $0x820] sm:$0xff]  ;;  %3405 = vmatpush1.bf16.msra.mxu0 %v7134_v30 }
  0xc8   :  { %v580_v27 = vld [vmem:[#allocation3 + $0xc00] sm:$0xff]  ;;  %v7127_v32 = vcombine.high %v452_v24, %v456_v25  ;;  %3445 = vmatprep.subr.bf16.mxu1 %v7263_v28  ;;  %v7126_v39 = vcombine.low %v452_v24, %v456_v25 }
  0xc9   :  { %v584_v29 = vld [vmem:[#allocation3 + $0xc20] sm:$0xff]  ;;  %3446 = vmatpush1.bf16.msra.mxu1 %v7262_v31 }
  0xca   :  { %v572_v33 = vld [vmem:[#allocation3 + $0xbc0] sm:$0xff]  ;;  %v7255_v36 = vcombine.high %v580_v27, %v584_v29  ;;  %3406 = vmatprep.subr.bf16.mxu0 %v7127_v32  ;;  %v7254_v40 = vcombine.low %v580_v27, %v584_v29 }
  0xcb   :  { %v576_v35 = vld [vmem:[#allocation3 + $0xbe0] sm:$0xff]  ;;  %3407 = vmatpush1.bf16.msra.mxu0 %v7126_v39 }
  0xcc   :  { %v700_v54 = vld [vmem:[#allocation3 + $0xfc0] sm:$0xff]  ;;  %v7247_v41 = vcombine.high %v572_v33, %v576_v35  ;;  %3447 = vmatprep.subr.bf16.mxu1 %v7255_v36  ;;  %v7246_v48 = vcombine.low %v572_v33, %v576_v35 }
  0xcd   :  { %v704_v38 = vld [vmem:[#allocation3 + $0xfe0] sm:$0xff]  ;;  %3448 = vmatpush1.bf16.msra.mxu1 %v7254_v40 }
  0xce   :  { %v564_v42 = vld [vmem:[#allocation3 + $0xb80] sm:$0xff]  ;;  %v7375_v44 = vcombine.high %v700_v54, %v704_v38  ;;  %3408 = vmatprep.subr.bf16.mxu0 %v7247_v41  ;;  %v7374_v49 = vcombine.low %v700_v54, %v704_v38 }
  0xcf   :  { %v568_v43 = vld [vmem:[#allocation3 + $0xba0] sm:$0xff]  ;;  %3409 = vmatpush2.bf16.msra.mxu0 %v7246_v48  ;;  %v385_v48 = vld [vmem:[#allocation3 + $0x5e8] sm:$0xff] }
  0xd0   :  { %v692_v0 = vld [vmem:[#allocation3 + $0xf80] sm:$0xff]  ;;  %v7239_v50 = vcombine.high %v564_v42, %v568_v43  ;;  %3449 = vmatprep.subr.bf16.mxu1 %v7375_v44  ;;  %v7238_v57 = vcombine.low %v564_v42, %v568_v43  ;;  %v253_v43 = vld [vmem:[#allocation3 + $0x1c8] sm:$0xff] }
  0xd1   :  { %v696_v6 = vld [vmem:[#allocation3 + $0xfa0] sm:$0xff]  ;;  %3450 = vmatpush2.bf16.msra.mxu1 %v7374_v49  ;;  %v381_v44 = vld [vmem:[#allocation3 + $0x5c8] sm:$0xff] }
  0xd2   :  { %v556_v51 = vld [vmem:[#allocation3 + $0xb40] sm:$0xff]  ;;  %v7367_v55 = vcombine.high %v692_v0, %v696_v6  ;;  %3410 = vmatprep.subr.bf16.mxu0 %v7239_v50  ;;  %v7366_v58 = vcombine.low %v692_v0, %v696_v6  ;;  %v257_v0 = vld [vmem:[#allocation3 + $0x1e8] sm:$0xff] }
  0xd3   :  { %v560_v52 = vld [vmem:[#allocation3 + $0xb60] sm:$0xff]  ;;  %3411 = vmatpush2.bf16.msra.mxu0 %v7238_v57  ;;  %v377_v57 = vld [vmem:[#allocation3 + $0x5a8] sm:$0xff] }
  0xd4   :  { %v684_v53 = vld [vmem:[#allocation3 + $0xf40] sm:$0xff]  ;;  %v7231_v59 = vcombine.high %v556_v51, %v560_v52  ;;  %3451 = vmatprep.subr.bf16.mxu1 %v7367_v55  ;;  %v7230_v2 = vcombine.low %v556_v51, %v560_v52  ;;  %v6929_v51 = vcombine.high %v253_v43, %v257_v0  ;;  %v245_v52 = vld [vmem:[#allocation3 + $0x188] sm:$0xff] }
  0xd5   :  { %v688_v56 = vld [vmem:[#allocation3 + $0xf60] sm:$0xff]  ;;  %3452 = vmatpush2.bf16.msra.mxu1 %v7366_v58  ;;  %v373_v55 = vld [vmem:[#allocation3 + $0x588] sm:$0xff]  ;;  %v8649_v58 = vpack.c.bf16 %v8622_v23, %v8622_v23 }
  0xd6   :  { %v548_v60 = vld [vmem:[#allocation3 + $0xb00] sm:$0xff]  ;;  %v7359_v63 = vcombine.high %v684_v53, %v688_v56  ;;  %3412 = vmatprep.subr.bf16.mxu0 %v7231_v59  ;;  %v7358_v3 = vcombine.low %v684_v53, %v688_v56  ;;  %v249_v53 = vld [vmem:[#allocation3 + $0x1a8] sm:$0xff]  ;;  %v7057_v56 = vcombine.high %v381_v44, %v385_v48  ;;  %v8653_v59 = vpack.c.bf16 %v8625_v26, %v8625_v26 }
  0xd7   :  { %v552_v61 = vld [vmem:[#allocation3 + $0xb20] sm:$0xff]  ;;  %3413 = vmatpush2.bf16.msra.mxu0 %v7230_v2  ;;  %v7049_v2 = vcombine.high %v373_v55, %v377_v57  ;;  %v6920_v23 = vcombine.low %v245_v52, %v249_v53  ;;  %v7048_v26 = vcombine.low %v373_v55, %v377_v57  ;;  %v321_v55 = vld [vmem:[#allocation3 + $0x3e8] sm:$0xff] }
  0xd8   :  { %v676_v62 = vld [vmem:[#allocation3 + $0xf00] sm:$0xff]  ;;  %v7223_v4 = vcombine.high %v548_v60, %v552_v61  ;;  %3453 = vmatprep.subr.bf16.mxu1 %v7359_v63  ;;  %v7222_v11 = vcombine.low %v548_v60, %v552_v61  ;;  %v6928_v60 = vcombine.low %v253_v43, %v257_v0  ;;  %v7056_v61 = vcombine.low %v381_v44, %v385_v48  ;;  %v237_v63 = vld [vmem:[#allocation3 + $0x148] sm:$0xff] }
  0xd9   :  { %v680_v1 = vld [vmem:[#allocation3 + $0xf20] sm:$0xff]  ;;  %3454 = vmatpush2.bf16.msra.mxu1 %v7358_v3  ;;  %v365_v3 = vld [vmem:[#allocation3 + $0x548] sm:$0xff] }
  0xda   :  { %v540_v5 = vld [vmem:[#allocation3 + $0xac0] sm:$0xff]  ;;  %v7351_v9 = vcombine.high %v676_v62, %v680_v1  ;;  %3414 = vmatprep.subr.bf16.mxu0 %v7223_v4  ;;  %v7350_v13 = vcombine.low %v676_v62, %v680_v1  ;;  %v6921_v62 = vcombine.high %v245_v52, %v249_v53  ;;  %v241_v1 = vld [vmem:[#allocation3 + $0x168] sm:$0xff] }
  0xdb   :  { %v544_v7 = vld [vmem:[#allocation3 + $0xae0] sm:$0xff]  ;;  %3415 = vmatpush2.bf16.msra.mxu0 %v7222_v11  ;;  %v369_v4 = vld [vmem:[#allocation3 + $0x568] sm:$0xff] }
  0xdc   :  { %v668_v8 = vld [vmem:[#allocation3 + $0xec0] sm:$0xff]  ;;  %v7215_v14 = vcombine.high %v540_v5, %v544_v7  ;;  %3455 = vmatprep.subr.bf16.mxu1 %v7351_v9  ;;  %v7214_v21 = vcombine.low %v540_v5, %v544_v7  ;;  %v6913_v5 = vcombine.high %v237_v63, %v241_v1  ;;  %v229_v7 = vld [vmem:[#allocation3 + $0x108] sm:$0xff] }
  0xdd   :  { %v672_v10 = vld [vmem:[#allocation3 + $0xee0] sm:$0xff]  ;;  %3456 = vmatpush2.bf16.msra.mxu1 %v7350_v13  ;;  %v357_v9 = vld [vmem:[#allocation3 + $0x508] sm:$0xff]  ;;  %v6912_v13 = vcombine.low %v237_v63, %v241_v1 }
  0xde   :  { %v532_v15 = vld [vmem:[#allocation3 + $0xa80] sm:$0xff]  ;;  %v7343_v19 = vcombine.high %v668_v8, %v672_v10  ;;  %3416 = vmatprep.subr.bf16.mxu0 %v7215_v14  ;;  %v7342_v22 = vcombine.low %v668_v8, %v672_v10  ;;  %v233_v8 = vld [vmem:[#allocation3 + $0x128] sm:$0xff]  ;;  %v7041_v10 = vcombine.high %v365_v3, %v369_v4  ;;  %v7040_v14 = vcombine.low %v365_v3, %v369_v4 }
  0xdf   :  { %v536_v16 = vld [vmem:[#allocation3 + $0xaa0] sm:$0xff]  ;;  %3417 = vmatpush2.bf16.msra.mxu0 %v7214_v21  ;;  %v361_v11 = vld [vmem:[#allocation3 + $0x528] sm:$0xff] }
  0xe0   :  { %v660_v18 = vld [vmem:[#allocation3 + $0xe80] sm:$0xff]  ;;  %v7207_v24 = vcombine.high %v532_v15, %v536_v16  ;;  %3457 = vmatprep.subr.bf16.mxu1 %v7343_v19  ;;  %v7206_v31 = vcombine.low %v532_v15, %v536_v16  ;;  %v6905_v15 = vcombine.high %v229_v7, %v233_v8  ;;  %v221_v16 = vld [vmem:[#allocation3 + $0xc8] sm:$0xff] }
  0xe1   :  { %v664_v20 = vld [vmem:[#allocation3 + $0xea0] sm:$0xff]  ;;  %3458 = vmatpush2.bf16.msra.mxu1 %v7342_v22  ;;  %v349_v19 = vld [vmem:[#allocation3 + $0x4c8] sm:$0xff]  ;;  %v6904_v22 = vcombine.low %v229_v7, %v233_v8 }
  0xe2   :  { %v524_v25 = vld [vmem:[#allocation3 + $0xa40] sm:$0xff]  ;;  %v7335_v29 = vcombine.high %v660_v18, %v664_v20  ;;  %3418 = vmatprep.subr.bf16.mxu0 %v7207_v24  ;;  %v7334_v32 = vcombine.low %v660_v18, %v664_v20  ;;  %v225_v18 = vld [vmem:[#allocation3 + $0xe8] sm:$0xff]  ;;  %v7033_v20 = vcombine.high %v357_v9, %v361_v11  ;;  %v7032_v24 = vcombine.low %v357_v9, %v361_v11 }
  0xe3   :  { %v528_v27 = vld [vmem:[#allocation3 + $0xa60] sm:$0xff]  ;;  %3419 = vmatpush2.bf16.msra.mxu0 %v7206_v31  ;;  %v353_v21 = vld [vmem:[#allocation3 + $0x4e8] sm:$0xff] }
  0xe4   :  { %v652_v28 = vld [vmem:[#allocation3 + $0xe40] sm:$0xff]  ;;  %v7199_v33 = vcombine.high %v524_v25, %v528_v27  ;;  %3459 = vmatprep.subr.bf16.mxu1 %v7335_v29  ;;  %v7198_v40 = vcombine.low %v524_v25, %v528_v27  ;;  %v6897_v25 = vcombine.high %v221_v16, %v225_v18  ;;  %v213_v27 = vld [vmem:[#allocation3 + $0x88] sm:$0xff] }
  0xe5   :  { %v656_v30 = vld [vmem:[#allocation3 + $0xe60] sm:$0xff]  ;;  %3460 = vmatpush2.bf16.msra.mxu1 %v7334_v32  ;;  %v341_v29 = vld [vmem:[#allocation3 + $0x488] sm:$0xff]  ;;  %v6896_v32 = vcombine.low %v221_v16, %v225_v18 }
  0xe6   :  { %v516_v35 = vld [vmem:[#allocation3 + $0xa00] sm:$0xff]  ;;  %v7327_v38 = vcombine.high %v652_v28, %v656_v30  ;;  %3420 = vmatprep.subr.bf16.mxu0 %v7199_v33  ;;  %v7326_v41 = vcombine.low %v652_v28, %v656_v30  ;;  %v217_v28 = vld [vmem:[#allocation3 + $0xa8] sm:$0xff]  ;;  %v7025_v30 = vcombine.high %v349_v19, %v353_v21  ;;  %v7024_v33 = vcombine.low %v349_v19, %v353_v21 }
  0xe7   :  { %v520_v54 = vld [vmem:[#allocation3 + $0xa20] sm:$0xff]  ;;  %3421 = vmatpush2.bf16.msra.mxu0 %v7198_v40  ;;  %v345_v31 = vld [vmem:[#allocation3 + $0x4a8] sm:$0xff] }
  0xe8   :  { %v644_v36 = vld [vmem:[#allocation3 + $0xe00] sm:$0xff]  ;;  %v7191_v42 = vcombine.high %v516_v35, %v520_v54  ;;  %3461 = vmatprep.subr.bf16.mxu1 %v7327_v38  ;;  %v7190_v49 = vcombine.low %v516_v35, %v520_v54  ;;  %v6889_v35 = vcombine.high %v213_v27, %v217_v28  ;;  %v205_v54 = vld [vmem:[#allocation3 + $0x48] sm:$0xff] }
  0xe9   :  { %v648_v39 = vld [vmem:[#allocation3 + $0xe20] sm:$0xff]  ;;  %3462 = vmatpush2.bf16.msra.mxu1 %v7326_v41  ;;  %v333_v38 = vld [vmem:[#allocation3 + $0x448] sm:$0xff]  ;;  %v6888_v41 = vcombine.low %v213_v27, %v217_v28 }
  0xea   :  { %v7319_v6 = vcombine.high %v644_v36, %v648_v39  ;;  %3422 = vmatprep.subr.bf16.mxu0 %v7191_v42  ;;  %v7318_v50 = vcombine.low %v644_v36, %v648_v39  ;;  %v209_v36 = vld [vmem:[#allocation3 + $0x68] sm:$0xff]  ;;  %v7017_v39 = vcombine.high %v341_v29, %v345_v31  ;;  %v7016_v42 = vcombine.low %v341_v29, %v345_v31 }
  0xeb   :  { %3423 = vmatpush2.bf16.msra.mxu0 %v7190_v49  ;;  %v337_v40 = vld [vmem:[#allocation3 + $0x468] sm:$0xff]  ;;  %v6881_v43 = vcombine.high %v205_v54, %v209_v36 }
  0xec   :  { %3463 = vmatprep.subr.bf16.mxu1 %v7319_v6  ;;  %3474 = vmatprep.subr.bf16.mxu0 %v6929_v51  ;;  %v197_v0 = vld [vmem:[#allocation3 + $0x8] sm:$0xff]  ;;  %v7009_v48 = vcombine.high %v333_v38, %v337_v40  ;;  %v7008_v51 = vcombine.low %v333_v38, %v337_v40 }
  0xed   :  { %3464 = vmatpush2.bf16.msra.mxu1 %v7318_v50  ;;  %v201_v44 = vld [vmem:[#allocation3 + $0x28] sm:$0xff]  ;;  %v6880_v50 = vcombine.low %v205_v54, %v209_v36 }
  0xee   :  { %3515 = vmatprep.subr.bf16.mxu1 %v7057_v56  ;;  %3425 = vmatmul.mubr.bf16.vlgmr.msra.gmra.mxu0 %v8649_v58  ;;  %v325_v6 = vld [vmem:[#allocation3 + $0x408] sm:$0xff]  ;;  %v6873_v52 = vcombine.high %v197_v0, %v201_v44 }
  0xef   :  { %3475 = vmatpush1.bf16.msra.mxu0 %v6928_v60  ;;  %3506 = vmatprep.mubr.bf16.mxu0 %v8610_v12  ;;  %v329_v49 = vld [vmem:[#allocation3 + $0x428] sm:$0xff] }
  0xf0   :  { %3466 = vmatmul.mubr.bf16.vlgmr.msra.gmra.mxu1 %v8653_v59  ;;  %3476 = vmatprep.subr.bf16.mxu0 %v6921_v62  ;;  %v317_v53 = vld [vmem:[#allocation3 + $0x3c8] sm:$0xff]  ;;  %v7001_v57 = vcombine.high %v325_v6, %v329_v49  ;;  %v7000_v62 = vcombine.low %v325_v6, %v329_v49 }
  0xf1   :  { %3516 = vmatpush1.bf16.msra.mxu1 %v7056_v61  ;;  %3547 = vmatprep.mubr.bf16.mxu1 %v8615_v17  ;;  %v445_v56 = vld [vmem:[#allocation3 + $0x7c8] sm:$0xff]  ;;  %v6872_v61 = vcombine.low %v197_v0, %v201_v44  ;;  %v6993_v63 = vcombine.high %v317_v53, %v321_v55 }
  0xf2   :  { %3517 = vmatprep.subr.bf16.mxu1 %v7049_v2  ;;  %v449_v60 = vld [vmem:[#allocation3 + $0x7e8] sm:$0xff] }
  0xf3   :  { %3477 = vmatpush1.bf16.msra.mxu0 %v6920_v23  ;;  %v309_v1 = vld [vmem:[#allocation3 + $0x388] sm:$0xff]  ;;  %v7121_v4 = vcombine.high %v445_v56, %v449_v60 }
  0xf4   :  { %3478 = vmatprep.subr.bf16.mxu0 %v6913_v5  ;;  %v313_v2 = vld [vmem:[#allocation3 + $0x3a8] sm:$0xff]  ;;  %v7120_v5 = vcombine.low %v445_v56, %v449_v60 }
  0xf5   :  { %3518 = vmatpush1.bf16.msra.mxu1 %v7048_v26  ;;  %v437_v3 = vld [vmem:[#allocation3 + $0x788] sm:$0xff]  ;;  %v6992_v26 = vcombine.low %v317_v53, %v321_v55  ;;  %v6985_v7 = vcombine.high %v309_v1, %v313_v2 }
  0xf6   :  { %3519 = vmatprep.subr.bf16.mxu1 %v7041_v10  ;;  %v441_v23 = vld [vmem:[#allocation3 + $0x7a8] sm:$0xff] }
  0xf7   :  { %3479 = vmatpush1.bf16.msra.mxu0 %v6912_v13  ;;  %v301_v8 = vld [vmem:[#allocation3 + $0x348] sm:$0xff]  ;;  %v7113_v11 = vcombine.high %v437_v3, %v441_v23 }
  0xf8   :  { %3480 = vmatprep.subr.bf16.mxu0 %v6905_v15  ;;  %v305_v9 = vld [vmem:[#allocation3 + $0x368] sm:$0xff]  ;;  %v7112_v15 = vcombine.low %v437_v3, %v441_v23 }
  0xf9   :  { %3520 = vmatpush1.bf16.msra.mxu1 %v7040_v14  ;;  %v429_v10 = vld [vmem:[#allocation3 + $0x748] sm:$0xff]  ;;  %v6984_v14 = vcombine.low %v309_v1, %v313_v2  ;;  %v6977_v16 = vcombine.high %v301_v8, %v305_v9 }
  0xfa   :  { %3521 = vmatprep.subr.bf16.mxu1 %v7033_v20  ;;  %v433_v13 = vld [vmem:[#allocation3 + $0x768] sm:$0xff] }
  0xfb   :  { %3481 = vmatpush1.bf16.msra.mxu0 %v6904_v22  ;;  %v293_v18 = vld [vmem:[#allocation3 + $0x308] sm:$0xff]  ;;  %v7105_v21 = vcombine.high %v429_v10, %v433_v13 }
  0xfc   :  { %3482 = vmatprep.subr.bf16.mxu0 %v6897_v25  ;;  %v297_v19 = vld [vmem:[#allocation3 + $0x328] sm:$0xff]  ;;  %v7104_v25 = vcombine.low %v429_v10, %v433_v13 }
  0xfd   :  { %3522 = vmatpush1.bf16.msra.mxu1 %v7032_v24  ;;  %v421_v20 = vld [vmem:[#allocation3 + $0x708] sm:$0xff]  ;;  %v6976_v24 = vcombine.low %v301_v8, %v305_v9  ;;  %v6969_v27 = vcombine.high %v293_v18, %v297_v19 }
  0xfe   :  { %3523 = vmatprep.subr.bf16.mxu1 %v7025_v30  ;;  %v425_v22 = vld [vmem:[#allocation3 + $0x728] sm:$0xff] }
  0xff   :  { %3483 = vmatpush1.bf16.msra.mxu0 %v6896_v32  ;;  %v285_v28 = vld [vmem:[#allocation3 + $0x2c8] sm:$0xff]  ;;  %v7097_v31 = vcombine.high %v421_v20, %v425_v22 }
 0x100   :  { %3484 = vmatprep.subr.bf16.mxu0 %v6889_v35  ;;  %v289_v29 = vld [vmem:[#allocation3 + $0x2e8] sm:$0xff]  ;;  %v7096_v35 = vcombine.low %v421_v20, %v425_v22 }
 0x101   :  { %3524 = vmatpush1.bf16.msra.mxu1 %v7024_v33  ;;  %v413_v30 = vld [vmem:[#allocation3 + $0x6c8] sm:$0xff]  ;;  %v6968_v33 = vcombine.low %v293_v18, %v297_v19  ;;  %v6961_v54 = vcombine.high %v285_v28, %v289_v29 }
 0x102   :  { %3525 = vmatprep.subr.bf16.mxu1 %v7017_v39  ;;  %v417_v32 = vld [vmem:[#allocation3 + $0x6e8] sm:$0xff] }
 0x103   :  { %3485 = vmatpush1.bf16.msra.mxu0 %v6888_v41  ;;  %v277_v36 = vld [vmem:[#allocation3 + $0x288] sm:$0xff]  ;;  %v7089_v40 = vcombine.high %v413_v30, %v417_v32 }
 0x104   :  { %3486 = vmatprep.subr.bf16.mxu0 %v6881_v43  ;;  %v281_v38 = vld [vmem:[#allocation3 + $0x2a8] sm:$0xff]  ;;  %v7088_v43 = vcombine.low %v413_v30, %v417_v32 }
 0x105   :  { %3526 = vmatpush1.bf16.msra.mxu1 %v7016_v42  ;;  %v405_v39 = vld [vmem:[#allocation3 + $0x688] sm:$0xff]  ;;  %v6960_v42 = vcombine.low %v285_v28, %v289_v29  ;;  %v6953_v0 = vcombine.high %v277_v36, %v281_v38 }
 0x106   :  { %3527 = vmatprep.subr.bf16.mxu1 %v7009_v48  ;;  %v409_v41 = vld [vmem:[#allocation3 + $0x6a8] sm:$0xff] }
 0x107   :  { %3487 = vmatpush1.bf16.msra.mxu0 %v6880_v50  ;;  %v269_v44 = vld [vmem:[#allocation3 + $0x248] sm:$0xff]  ;;  %v7081_v49 = vcombine.high %v405_v39, %v409_v41 }
 0x108   :  { %3488 = vmatprep.subr.bf16.mxu0 %v6873_v52  ;;  %v273_v6 = vld [vmem:[#allocation3 + $0x268] sm:$0xff]  ;;  %v7080_v52 = vcombine.low %v405_v39, %v409_v41 }
 0x109   :  { %3528 = vmatpush1.bf16.msra.mxu1 %v7008_v51  ;;  %v397_v48 = vld [vmem:[#allocation3 + $0x648] sm:$0xff]  ;;  %v6952_v51 = vcombine.low %v277_v36, %v281_v38  ;;  %v6945_v53 = vcombine.high %v269_v44, %v273_v6 }
 0x10a   :  { %3529 = vmatprep.subr.bf16.mxu1 %v7001_v57  ;;  %v401_v50 = vld [vmem:[#allocation3 + $0x668] sm:$0xff] }
 0x10b   :  { %3489 = vmatpush1.bf16.msra.mxu0 %v6872_v61  ;;  %v261_v55 = vld [vmem:[#allocation3 + $0x208] sm:$0xff]  ;;  %v7073_v60 = vcombine.high %v397_v48, %v401_v50 }
 0x10c   :  { %3490 = vmatprep.subr.bf16.mxu0 %v6993_v63  ;;  %v265_v56 = vld [vmem:[#allocation3 + $0x228] sm:$0xff]  ;;  %v7072_v63 = vcombine.low %v397_v48, %v401_v50 }
 0x10d   :  { %3530 = vmatpush1.bf16.msra.mxu1 %v7000_v62  ;;  %v389_v57 = vld [vmem:[#allocation3 + $0x608] sm:$0xff]  ;;  %v6944_v62 = vcombine.low %v269_v44, %v273_v6  ;;  %v6937_v1 = vcombine.high %v261_v55, %v265_v56 }
 0x10e   :  { %3531 = vmatprep.subr.bf16.mxu1 %v7121_v4  ;;  %v393_v61 = vld [vmem:[#allocation3 + $0x628] sm:$0xff] }
 0x10f   :  { %3491 = vmatpush2.bf16.msra.mxu0 %v6992_v26  ;;  %v509_v2 = vld [vmem:[#allocation3 + $0x9c8] sm:$0xff]  ;;  %v7065_v23 = vcombine.high %v389_v57, %v393_v61 }
 0x110   :  { %3492 = vmatprep.subr.bf16.mxu0 %v6985_v7  ;;  %v513_v3 = vld [vmem:[#allocation3 + $0x9e8] sm:$0xff]  ;;  %v7064_v7 = vcombine.low %v389_v57, %v393_v61 }
 0x111   :  { %3532 = vmatpush2.bf16.msra.mxu1 %v7120_v5  ;;  %v637_v4 = vld [vmem:[#allocation3 + $0xdc8] sm:$0xff]  ;;  %v6936_v5 = vcombine.low %v261_v55, %v265_v56  ;;  %v7185_v8 = vcombine.high %v509_v2, %v513_v3 }
 0x112   :  { %3533 = vmatprep.subr.bf16.mxu1 %v7113_v11  ;;  %v641_v26 = vld [vmem:[#allocation3 + $0xde8] sm:$0xff] }
 0x113   :  { %3493 = vmatpush2.bf16.msra.mxu0 %v6984_v14  ;;  %v501_v9 = vld [vmem:[#allocation3 + $0x988] sm:$0xff]  ;;  %v7313_v13 = vcombine.high %v637_v4, %v641_v26 }
 0x114   :  { %3494 = vmatprep.subr.bf16.mxu0 %v6977_v16  ;;  %v505_v10 = vld [vmem:[#allocation3 + $0x9a8] sm:$0xff]  ;;  %v7312_v16 = vcombine.low %v637_v4, %v641_v26 }
 0x115   :  { %3534 = vmatpush2.bf16.msra.mxu1 %v7112_v15  ;;  %v629_v11 = vld [vmem:[#allocation3 + $0xd88] sm:$0xff]  ;;  %v7184_v15 = vcombine.low %v509_v2, %v513_v3  ;;  %v7177_v18 = vcombine.high %v501_v9, %v505_v10 }
 0x116   :  { %3535 = vmatprep.subr.bf16.mxu1 %v7105_v21  ;;  %v633_v14 = vld [vmem:[#allocation3 + $0xda8] sm:$0xff] }
 0x117   :  { %3495 = vmatpush2.bf16.msra.mxu0 %v6976_v24  ;;  %v493_v19 = vld [vmem:[#allocation3 + $0x948] sm:$0xff]  ;;  %v7305_v22 = vcombine.high %v629_v11, %v633_v14 }
 0x118   :  { %3496 = vmatprep.subr.bf16.mxu0 %v6969_v27  ;;  %v497_v20 = vld [vmem:[#allocation3 + $0x968] sm:$0xff]  ;;  %v7304_v27 = vcombine.low %v629_v11, %v633_v14 }
 0x119   :  { %3536 = vmatpush2.bf16.msra.mxu1 %v7104_v25  ;;  %v621_v21 = vld [vmem:[#allocation3 + $0xd48] sm:$0xff]  ;;  %v7176_v25 = vcombine.low %v501_v9, %v505_v10  ;;  %v7169_v28 = vcombine.high %v493_v19, %v497_v20 }
 0x11a   :  { %3537 = vmatprep.subr.bf16.mxu1 %v7097_v31  ;;  %v625_v24 = vld [vmem:[#allocation3 + $0xd68] sm:$0xff] }
 0x11b   :  { %3497 = vmatpush2.bf16.msra.mxu0 %v6968_v33  ;;  %v485_v29 = vld [vmem:[#allocation3 + $0x908] sm:$0xff]  ;;  %v7297_v32 = vcombine.high %v621_v21, %v625_v24 }
 0x11c   :  { %3498 = vmatprep.subr.bf16.mxu0 %v6961_v54  ;;  %v489_v30 = vld [vmem:[#allocation3 + $0x928] sm:$0xff]  ;;  %v7296_v54 = vcombine.low %v621_v21, %v625_v24 }
 0x11d   :  { %3538 = vmatpush2.bf16.msra.mxu1 %v7096_v35  ;;  %v613_v31 = vld [vmem:[#allocation3 + $0xd08] sm:$0xff]  ;;  %v7168_v35 = vcombine.low %v493_v19, %v497_v20  ;;  %v7161_v36 = vcombine.high %v485_v29, %v489_v30 }
 0x11e   :  { %3539 = vmatprep.subr.bf16.mxu1 %v7089_v40  ;;  %v617_v33 = vld [vmem:[#allocation3 + $0xd28] sm:$0xff] }
 0x11f   :  { %3499 = vmatpush2.bf16.msra.mxu0 %v6960_v42  ;;  %v477_v38 = vld [vmem:[#allocation3 + $0x8c8] sm:$0xff]  ;;  %v7289_v39 = vcombine.high %v613_v31, %v617_v33 }
 0x120   :  { %3500 = vmatprep.subr.bf16.mxu0 %v6953_v0  ;;  %v481_v40 = vld [vmem:[#allocation3 + $0x8e8] sm:$0xff]  ;;  %v7288_v0 = vcombine.low %v613_v31, %v617_v33 }
 0x121   :  { %3540 = vmatpush2.bf16.msra.mxu1 %v7088_v43  ;;  %v605_v41 = vld [vmem:[#allocation3 + $0xcc8] sm:$0xff]  ;;  %v7160_v43 = vcombine.low %v485_v29, %v489_v30  ;;  %v7153_v44 = vcombine.high %v477_v38, %v481_v40 }
 0x122   :  { %3541 = vmatprep.subr.bf16.mxu1 %v7081_v49  ;;  %v609_v42 = vld [vmem:[#allocation3 + $0xce8] sm:$0xff] }
 0x123   :  { %3501 = vmatpush2.bf16.msra.mxu0 %v6952_v51  ;;  %v469_v6 = vld [vmem:[#allocation3 + $0x888] sm:$0xff]  ;;  %v7281_v50 = vcombine.high %v605_v41, %v609_v42 }
 0x124   :  { %3502 = vmatprep.subr.bf16.mxu0 %v6945_v53  ;;  %v473_v48 = vld [vmem:[#allocation3 + $0x8a8] sm:$0xff]  ;;  %v7280_v53 = vcombine.low %v605_v41, %v609_v42 }
 0x125   :  { %3542 = vmatpush2.bf16.msra.mxu1 %v7080_v52  ;;  %v597_v49 = vld [vmem:[#allocation3 + $0xc88] sm:$0xff]  ;;  %v7152_v52 = vcombine.low %v477_v38, %v481_v40  ;;  %v7145_v55 = vcombine.high %v469_v6, %v473_v48 }
 0x126   :  { %3543 = vmatprep.subr.bf16.mxu1 %v7073_v60  ;;  %v601_v51 = vld [vmem:[#allocation3 + $0xca8] sm:$0xff] }
 0x127   :  { %3503 = vmatpush2.bf16.msra.mxu0 %v6944_v62  ;;  %v461_v56 = vld [vmem:[#allocation3 + $0x848] sm:$0xff]  ;;  %v7273_v61 = vcombine.high %v597_v49, %v601_v51 }
 0x128   :  { %3504 = vmatprep.subr.bf16.mxu0 %v6937_v1  ;;  %v465_v57 = vld [vmem:[#allocation3 + $0x868] sm:$0xff]  ;;  %v7272_v1 = vcombine.low %v597_v49, %v601_v51 }
 0x129   :  { %3544 = vmatpush2.bf16.msra.mxu1 %v7072_v63  ;;  %v589_v60 = vld [vmem:[#allocation3 + $0xc48] sm:$0xff]  ;;  %v7144_v63 = vcombine.low %v469_v6, %v473_v48  ;;  %v7137_v2 = vcombine.high %v461_v56, %v465_v57 }
 0x12a   :  { %3545 = vmatprep.subr.bf16.mxu1 %v7065_v23  ;;  %v593_v62 = vld [vmem:[#allocation3 + $0xc68] sm:$0xff] }
 0x12b   :  { %3505 = vmatpush2.bf16.msra.mxu0 %v6936_v5  ;;  %v453_v3 = vld [vmem:[#allocation3 + $0x808] sm:$0xff]  ;;  %v7265_v26 = vcombine.high %v589_v60, %v593_v62 }
 0x12c   :  { %3556 = vmatprep.subr.bf16.mxu0 %v7185_v8  ;;  %v457_v4 = vld [vmem:[#allocation3 + $0x828] sm:$0xff]  ;;  %v7264_v8 = vcombine.low %v589_v60, %v593_v62 }
 0x12d   :  { %3546 = vmatpush2.bf16.msra.mxu1 %v7064_v7  ;;  %v581_v23 = vld [vmem:[#allocation3 + $0xc08] sm:$0xff]  ;;  %v7136_v7 = vcombine.low %v461_v56, %v465_v57  ;;  %v7129_v9 = vcombine.high %v453_v3, %v457_v4 }
 0x12e   :  { %3597 = vmatprep.subr.bf16.mxu1 %v7313_v13  ;;  %3507 = vmatmul.mubr.bf16.vlgmr.msra.gmra.mxu0 %v8631_v34  ;;  %v585_v5 = vld [vmem:[#allocation3 + $0xc28] sm:$0xff] }
 0x12f   :  { %3557 = vmatpush1.bf16.msra.mxu0 %v7184_v15  ;;  %3588 = vmatprep.mubr.bf16.mxu0 %v8639_v46  ;;  %v573_v10 = vld [vmem:[#allocation3 + $0xbc8] sm:$0xff]  ;;  %v7257_v14 = vcombine.high %v581_v23, %v585_v5 }
 0x130   :  { %3548 = vmatmul.mubr.bf16.vlgmr.msra.gmra.mxu1 %v8637_v37  ;;  %3558 = vmatprep.subr.bf16.mxu0 %v7177_v18  ;;  %v577_v11 = vld [vmem:[#allocation3 + $0xbe8] sm:$0xff]  ;;  %v7256_v18 = vcombine.low %v581_v23, %v585_v5 }
 0x131   :  { %3598 = vmatpush1.bf16.msra.mxu1 %v7312_v16  ;;  %3629 = vmatprep.mubr.bf16.mxu1 %v8642_v47  ;;  %v701_v13 = vld [vmem:[#allocation3 + $0xfc8] sm:$0xff]  ;;  %v7128_v16 = vcombine.low %v453_v3, %v457_v4  ;;  %v7249_v19 = vcombine.high %v573_v10, %v577_v11 }
 0x132   :  { %3599 = vmatprep.subr.bf16.mxu1 %v7305_v22  ;;  %v705_v15 = vld [vmem:[#allocation3 + $0xfe8] sm:$0xff] }
 0x133   :  { %3559 = vmatpush1.bf16.msra.mxu0 %v7176_v25  ;;  %v565_v20 = vld [vmem:[#allocation3 + $0xb88] sm:$0xff]  ;;  %v7377_v24 = vcombine.high %v701_v13, %v705_v15 }
 0x134   :  { %3560 = vmatprep.subr.bf16.mxu0 %v7169_v28  ;;  %v569_v21 = vld [vmem:[#allocation3 + $0xba8] sm:$0xff]  ;;  %v7376_v28 = vcombine.low %v701_v13, %v705_v15 }
 0x135   :  { %3600 = vmatpush1.bf16.msra.mxu1 %v7304_v27  ;;  %v693_v22 = vld [vmem:[#allocation3 + $0xf88] sm:$0xff]  ;;  %v7248_v27 = vcombine.low %v573_v10, %v577_v11  ;;  %v7241_v29 = vcombine.high %v565_v20, %v569_v21 }
 0x136   :  { %3601 = vmatprep.subr.bf16.mxu1 %v7297_v32  ;;  %v697_v25 = vld [vmem:[#allocation3 + $0xfa8] sm:$0xff] }
 0x137   :  { %3561 = vmatpush1.bf16.msra.mxu0 %v7168_v35  ;;  %v557_v30 = vld [vmem:[#allocation3 + $0xb48] sm:$0xff]  ;;  %v7369_v33 = vcombine.high %v693_v22, %v697_v25 }
 0x138   :  { %3562 = vmatprep.subr.bf16.mxu0 %v7161_v36  ;;  %v561_v31 = vld [vmem:[#allocation3 + $0xb68] sm:$0xff]  ;;  %v7368_v36 = vcombine.low %v693_v22, %v697_v25  ;;  %v254_v22 = vld [vmem:[#allocation3 + $0x1d0] sm:$0xff] }
 0x139   :  { %3602 = vmatpush1.bf16.msra.mxu1 %v7296_v54  ;;  %v685_v32 = vld [vmem:[#allocation3 + $0xf48] sm:$0xff]  ;;  %v7240_v54 = vcombine.low %v565_v20, %v569_v21  ;;  %v7233_v38 = vcombine.high %v557_v30, %v561_v31  ;;  %v382_v25 = vld [vmem:[#allocation3 + $0x5d0] sm:$0xff] }
 0x13a   :  { %3603 = vmatprep.subr.bf16.mxu1 %v7289_v39  ;;  %v689_v35 = vld [vmem:[#allocation3 + $0xf68] sm:$0xff] }
 0x13b   :  { %3563 = vmatpush1.bf16.msra.mxu0 %v7160_v43  ;;  %v549_v39 = vld [vmem:[#allocation3 + $0xb08] sm:$0xff]  ;;  %v7361_v42 = vcombine.high %v685_v32, %v689_v35 }
 0x13c   :  { %3564 = vmatprep.subr.bf16.mxu0 %v7153_v44  ;;  %v553_v40 = vld [vmem:[#allocation3 + $0xb28] sm:$0xff]  ;;  %v7360_v44 = vcombine.low %v685_v32, %v689_v35  ;;  %v8669_v35 = vsub.s32 1, %v8594_v45 }
 0x13d   :  { %3604 = vmatpush1.bf16.msra.mxu1 %v7288_v0  ;;  %v677_v41 = vld [vmem:[#allocation3 + $0xf08] sm:$0xff]  ;;  %v7232_v0 = vcombine.low %v557_v30, %v561_v31  ;;  %v7225_v6 = vcombine.high %v549_v39, %v553_v40 }
 0x13e   :  { %3605 = vmatprep.subr.bf16.mxu1 %v7281_v50  ;;  %v681_v43 = vld [vmem:[#allocation3 + $0xf28] sm:$0xff] }
 0x13f   :  { %3565 = vmatpush1.bf16.msra.mxu0 %v7152_v52  ;;  %v541_v48 = vld [vmem:[#allocation3 + $0xac8] sm:$0xff]  ;;  %v7353_v51 = vcombine.high %v677_v41, %v681_v43 }
 0x140   :  { %3566 = vmatprep.subr.bf16.mxu0 %v7145_v55  ;;  %v545_v49 = vld [vmem:[#allocation3 + $0xae8] sm:$0xff]  ;;  %v7352_v55 = vcombine.low %v677_v41, %v681_v43 }
 0x141   :  { %3606 = vmatpush1.bf16.msra.mxu1 %v7280_v53  ;;  %v669_v50 = vld [vmem:[#allocation3 + $0xec8] sm:$0xff]  ;;  %v7224_v53 = vcombine.low %v549_v39, %v553_v40  ;;  %v7217_v56 = vcombine.high %v541_v48, %v545_v49  ;;  %v378_v39 = vld [vmem:[#allocation3 + $0x5b0] sm:$0xff] }
 0x142   :  { %3607 = vmatprep.subr.bf16.mxu1 %v7273_v61  ;;  %v673_v52 = vld [vmem:[#allocation3 + $0xee8] sm:$0xff] }
 0x143   :  { %3567 = vmatpush1.bf16.msra.mxu0 %v7144_v63  ;;  %v533_v57 = vld [vmem:[#allocation3 + $0xa88] sm:$0xff]  ;;  %v7345_v62 = vcombine.high %v669_v50, %v673_v52 }
 0x144   :  { %3568 = vmatprep.subr.bf16.mxu0 %v7137_v2  ;;  %v537_v60 = vld [vmem:[#allocation3 + $0xaa8] sm:$0xff]  ;;  %v7344_v2 = vcombine.low %v669_v50, %v673_v52  ;;  %v366_v50 = vld [vmem:[#allocation3 + $0x550] sm:$0xff] }
 0x145   :  { %3608 = vmatpush1.bf16.msra.mxu1 %v7272_v1  ;;  %v661_v61 = vld [vmem:[#allocation3 + $0xe88] sm:$0xff]  ;;  %v7216_v1 = vcombine.low %v541_v48, %v545_v49  ;;  %v7209_v3 = vcombine.high %v533_v57, %v537_v60  ;;  %v242_v48 = vld [vmem:[#allocation3 + $0x170] sm:$0xff] }
 0x146   :  { %3609 = vmatprep.subr.bf16.mxu1 %v7265_v26  ;;  %v665_v63 = vld [vmem:[#allocation3 + $0xea8] sm:$0xff] }
 0x147   :  { %3569 = vmatpush1.bf16.msra.mxu0 %v7136_v7  ;;  %v525_v4 = vld [vmem:[#allocation3 + $0xa48] sm:$0xff]  ;;  %v7337_v23 = vcombine.high %v661_v61, %v665_v63 }
 0x148   :  { %3570 = vmatprep.subr.bf16.mxu0 %v7129_v9  ;;  %v529_v26 = vld [vmem:[#allocation3 + $0xa68] sm:$0xff]  ;;  %v7336_v9 = vcombine.low %v661_v61, %v665_v63 }
 0x149   :  { %3610 = vmatpush1.bf16.msra.mxu1 %v7264_v8  ;;  %v653_v5 = vld [vmem:[#allocation3 + $0xe48] sm:$0xff]  ;;  %v7208_v8 = vcombine.low %v533_v57, %v537_v60  ;;  %v7201_v10 = vcombine.high %v525_v4, %v529_v26 }
 0x14a   :  { %3611 = vmatprep.subr.bf16.mxu1 %v7257_v14  ;;  %v657_v7 = vld [vmem:[#allocation3 + $0xe68] sm:$0xff] }
 0x14b   :  { %3571 = vmatpush1.bf16.msra.mxu0 %v7128_v16  ;;  %v7329_v11 = vcombine.high %v653_v5, %v657_v7  ;;  %v517_v13 = vld [vmem:[#allocation3 + $0xa08] sm:$0xff] }
 0x14c   :  { %3572 = vmatprep.subr.bf16.mxu0 %v7249_v19  ;;  %v521_v14 = vld [vmem:[#allocation3 + $0xa28] sm:$0xff]  ;;  %v7328_v19 = vcombine.low %v653_v5, %v657_v7 }
 0x14d   :  { %3612 = vmatpush1.bf16.msra.mxu1 %v7256_v18  ;;  %v645_v15 = vld [vmem:[#allocation3 + $0xe08] sm:$0xff]  ;;  %v7200_v18 = vcombine.low %v525_v4, %v529_v26  ;;  %v7193_v20 = vcombine.high %v517_v13, %v521_v14  ;;  %v362_v26 = vld [vmem:[#allocation3 + $0x530] sm:$0xff] }
 0x14e   :  { %3613 = vmatprep.subr.bf16.mxu1 %v7377_v24  ;;  %v649_v16 = vld [vmem:[#allocation3 + $0xe28] sm:$0xff]  ;;  %v258_v24 = vld [vmem:[#allocation3 + $0x1f0] sm:$0xff] }
 0x14f   :  { %3573 = vmatpush2.bf16.msra.mxu0 %v7248_v27  ;;  %v7321_v21 = vcombine.high %v645_v15, %v649_v16  ;;  %v386_v27 = vld [vmem:[#allocation3 + $0x5f0] sm:$0xff]  ;;  %v7320_v30 = vcombine.low %v645_v15, %v649_v16  ;;  %v6931_v32 = vcombine.high %v254_v22, %v258_v24  ;;  %v6930_v41 = vcombine.low %v254_v22, %v258_v24 }
 0x150   :  { %3574 = vmatprep.subr.bf16.mxu0 %v7241_v29  ;;  %v8664_v29 = vsub.s32 0, %v8594_v45  ;;  %v8666_v31 = vld [vmem:[#allocation10] ss:$4 sm:$0xff] }
 0x151   :  { %3614 = vmatpush2.bf16.msra.mxu1 %v7376_v28  ;;  %v7192_v28 = vcombine.low %v517_v13, %v521_v14  ;;  %v222_v15 = vld [vmem:[#allocation3 + $0xd0] sm:$0xff] }
 0x152   :  { %3615 = vmatprep.subr.bf16.mxu1 %v7369_v33  ;;  %v7059_v33 = vcombine.high %v382_v25, %v386_v27  ;;  %v713_v40 = vrot.slane %v8666_v31, %v8664_v29  ;;  %v226_v16 = vld [vmem:[#allocation3 + $0xf0] sm:$0xff] }
 0x153   :  { %3575 = vmatpush2.bf16.msra.mxu0 %v7240_v54  ;;  %v246_v54 = vld [vmem:[#allocation3 + $0x190] sm:$0xff]  ;;  %v6899_v22 = vcombine.high %v222_v15, %v226_v16 }
 0x154   :  { %3576 = vmatprep.subr.bf16.mxu0 %v7233_v38  ;;  %v374_v38 = vld [vmem:[#allocation3 + $0x590] sm:$0xff] }
 0x155   :  { %3616 = vmatpush2.bf16.msra.mxu1 %v7368_v36  ;;  %v250_v36 = vld [vmem:[#allocation3 + $0x1b0] sm:$0xff]  ;;  %v7050_v57 = vcombine.low %v374_v38, %v378_v39 }
 0x156   :  { %3617 = vmatprep.subr.bf16.mxu1 %v7361_v42  ;;  %v7058_v42 = vcombine.low %v382_v25, %v386_v27  ;;  %v6923_v43 = vcombine.high %v246_v54, %v250_v36  ;;  %v214_v25 = vld [vmem:[#allocation3 + $0x90] sm:$0xff] }
 0x157   :  { %3577 = vmatpush2.bf16.msra.mxu0 %v7232_v0  ;;  %v717_v0 = vrot.slane %v8666_v31, %v8669_v35  ;;  %v218_v27 = vld [vmem:[#allocation3 + $0xb0] sm:$0xff] }
 0x158   :  { %3578 = vmatprep.subr.bf16.mxu0 %v7225_v6  ;;  %v238_v6 = vld [vmem:[#allocation3 + $0x150] sm:$0xff] }
 0x159   :  { %3618 = vmatpush2.bf16.msra.mxu1 %v7360_v44  ;;  %v7051_v44 = vcombine.high %v374_v38, %v378_v39  ;;  %v6915_v60 = vcombine.high %v238_v6, %v242_v48  ;;  %v206_v38 = vld [vmem:[#allocation3 + $0x50] sm:$0xff] }
 0x15a   :  { %3619 = vmatprep.subr.bf16.mxu1 %v7353_v51  ;;  %v370_v51 = vld [vmem:[#allocation3 + $0x570] sm:$0xff] }
 0x15b   :  { %3579 = vmatpush2.bf16.msra.mxu0 %v7224_v53  ;;  %v210_v39 = vld [vmem:[#allocation3 + $0x70] sm:$0xff] }
 0x15c   :  { %3580 = vmatprep.subr.bf16.mxu0 %v7217_v56 }
 0x15d   :  { %3620 = vmatpush2.bf16.msra.mxu1 %v7352_v55  ;;  %v6922_v55 = vcombine.low %v246_v54, %v250_v36  ;;  %v6891_v54 = vcombine.high %v214_v25, %v218_v27 }
 0x15e   :  { %3621 = vmatprep.subr.bf16.mxu1 %v7345_v62 }
 0x15f   :  { %3581 = vmatpush2.bf16.msra.mxu0 %v7216_v1  ;;  %v7043_v1 = vcombine.high %v366_v50, %v370_v51 }
 0x160   :  { %3582 = vmatprep.subr.bf16.mxu0 %v7209_v3  ;;  %v234_v3 = vld [vmem:[#allocation3 + $0x130] sm:$0xff] }
 0x161   :  { %3622 = vmatpush2.bf16.msra.mxu1 %v7344_v2  ;;  %v230_v2 = vld [vmem:[#allocation3 + $0x110] sm:$0xff] }
 0x162   :  { %3623 = vmatprep.subr.bf16.mxu1 %v7337_v23  ;;  %v358_v23 = vld [vmem:[#allocation3 + $0x510] sm:$0xff] }
 0x163   :  { %3583 = vmatpush2.bf16.msra.mxu0 %v7208_v8  ;;  %v6914_v8 = vcombine.low %v238_v6, %v242_v48  ;;  %v7035_v14 = vcombine.high %v358_v23, %v362_v26  ;;  %v198_v6 = vld [vmem:[#allocation3 + $0x10] sm:$0xff] }
 0x164   :  { %3584 = vmatprep.subr.bf16.mxu0 %v7201_v10  ;;  %v7042_v10 = vcombine.low %v366_v50, %v370_v51  ;;  %v202_v48 = vld [vmem:[#allocation3 + $0x30] sm:$0xff]  ;;  %v6882_v51 = vcombine.low %v206_v38, %v210_v39 }
 0x165   :  { %3624 = vmatpush2.bf16.msra.mxu1 %v7336_v9  ;;  %v330_v50 = vld [vmem:[#allocation3 + $0x430] sm:$0xff] }
 0x166   :  { %3625 = vmatprep.subr.bf16.mxu1 %v7329_v11  ;;  %v6907_v11 = vcombine.high %v230_v2, %v234_v3 }
 0x167   :  { %3585 = vmatpush2.bf16.msra.mxu0 %v7200_v18  ;;  %v350_v18 = vld [vmem:[#allocation3 + $0x4d0] sm:$0xff] }
 0x168   :  { %3586 = vmatprep.subr.bf16.mxu0 %v7193_v20  ;;  %v6906_v20 = vcombine.low %v230_v2, %v234_v3 }
 0x169   :  { %3626 = vmatpush2.bf16.msra.mxu1 %v7328_v19  ;;  %v354_v19 = vld [vmem:[#allocation3 + $0x4f0] sm:$0xff] }
 0x16a   :  { %3627 = vmatprep.subr.bf16.mxu1 %v7321_v21  ;;  %v7034_v21 = vcombine.low %v358_v23, %v362_v26  ;;  %v7027_v24 = vcombine.high %v350_v18, %v354_v19  ;;  %v314_v23 = vld [vmem:[#allocation3 + $0x3b0] sm:$0xff] }
 0x16b   :  { %3587 = vmatpush2.bf16.msra.mxu0 %v7192_v28  ;;  %v342_v28 = vld [vmem:[#allocation3 + $0x490] sm:$0xff] }
 0x16c   :  { %3638 = vmatprep.subr.bf16.mxu0 %v6931_v32  ;;  %v6898_v32 = vcombine.low %v222_v15, %v226_v16  ;;  %v438_v26 = vld [vmem:[#allocation3 + $0x790] sm:$0xff] }
 0x16d   :  { %3628 = vmatpush2.bf16.msra.mxu1 %v7320_v30  ;;  %v346_v30 = vld [vmem:[#allocation3 + $0x4b0] sm:$0xff] }
 0x16e   :  { %3679 = vmatprep.subr.bf16.mxu1 %v7059_v33  ;;  %v3344_v49 = vpop.f32.mrf.mxu0  ;;  %3589 = vmatmul.mubr.bf16.vlgmr.msra.gmra.mxu0 %v8649_v58  ;;  %v7026_v33 = vcombine.low %v350_v18, %v354_v19  ;;  %v7019_v36 = vcombine.high %v342_v28, %v346_v30  ;;  %v430_v15 = vld [vmem:[#allocation3 + $0x750] sm:$0xff] }
 0x16f   :  { %v3345_v52 = vadd.f32 %v3344_v49, %v713_v40  ;;  %3639 = vmatpush1.bf16.msra.mxu0 %v6930_v41  ;;  %3670 = vmatprep.mubr.bf16.mxu0 %v8610_v12  ;;  %v334_v40 = vld [vmem:[#allocation3 + $0x450] sm:$0xff] }
 0x170   :  { %v3385_v53 = vpop.f32.mrf.mxu1  ;;  %3630 = vmatmul.mubr.bf16.vlgmr.msra.gmra.mxu1 %v8653_v59  ;;  %v3346_v56 = vpop.f32.mrf.mxu0  ;;  %3640 = vmatprep.subr.bf16.mxu0 %v6923_v43  ;;  %v338_v41 = vld [vmem:[#allocation3 + $0x470] sm:$0xff]  ;;  %v7018_v43 = vcombine.low %v342_v28, %v346_v30 }
 0x171   :  { %3680 = vmatpush1.bf16.msra.mxu1 %v7058_v42  ;;  %v8677_v61 = vadd.f32 %v3385_v53, %v3345_v52  ;;  %v3347_v62 = vadd.f32 %v3346_v56, %v717_v0  ;;  %3711 = vmatprep.mubr.bf16.mxu1 %v8615_v17  ;;  %v6890_v42 = vcombine.low %v214_v25, %v218_v27  ;;  %v326_v49 = vld [vmem:[#allocation3 + $0x410] sm:$0xff] }
 0x172   :  { %v3387_v63 = vpop.f32.mrf.mxu1  ;;  %3681 = vmatprep.subr.bf16.mxu1 %v7051_v44  ;;  %v3348_v4 = vpop.f32.mrf.mxu0  ;;  %v6883_v0 = vcombine.high %v206_v38, %v210_v39  ;;  %v7011_v44 = vcombine.high %v334_v40, %v338_v41  ;;  %v7010_v52 = vcombine.low %v334_v40, %v338_v41  ;;  %v6875_v53 = vcombine.high %v198_v6, %v202_v48  ;;  %v318_v56 = vld [vmem:[#allocation3 + $0x3d0] sm:$0xff] }
 0x173   :  { %v8681_v5 = vadd.f32 %v3387_v63, %v3347_v62  ;;  %3641 = vmatpush1.bf16.msra.mxu0 %v6922_v55  ;;  %v7003_v55 = vcombine.high %v326_v49, %v330_v50  ;;  %v450_v62 = vld [vmem:[#allocation3 + $0x7f0] sm:$0xff]  ;;  %v6874_v63 = vcombine.low %v198_v6, %v202_v48 }
 0x174   :  { %v3389_v7 = vpop.f32.mrf.mxu1  ;;  %v3349_v9 = vpop.f32.mrf.mxu0  ;;  %3642 = vmatprep.subr.bf16.mxu0 %v6915_v60  ;;  %v446_v60 = vld [vmem:[#allocation3 + $0x7d0] sm:$0xff] }
 0x175   :  { %3682 = vmatpush1.bf16.msra.mxu1 %v7050_v57  ;;  %v322_v57 = vld [vmem:[#allocation3 + $0x3f0] sm:$0xff]  ;;  %v7123_v3 = vcombine.high %v446_v60, %v450_v62  ;;  %v7122_v9 = vcombine.low %v446_v60, %v450_v62 }
 0x176   :  { %v3390_v13 = vpop.f32.mrf.mxu1  ;;  %3683 = vmatprep.subr.bf16.mxu1 %v7043_v1  ;;  %v7002_v1 = vcombine.low %v326_v49, %v330_v50  ;;  %v6995_v2 = vcombine.high %v318_v56, %v322_v57  ;;  %v310_v4 = vld [vmem:[#allocation3 + $0x390] sm:$0xff] }
 0x177   :  { %3643 = vmatpush1.bf16.msra.mxu0 %v6914_v8  ;;  %v442_v7 = vld [vmem:[#allocation3 + $0x7b0] sm:$0xff]  ;;  %v6994_v8 = vcombine.low %v318_v56, %v322_v57  ;;  %v6986_v18 = vcombine.low %v310_v4, %v314_v23 }
 0x178   :  { %3644 = vmatprep.subr.bf16.mxu0 %v6907_v11  ;;  %v7115_v11 = vcombine.high %v438_v26, %v442_v7  ;;  %v302_v13 = vld [vmem:[#allocation3 + $0x350] sm:$0xff]  ;;  %v7114_v19 = vcombine.low %v438_v26, %v442_v7 }
 0x179   :  { %3684 = vmatpush1.bf16.msra.mxu1 %v7042_v10  ;;  %v6987_v10 = vcombine.high %v310_v4, %v314_v23  ;;  %v434_v16 = vld [vmem:[#allocation3 + $0x770] sm:$0xff] }
 0x17a   :  { %3685 = vmatprep.subr.bf16.mxu1 %v7035_v14  ;;  %v306_v14 = vld [vmem:[#allocation3 + $0x370] sm:$0xff]  ;;  %v7106_v30 = vcombine.low %v430_v15, %v434_v16 }
 0x17b   :  { %3645 = vmatpush1.bf16.msra.mxu0 %v6906_v20  ;;  %v6979_v20 = vcombine.high %v302_v13, %v306_v14  ;;  %v422_v25 = vld [vmem:[#allocation3 + $0x710] sm:$0xff]  ;;  %v6978_v28 = vcombine.low %v302_v13, %v306_v14 }
 0x17c   :  { %3646 = vmatprep.subr.bf16.mxu0 %v6899_v22  ;;  %v294_v22 = vld [vmem:[#allocation3 + $0x310] sm:$0xff] }
 0x17d   :  { %3686 = vmatpush1.bf16.msra.mxu1 %v7034_v21  ;;  %v7107_v21 = vcombine.high %v430_v15, %v434_v16  ;;  %v426_v27 = vld [vmem:[#allocation3 + $0x730] sm:$0xff] }
 0x17e   :  { %3687 = vmatprep.subr.bf16.mxu1 %v7027_v24  ;;  %v298_v24 = vld [vmem:[#allocation3 + $0x330] sm:$0xff]  ;;  %v7098_v41 = vcombine.low %v422_v25, %v426_v27 }
 0x17f   :  { %3647 = vmatpush1.bf16.msra.mxu0 %v6898_v32  ;;  %v6971_v32 = vcombine.high %v294_v22, %v298_v24  ;;  %v414_v38 = vld [vmem:[#allocation3 + $0x6d0] sm:$0xff]  ;;  %v6970_v40 = vcombine.low %v294_v22, %v298_v24 }
 0x180   :  { %3648 = vmatprep.subr.bf16.mxu0 %v6891_v54  ;;  %v286_v54 = vld [vmem:[#allocation3 + $0x2d0] sm:$0xff] }
 0x181   :  { %3688 = vmatpush1.bf16.msra.mxu1 %v7026_v33  ;;  %v7099_v33 = vcombine.high %v422_v25, %v426_v27  ;;  %v418_v39 = vld [vmem:[#allocation3 + $0x6f0] sm:$0xff] }
 0x182   :  { %3689 = vmatprep.subr.bf16.mxu1 %v7019_v36  ;;  %v290_v36 = vld [vmem:[#allocation3 + $0x2f0] sm:$0xff]  ;;  %v7090_v50 = vcombine.low %v414_v38, %v418_v39 }
 0x183   :  { %3649 = vmatpush1.bf16.msra.mxu0 %v6890_v42  ;;  %v6963_v42 = vcombine.high %v286_v54, %v290_v36  ;;  %v406_v6 = vld [vmem:[#allocation3 + $0x690] sm:$0xff]  ;;  %v6962_v49 = vcombine.low %v286_v54, %v290_v36 }
 0x184   :  { %3650 = vmatprep.subr.bf16.mxu0 %v6883_v0  ;;  %v278_v0 = vld [vmem:[#allocation3 + $0x290] sm:$0xff] }
 0x185   :  { %3690 = vmatpush1.bf16.msra.mxu1 %v7018_v43  ;;  %v7091_v43 = vcombine.high %v414_v38, %v418_v39  ;;  %v410_v48 = vld [vmem:[#allocation3 + $0x6b0] sm:$0xff] }
 0x186   :  { %3691 = vmatprep.subr.bf16.mxu1 %v7011_v44  ;;  %v282_v44 = vld [vmem:[#allocation3 + $0x2b0] sm:$0xff]  ;;  %v7082_v62 = vcombine.low %v406_v6, %v410_v48 }
 0x187   :  { %3651 = vmatpush1.bf16.msra.mxu0 %v6882_v51  ;;  %v6955_v51 = vcombine.high %v278_v0, %v282_v44  ;;  %v398_v56 = vld [vmem:[#allocation3 + $0x650] sm:$0xff]  ;;  %v6954_v60 = vcombine.low %v278_v0, %v282_v44 }
 0x188   :  { %3652 = vmatprep.subr.bf16.mxu0 %v6875_v53  ;;  %v270_v53 = vld [vmem:[#allocation3 + $0x250] sm:$0xff] }
 0x189   :  { %3692 = vmatpush1.bf16.msra.mxu1 %v7010_v52  ;;  %v7083_v52 = vcombine.high %v406_v6, %v410_v48  ;;  %v402_v57 = vld [vmem:[#allocation3 + $0x670] sm:$0xff] }
 0x18a   :  { %3693 = vmatprep.subr.bf16.mxu1 %v7003_v55  ;;  %v274_v55 = vld [vmem:[#allocation3 + $0x270] sm:$0xff]  ;;  %v7074_v7 = vcombine.low %v398_v56, %v402_v57 }
 0x18b   :  { %3653 = vmatpush1.bf16.msra.mxu0 %v6874_v63  ;;  %v6947_v63 = vcombine.high %v270_v53, %v274_v55  ;;  %v390_v4 = vld [vmem:[#allocation3 + $0x610] sm:$0xff]  ;;  %v6946_v26 = vcombine.low %v270_v53, %v274_v55 }
 0x18c   :  { %3654 = vmatprep.subr.bf16.mxu0 %v6995_v2  ;;  %v262_v2 = vld [vmem:[#allocation3 + $0x210] sm:$0xff] }
 0x18d   :  { %3694 = vmatpush1.bf16.msra.mxu1 %v7002_v1  ;;  %v7075_v1 = vcombine.high %v398_v56, %v402_v57  ;;  %v394_v23 = vld [vmem:[#allocation3 + $0x630] sm:$0xff] }
 0x18e   :  { %3695 = vmatprep.subr.bf16.mxu1 %v7123_v3  ;;  %v266_v3 = vld [vmem:[#allocation3 + $0x230] sm:$0xff]  ;;  %v7066_v16 = vcombine.low %v390_v4, %v394_v23 }
 0x18f   :  { %3655 = vmatpush2.bf16.msra.mxu0 %v6994_v8  ;;  %v6939_v8 = vcombine.high %v262_v2, %v266_v3  ;;  %v638_v13 = vld [vmem:[#allocation3 + $0xdd0] sm:$0xff]  ;;  %v6938_v15 = vcombine.low %v262_v2, %v266_v3 }
 0x190   :  { %3656 = vmatprep.subr.bf16.mxu0 %v6987_v10  ;;  %v510_v10 = vld [vmem:[#allocation3 + $0x9d0] sm:$0xff] }
 0x191   :  { %3696 = vmatpush2.bf16.msra.mxu1 %v7122_v9  ;;  %v7067_v9 = vcombine.high %v390_v4, %v394_v23  ;;  %v642_v14 = vld [vmem:[#allocation3 + $0xdf0] sm:$0xff] }
 0x192   :  { %3697 = vmatprep.subr.bf16.mxu1 %v7115_v11  ;;  %v514_v11 = vld [vmem:[#allocation3 + $0x9f0] sm:$0xff]  ;;  %v7314_v27 = vcombine.low %v638_v13, %v642_v14 }
 0x193   :  { %3657 = vmatpush2.bf16.msra.mxu0 %v6986_v18  ;;  %v7187_v18 = vcombine.high %v510_v10, %v514_v11  ;;  %v630_v22 = vld [vmem:[#allocation3 + $0xd90] sm:$0xff]  ;;  %v7186_v25 = vcombine.low %v510_v10, %v514_v11 }
 0x194   :  { %3658 = vmatprep.subr.bf16.mxu0 %v6979_v20  ;;  %v502_v20 = vld [vmem:[#allocation3 + $0x990] sm:$0xff] }
 0x195   :  { %3698 = vmatpush2.bf16.msra.mxu1 %v7114_v19  ;;  %v7315_v19 = vcombine.high %v638_v13, %v642_v14  ;;  %v634_v24 = vld [vmem:[#allocation3 + $0xdb0] sm:$0xff] }
 0x196   :  { %3699 = vmatprep.subr.bf16.mxu1 %v7107_v21  ;;  %v506_v21 = vld [vmem:[#allocation3 + $0x9b0] sm:$0xff] }
 0x197   :  { %3659 = vmatpush2.bf16.msra.mxu0 %v6978_v28  ;;  %v7179_v28 = vcombine.high %v502_v20, %v506_v21  ;;  %v622_v36 = vld [vmem:[#allocation3 + $0xd50] sm:$0xff] }
 0x198   :  { %3660 = vmatprep.subr.bf16.mxu0 %v6971_v32  ;;  %v494_v32 = vld [vmem:[#allocation3 + $0x950] sm:$0xff] }
 0x199   :  { %3700 = vmatpush2.bf16.msra.mxu1 %v7106_v30  ;;  %v7307_v30 = vcombine.high %v630_v22, %v634_v24  ;;  %v626_v38 = vld [vmem:[#allocation3 + $0xd70] sm:$0xff] }
 0x19a   :  { %3701 = vmatprep.subr.bf16.mxu1 %v7099_v33  ;;  %v498_v33 = vld [vmem:[#allocation3 + $0x970] sm:$0xff] }
 0x19b   :  { %3661 = vmatpush2.bf16.msra.mxu0 %v6970_v40  ;;  %v7171_v0 = vcombine.high %v494_v32, %v498_v33  ;;  %v618_v53 = vld [vmem:[#allocation3 + $0xd30] sm:$0xff]  ;;  %v7170_v57 = vcombine.low %v494_v32, %v498_v33 }
 0x19c   :  { %3662 = vmatprep.subr.bf16.mxu0 %v6963_v42  ;;  %v478_v2 = vld [vmem:[#allocation3 + $0x8d0] sm:$0xff] }
 0x19d   :  { %3702 = vmatpush2.bf16.msra.mxu1 %v7098_v41  ;;  %v7178_v41 = vcombine.low %v502_v20, %v506_v21  ;;  %v482_v3 = vld [vmem:[#allocation3 + $0x8f0] sm:$0xff] }
 0x19e   :  { %3703 = vmatprep.subr.bf16.mxu1 %v7091_v43  ;;  %v7306_v43 = vcombine.low %v630_v22, %v634_v24  ;;  %v606_v4 = vld [vmem:[#allocation3 + $0xcd0] sm:$0xff] }
 0x19f   :  { %3663 = vmatpush2.bf16.msra.mxu0 %v6962_v49  ;;  %v7299_v49 = vcombine.high %v622_v36, %v626_v38  ;;  %v610_v23 = vld [vmem:[#allocation3 + $0xcf0] sm:$0xff] }
 0x1a0   :  { %3664 = vmatprep.subr.bf16.mxu0 %v6955_v51  ;;  %v490_v51 = vld [vmem:[#allocation3 + $0x930] sm:$0xff] }
 0x1a1   :  { %3704 = vmatpush2.bf16.msra.mxu1 %v7090_v50  ;;  %v486_v50 = vld [vmem:[#allocation3 + $0x910] sm:$0xff] }
 0x1a2   :  { %3705 = vmatprep.subr.bf16.mxu1 %v7083_v52  ;;  %v614_v52 = vld [vmem:[#allocation3 + $0xd10] sm:$0xff] }
 0x1a3   :  { %3665 = vmatpush2.bf16.msra.mxu0 %v6954_v60  ;;  %v470_v10 = vld [vmem:[#allocation3 + $0x890] sm:$0xff] }
 0x1a4   :  { %3666 = vmatprep.subr.bf16.mxu0 %v6947_v63  ;;  %v474_v11 = vld [vmem:[#allocation3 + $0x8b0] sm:$0xff] }
 0x1a5   :  { %3706 = vmatpush2.bf16.msra.mxu1 %v7082_v62  ;;  %v7163_v62 = vcombine.high %v486_v50, %v490_v51  ;;  %v598_v13 = vld [vmem:[#allocation3 + $0xc90] sm:$0xff] }
 0x1a6   :  { %3707 = vmatprep.subr.bf16.mxu1 %v7075_v1  ;;  %v7291_v1 = vcombine.high %v614_v52, %v618_v53  ;;  %v602_v14 = vld [vmem:[#allocation3 + $0xcb0] sm:$0xff] }
 0x1a7   :  { %3667 = vmatpush2.bf16.msra.mxu0 %v6946_v26  ;;  %v7162_v26 = vcombine.low %v486_v50, %v490_v51  ;;  %v462_v20 = vld [vmem:[#allocation3 + $0x850] sm:$0xff] }
 0x1a8   :  { %3668 = vmatprep.subr.bf16.mxu0 %v6939_v8  ;;  %v7155_v8 = vcombine.high %v478_v2, %v482_v3  ;;  %v466_v21 = vld [vmem:[#allocation3 + $0x870] sm:$0xff] }
 0x1a9   :  { %3708 = vmatpush2.bf16.msra.mxu1 %v7074_v7  ;;  %v7290_v7 = vcombine.low %v614_v52, %v618_v53  ;;  %v590_v22 = vld [vmem:[#allocation3 + $0xc50] sm:$0xff] }
 0x1aa   :  { %3709 = vmatprep.subr.bf16.mxu1 %v7067_v9  ;;  %v7283_v9 = vcombine.high %v606_v4, %v610_v23  ;;  %v594_v24 = vld [vmem:[#allocation3 + $0xc70] sm:$0xff] }
 0x1ab   :  { %3669 = vmatpush2.bf16.msra.mxu0 %v6938_v15  ;;  %v7154_v15 = vcombine.low %v478_v2, %v482_v3  ;;  %v454_v32 = vld [vmem:[#allocation3 + $0x810] sm:$0xff] }
 0x1ac   :  { %3720 = vmatprep.subr.bf16.mxu0 %v7187_v18  ;;  %v7147_v18 = vcombine.high %v470_v10, %v474_v11  ;;  %v458_v33 = vld [vmem:[#allocation3 + $0x830] sm:$0xff] }
 0x1ad   :  { %3710 = vmatpush2.bf16.msra.mxu1 %v7066_v16  ;;  %v7282_v16 = vcombine.low %v606_v4, %v610_v23  ;;  %v570_v52 = vld [vmem:[#allocation3 + $0xbb0] sm:$0xff] }
 0x1ae   :  { %3761 = vmatprep.subr.bf16.mxu1 %v7315_v19  ;;  %v3426_v54 = vpop.f32.mrf.mxu0  ;;  %3671 = vmatmul.mubr.bf16.vlgmr.msra.gmra.mxu0 %v8631_v34  ;;  %v7275_v19 = vcombine.high %v598_v13, %v602_v14  ;;  %v694_v53 = vld [vmem:[#allocation3 + $0xf90] sm:$0xff] }
 0x1af   :  { %v3427_v39 = vadd.f32 %v3426_v54, %v8677_v61  ;;  %3721 = vmatpush1.bf16.msra.mxu0 %v7186_v25  ;;  %3752 = vmatprep.mubr.bf16.mxu0 %v8639_v46  ;;  %v7146_v25 = vcombine.low %v470_v10, %v474_v11  ;;  %v582_v54 = vld [vmem:[#allocation3 + $0xc10] sm:$0xff] }
 0x1b0   :  { %v3467_v40 = vpop.f32.mrf.mxu1  ;;  %3712 = vmatmul.mubr.bf16.vlgmr.msra.gmra.mxu1 %v8637_v37  ;;  %v3428_v42 = vpop.f32.mrf.mxu0  ;;  %3722 = vmatprep.subr.bf16.mxu0 %v7179_v28  ;;  %v7139_v28 = vcombine.high %v462_v20, %v466_v21  ;;  %v686_v2 = vld [vmem:[#allocation3 + $0xf50] sm:$0xff] }
 0x1b1   :  { %3762 = vmatpush1.bf16.msra.mxu1 %v7314_v27  ;;  %v8686_v44 = vadd.f32 %v3467_v40, %v3427_v39  ;;  %v3429_v6 = vadd.f32 %v3428_v42, %v8681_v5  ;;  %3793 = vmatprep.mubr.bf16.mxu1 %v8642_v47  ;;  %v7298_v5 = vcombine.low %v622_v36, %v626_v38  ;;  %v586_v36 = vld [vmem:[#allocation3 + $0xc30] sm:$0xff] }
 0x1b2   :  { %v3469_v48 = vpop.f32.mrf.mxu1  ;;  %3763 = vmatprep.subr.bf16.mxu1 %v7307_v30  ;;  %v3430_v61 = vpop.f32.mrf.mxu0  ;;  %v7274_v27 = vcombine.low %v598_v13, %v602_v14  ;;  %v7267_v30 = vcombine.high %v590_v22, %v594_v24  ;;  %v7138_v38 = vcombine.low %v462_v20, %v466_v21  ;;  %v7266_v39 = vcombine.low %v590_v22, %v594_v24  ;;  %v574_v42 = vld [vmem:[#allocation3 + $0xbd0] sm:$0xff] }
 0x1b3   :  { %v8691_v55 = vadd.f32 %v3469_v48, %v3429_v6  ;;  %3723 = vmatpush1.bf16.msra.mxu0 %v7178_v41  ;;  %v7131_v40 = vcombine.high %v454_v32, %v458_v33  ;;  %v7259_v41 = vcombine.high %v582_v54, %v586_v36  ;;  %v706_v6 = vld [vmem:[#allocation3 + $0xff0] sm:$0xff]  ;;  %v7130_v48 = vcombine.low %v454_v32, %v458_v33 }
 0x1b4   :  { %v3471_v56 = vpop.f32.mrf.mxu1  ;;  %v3431_v60 = vpop.f32.mrf.mxu0  ;;  %3724 = vmatprep.subr.bf16.mxu0 %v7171_v0  ;;  %v702_v0 = vld [vmem:[#allocation3 + $0xfd0] sm:$0xff]  ;;  %vm3966_vm2 = vcmp.ge.f32.partialorder %v8686_v44, 0.0 }
 0x1b5   :  { %3764 = vmatpush1.bf16.msra.mxu1 %v7306_v43  ;;  %v578_v43 = vld [vmem:[#allocation3 + $0xbf0] sm:$0xff]  ;;  %v7379_v51 = vcombine.high %v702_v0, %v706_v6  ;;  %v7378_v60 = vcombine.low %v702_v0, %v706_v6  ;;  %vm3967_vm0 = vcmp.ge.f32.partialorder %v8691_v55, 0.0 }
 0x1b6   :  { %v3472_v63 = vpop.f32.mrf.mxu1  ;;  %3765 = vmatprep.subr.bf16.mxu1 %v7299_v49  ;;  %v7258_v49 = vcombine.low %v582_v54, %v586_v36  ;;  %v7251_v50 = vcombine.high %v574_v42, %v578_v43  ;;  %v566_v61 = vld [vmem:[#allocation3 + $0xb90] sm:$0xff] }
 0x1b7   :  { %3725 = vmatpush1.bf16.msra.mxu0 %v7170_v57  ;;  %v698_v56 = vld [vmem:[#allocation3 + $0xfb0] sm:$0xff]  ;;  %v7250_v57 = vcombine.low %v574_v42, %v578_v43  ;;  %v7242_v4 = vcombine.low %v566_v61, %v570_v52 }
 0x1b8   :  { %3726 = vmatprep.subr.bf16.mxu0 %v7163_v62  ;;  %v7371_v62 = vcombine.high %v694_v53, %v698_v56  ;;  %v558_v63 = vld [vmem:[#allocation3 + $0xb50] sm:$0xff]  ;;  %v7370_v23 = vcombine.low %v694_v53, %v698_v56 }
 0x1b9   :  { %3766 = vmatpush1.bf16.msra.mxu1 %v7298_v5  ;;  %v7243_v5 = vcombine.high %v566_v61, %v570_v52  ;;  %v690_v3 = vld [vmem:[#allocation3 + $0xf70] sm:$0xff] }
 0x1ba   :  { %3767 = vmatprep.subr.bf16.mxu1 %v7291_v1  ;;  %v562_v1 = vld [vmem:[#allocation3 + $0xb70] sm:$0xff]  ;;  %v7362_v14 = vcombine.low %v686_v2, %v690_v3 }
 0x1bb   :  { %3727 = vmatpush1.bf16.msra.mxu0 %v7162_v26  ;;  %v7235_v26 = vcombine.high %v558_v63, %v562_v1  ;;  %v678_v10 = vld [vmem:[#allocation3 + $0xf10] sm:$0xff]  ;;  %v7234_v13 = vcombine.low %v558_v63, %v562_v1  ;;  %v383_v63 = vld [vmem:[#allocation3 + $0x5d8] sm:$0xff] }
 0x1bc   :  { %3728 = vmatprep.subr.bf16.mxu0 %v7155_v8  ;;  %v550_v8 = vld [vmem:[#allocation3 + $0xb10] sm:$0xff]  ;;  %v387_v1 = vld [vmem:[#allocation3 + $0x5f8] sm:$0xff] }
 0x1bd   :  { %3768 = vmatpush1.bf16.msra.mxu1 %v7290_v7  ;;  %v7363_v7 = vcombine.high %v686_v2, %v690_v3  ;;  %v682_v11 = vld [vmem:[#allocation3 + $0xf30] sm:$0xff]  ;;  %v8694_v3 = vsub.s32 2, %v8594_v45 }
 0x1be   :  { %3769 = vmatprep.subr.bf16.mxu1 %v7283_v9  ;;  %v554_v9 = vld [vmem:[#allocation3 + $0xb30] sm:$0xff]  ;;  %v7354_v24 = vcombine.low %v678_v10, %v682_v11 }
 0x1bf   :  { %3729 = vmatpush1.bf16.msra.mxu0 %v7154_v15  ;;  %v7227_v15 = vcombine.high %v550_v8, %v554_v9  ;;  %v670_v20 = vld [vmem:[#allocation3 + $0xed0] sm:$0xff]  ;;  %v7226_v22 = vcombine.low %v550_v8, %v554_v9  ;;  %v247_v8 = vld [vmem:[#allocation3 + $0x198] sm:$0xff] }
 0x1c0   :  { %3730 = vmatprep.subr.bf16.mxu0 %v7147_v18  ;;  %v542_v18 = vld [vmem:[#allocation3 + $0xad0] sm:$0xff]  ;;  %v251_v9 = vld [vmem:[#allocation3 + $0x1b8] sm:$0xff] }
 0x1c1   :  { %3770 = vmatpush1.bf16.msra.mxu1 %v7282_v16  ;;  %v7355_v16 = vcombine.high %v678_v10, %v682_v11  ;;  %v674_v21 = vld [vmem:[#allocation3 + $0xef0] sm:$0xff]  ;;  %v375_v10 = vld [vmem:[#allocation3 + $0x598] sm:$0xff] }
 0x1c2   :  { %3771 = vmatprep.subr.bf16.mxu1 %v7275_v19  ;;  %v546_v19 = vld [vmem:[#allocation3 + $0xaf0] sm:$0xff]  ;;  %v7346_v36 = vcombine.low %v670_v20, %v674_v21  ;;  %v379_v11 = vld [vmem:[#allocation3 + $0x5b8] sm:$0xff] }
 0x1c3   :  { %3731 = vmatpush1.bf16.msra.mxu0 %v7146_v25  ;;  %v7219_v25 = vcombine.high %v542_v18, %v546_v19  ;;  %v662_v32 = vld [vmem:[#allocation3 + $0xe90] sm:$0xff]  ;;  %v7218_v54 = vcombine.low %v542_v18, %v546_v19  ;;  %v7053_v19 = vcombine.high %v375_v10, %v379_v11 }
 0x1c4   :  { %3732 = vmatprep.subr.bf16.mxu0 %v7139_v28  ;;  %v534_v28 = vld [vmem:[#allocation3 + $0xa90] sm:$0xff] }
 0x1c5   :  { %3772 = vmatpush1.bf16.msra.mxu1 %v7274_v27  ;;  %v7347_v27 = vcombine.high %v670_v20, %v674_v21  ;;  %v666_v33 = vld [vmem:[#allocation3 + $0xeb0] sm:$0xff]  ;;  %v239_v20 = vld [vmem:[#allocation3 + $0x158] sm:$0xff] }
 0x1c6   :  { %3773 = vmatprep.subr.bf16.mxu1 %v7267_v30  ;;  %v538_v30 = vld [vmem:[#allocation3 + $0xab0] sm:$0xff]  ;;  %v7338_v6 = vcombine.low %v662_v32, %v666_v33  ;;  %v243_v21 = vld [vmem:[#allocation3 + $0x178] sm:$0xff] }
 0x1c7   :  { %3733 = vmatpush1.bf16.msra.mxu0 %v7138_v38  ;;  %v7211_v38 = vcombine.high %v534_v28, %v538_v30  ;;  %v654_v42 = vld [vmem:[#allocation3 + $0xe50] sm:$0xff]  ;;  %v7210_v0 = vcombine.low %v534_v28, %v538_v30  ;;  %v6924_v30 = vcombine.low %v247_v8, %v251_v9 }
 0x1c8   :  { %3734 = vmatprep.subr.bf16.mxu0 %v7131_v40  ;;  %v526_v40 = vld [vmem:[#allocation3 + $0xa50] sm:$0xff] }
 0x1c9   :  { %3774 = vmatpush1.bf16.msra.mxu1 %v7266_v39  ;;  %v7339_v39 = vcombine.high %v662_v32, %v666_v33  ;;  %v658_v43 = vld [vmem:[#allocation3 + $0xe70] sm:$0xff]  ;;  %v7052_v33 = vcombine.low %v375_v10, %v379_v11  ;;  %v207_v11 = vld [vmem:[#allocation3 + $0x58] sm:$0xff] }
 0x1ca   :  { %3775 = vmatprep.subr.bf16.mxu1 %v7259_v41  ;;  %v530_v41 = vld [vmem:[#allocation3 + $0xa70] sm:$0xff]  ;;  %v7330_v56 = vcombine.low %v654_v42, %v658_v43 }
 0x1cb   :  { %3735 = vmatpush1.bf16.msra.mxu0 %v7130_v48  ;;  %v7203_v48 = vcombine.high %v526_v40, %v530_v41  ;;  %v646_v61 = vld [vmem:[#allocation3 + $0xe10] sm:$0xff]  ;;  %v7202_v53 = vcombine.low %v526_v40, %v530_v41  ;;  %v231_v40 = vld [vmem:[#allocation3 + $0x118] sm:$0xff] }
 0x1cc   :  { %3736 = vmatprep.subr.bf16.mxu0 %v7251_v50  ;;  %v518_v50 = vld [vmem:[#allocation3 + $0xa10] sm:$0xff]  ;;  %v235_v41 = vld [vmem:[#allocation3 + $0x138] sm:$0xff] }
 0x1cd   :  { %3776 = vmatpush1.bf16.msra.mxu1 %v7258_v49  ;;  %v7331_v49 = vcombine.high %v654_v42, %v658_v43  ;;  %v650_v52 = vld [vmem:[#allocation3 + $0xe30] sm:$0xff]  ;;  %v359_v43 = vld [vmem:[#allocation3 + $0x518] sm:$0xff] }
 0x1ce   :  { %3777 = vmatprep.subr.bf16.mxu1 %v7379_v51  ;;  %v522_v51 = vld [vmem:[#allocation3 + $0xa30] sm:$0xff] }
 0x1cf   :  { %3737 = vmatpush2.bf16.msra.mxu0 %v7250_v57  ;;  %v7195_v57 = vcombine.high %v518_v50, %v522_v51  ;;  %v7194_v2 = vcombine.low %v518_v50, %v522_v51 }
 0x1d0   :  { %3738 = vmatprep.subr.bf16.mxu0 %v7243_v5  ;;  %v255_v5 = vld [vmem:[#allocation3 + $0x1d8] sm:$0xff] }
 0x1d1   :  { %3778 = vmatpush2.bf16.msra.mxu1 %v7378_v60  ;;  %v7323_v60 = vcombine.high %v646_v61, %v650_v52 }
 0x1d2   :  { %3779 = vmatprep.subr.bf16.mxu1 %v7371_v62  ;;  %v259_v62 = vld [vmem:[#allocation3 + $0x1f8] sm:$0xff] }
 0x1d3   :  { %3739 = vmatpush2.bf16.msra.mxu0 %v7242_v4  ;;  %v7322_v4 = vcombine.low %v646_v61, %v650_v52  ;;  %v6909_v61 = vcombine.high %v231_v40, %v235_v41 }
 0x1d4   :  { %3740 = vmatprep.subr.bf16.mxu0 %v7235_v26  ;;  %v7061_v26 = vcombine.high %v383_v63, %v387_v1 }
 0x1d5   :  { %3780 = vmatpush2.bf16.msra.mxu1 %v7370_v23  ;;  %v6933_v23 = vcombine.high %v255_v5, %v259_v62 }
 0x1d6   :  { %3781 = vmatprep.subr.bf16.mxu1 %v7363_v7  ;;  %v8697_v7 = vsub.s32 3, %v8594_v45 }
 0x1d7   :  { %3741 = vmatpush2.bf16.msra.mxu0 %v7234_v13  ;;  %v721_v13 = vrot.slane %v8666_v31, %v8694_v3 }
 0x1d8   :  { %3742 = vmatprep.subr.bf16.mxu0 %v7227_v15  ;;  %v7060_v15 = vcombine.low %v383_v63, %v387_v1  ;;  %v725_v18 = vrot.slane %v8666_v31, %v8697_v7  ;;  %v215_v1 = vld [vmem:[#allocation3 + $0x98] sm:$0xff] }
 0x1d9   :  { %3782 = vmatpush2.bf16.msra.mxu1 %v7362_v14  ;;  %v6932_v14 = vcombine.low %v255_v5, %v259_v62  ;;  %v6908_v5 = vcombine.low %v231_v40, %v235_v41 }
 0x1da   :  { %3783 = vmatprep.subr.bf16.mxu1 %v7355_v16  ;;  %v6925_v16 = vcombine.high %v247_v8, %v251_v9 }
 0x1db   :  { %3743 = vmatpush2.bf16.msra.mxu0 %v7226_v22 }
 0x1dc   :  { %3744 = vmatprep.subr.bf16.mxu0 %v7219_v25  ;;  %v371_v25 = vld [vmem:[#allocation3 + $0x578] sm:$0xff] }
 0x1dd   :  { %3784 = vmatpush2.bf16.msra.mxu1 %v7354_v24  ;;  %v367_v24 = vld [vmem:[#allocation3 + $0x558] sm:$0xff] }
 0x1de   :  { %3785 = vmatprep.subr.bf16.mxu1 %v7347_v27  ;;  %v7044_v51 = vcombine.low %v367_v24, %v371_v25 }
 0x1df   :  { %3745 = vmatpush2.bf16.msra.mxu0 %v7218_v54  ;;  %v6917_v54 = vcombine.high %v239_v20, %v243_v21 }
 0x1e0   :  { %3746 = vmatprep.subr.bf16.mxu0 %v7211_v38 }
 0x1e1   :  { %3786 = vmatpush2.bf16.msra.mxu1 %v7346_v36 }
 0x1e2   :  { %3787 = vmatprep.subr.bf16.mxu1 %v7339_v39  ;;  %v7045_v39 = vcombine.high %v367_v24, %v371_v25  ;;  %v327_v24 = vld [vmem:[#allocation3 + $0x418] sm:$0xff] }
 0x1e3   :  { %3747 = vmatpush2.bf16.msra.mxu0 %v7210_v0  ;;  %v363_v0 = vld [vmem:[#allocation3 + $0x538] sm:$0xff] }
 0x1e4   :  { %3748 = vmatprep.subr.bf16.mxu0 %v7203_v48  ;;  %v331_v25 = vld [vmem:[#allocation3 + $0x438] sm:$0xff] }
 0x1e5   :  { %3788 = vmatpush2.bf16.msra.mxu1 %v7338_v6  ;;  %v7004_v40 = vcombine.low %v327_v24, %v331_v25 }
 0x1e6   :  { %3789 = vmatprep.subr.bf16.mxu1 %v7331_v49  ;;  %v6916_v49 = vcombine.low %v239_v20, %v243_v21  ;;  %v199_v21 = vld [vmem:[#allocation3 + $0x18] sm:$0xff] }
 0x1e7   :  { %3749 = vmatpush2.bf16.msra.mxu0 %v7202_v53  ;;  %v7037_v53 = vcombine.high %v359_v43, %v363_v0 }
 0x1e8   :  { %3750 = vmatprep.subr.bf16.mxu0 %v7195_v57  ;;  %v351_v57 = vld [vmem:[#allocation3 + $0x4d8] sm:$0xff] }
 0x1e9   :  { %3790 = vmatpush2.bf16.msra.mxu1 %v7330_v56  ;;  %v223_v56 = vld [vmem:[#allocation3 + $0xd8] sm:$0xff] }
 0x1ea   :  { %3791 = vmatprep.subr.bf16.mxu1 %v7323_v60  ;;  %v355_v60 = vld [vmem:[#allocation3 + $0x4f8] sm:$0xff] }
 0x1eb   :  { %3751 = vmatpush2.bf16.msra.mxu0 %v7194_v2  ;;  %v7029_v63 = vcombine.high %v351_v57, %v355_v60  ;;  %v219_v2 = vld [vmem:[#allocation3 + $0xb8] sm:$0xff]  ;;  %v7028_v8 = vcombine.low %v351_v57, %v355_v60 }
 0x1ec   :  { %3802 = vmatprep.subr.bf16.mxu0 %v6933_v23  ;;  %v347_v23 = vld [vmem:[#allocation3 + $0x4b8] sm:$0xff]  ;;  %v6893_v9 = vcombine.high %v215_v1, %v219_v2 }
 0x1ed   :  { %3792 = vmatpush2.bf16.msra.mxu1 %v7322_v4  ;;  %v343_v4 = vld [vmem:[#allocation3 + $0x498] sm:$0xff] }
 0x1ee   :  { %3843 = vmatprep.subr.bf16.mxu1 %v7061_v26  ;;  %v3508_v22 = vpop.f32.mrf.mxu0  ;;  %3753 = vmatmul.mubr.bf16.vlgmr.msra.gmra.mxu0 %v8649_v58  ;;  %v7021_v10 = vcombine.high %v343_v4, %v347_v23  ;;  %v435_v57 = vld [vmem:[#allocation3 + $0x778] sm:$0xff] }
 0x1ef   :  { %v3509_v27 = vadd.f32 %v3508_v22, %v721_v13  ;;  %3803 = vmatpush1.bf16.msra.mxu0 %v6932_v14  ;;  %3834 = vmatprep.mubr.bf16.mxu0 %v8610_v12  ;;  %v227_v12 = vld [vmem:[#allocation3 + $0xf8] sm:$0xff] }
 0x1f0   :  { %v3549_v28 = vpop.f32.mrf.mxu1  ;;  %3794 = vmatmul.mubr.bf16.vlgmr.msra.gmra.mxu1 %v8653_v59  ;;  %v3510_v32 = vpop.f32.mrf.mxu0  ;;  %3804 = vmatprep.subr.bf16.mxu0 %v6925_v16  ;;  %v6901_v62 = vcombine.high %v223_v56, %v227_v12  ;;  %v6900_v26 = vcombine.low %v223_v56, %v227_v12  ;;  %v211_v13 = vld [vmem:[#allocation3 + $0x78] sm:$0xff]  ;;  %v6892_v16 = vcombine.low %v215_v1, %v219_v2 }
 0x1f1   :  { %3844 = vmatpush1.bf16.msra.mxu1 %v7060_v15  ;;  %v8705_v31 = vadd.f32 %v3549_v28, %v3509_v27  ;;  %v3511_v36 = vadd.f32 %v3510_v32, %v725_v18  ;;  %3875 = vmatprep.mubr.bf16.mxu1 %v8615_v17  ;;  %v7036_v17 = vcombine.low %v359_v43, %v363_v0  ;;  %v335_v14 = vld [vmem:[#allocation3 + $0x458] sm:$0xff] }
 0x1f2   :  { %v3551_v38 = vpop.f32.mrf.mxu1  ;;  %3845 = vmatprep.subr.bf16.mxu1 %v7053_v19  ;;  %v3512_v42 = vpop.f32.mrf.mxu0  ;;  %v339_v15 = vld [vmem:[#allocation3 + $0x478] sm:$0xff]  ;;  %v7020_v18 = vcombine.low %v343_v4, %v347_v23  ;;  %v6885_v19 = vcombine.high %v207_v11, %v211_v13  ;;  %v6884_v27 = vcombine.low %v207_v11, %v211_v13  ;;  %v7005_v32 = vcombine.high %v327_v24, %v331_v25 }
 0x1f3   :  { %v8709_v6 = vadd.f32 %v3551_v38, %v3511_v36  ;;  %3805 = vmatpush1.bf16.msra.mxu0 %v6924_v30  ;;  %v7013_v20 = vcombine.high %v335_v14, %v339_v15  ;;  %v203_v22 = vld [vmem:[#allocation3 + $0x38] sm:$0xff]  ;;  %v7012_v28 = vcombine.low %v335_v14, %v339_v15 }
 0x1f4   :  { %v3553_v48 = vpop.f32.mrf.mxu1  ;;  %v3513_v50 = vpop.f32.mrf.mxu0  ;;  %3806 = vmatprep.subr.bf16.mxu0 %v6917_v54  ;;  %v6877_v30 = vcombine.high %v199_v21, %v203_v22  ;;  %v323_v54 = vld [vmem:[#allocation3 + $0x3f8] sm:$0xff] }
 0x1f5   :  { %3846 = vmatpush1.bf16.msra.mxu1 %v7052_v33  ;;  %v319_v33 = vld [vmem:[#allocation3 + $0x3d8] sm:$0xff] }
 0x1f6   :  { %v3554_v52 = vpop.f32.mrf.mxu1  ;;  %3847 = vmatprep.subr.bf16.mxu1 %v7045_v39  ;;  %v447_v36 = vld [vmem:[#allocation3 + $0x7d8] sm:$0xff]  ;;  %v6876_v39 = vcombine.low %v199_v21, %v203_v22  ;;  %v6997_v41 = vcombine.high %v319_v33, %v323_v54  ;;  %v6996_v50 = vcombine.low %v319_v33, %v323_v54 }
 0x1f7   :  { %3807 = vmatpush1.bf16.msra.mxu0 %v6916_v49  ;;  %v451_v38 = vld [vmem:[#allocation3 + $0x7f8] sm:$0xff] }
 0x1f8   :  { %3808 = vmatprep.subr.bf16.mxu0 %v6909_v61  ;;  %v7125_v42 = vcombine.high %v447_v36, %v451_v38  ;;  %v311_v43 = vld [vmem:[#allocation3 + $0x398] sm:$0xff] }
 0x1f9   :  { %3848 = vmatpush1.bf16.msra.mxu1 %v7044_v51  ;;  %v315_v0 = vld [vmem:[#allocation3 + $0x3b8] sm:$0xff]  ;;  %v7124_v51 = vcombine.low %v447_v36, %v451_v38 }
 0x1fa   :  { %3849 = vmatprep.subr.bf16.mxu1 %v7037_v53  ;;  %v439_v48 = vld [vmem:[#allocation3 + $0x798] sm:$0xff]  ;;  %v6989_v61 = vcombine.high %v311_v43, %v315_v0  ;;  %v6988_v60 = vcombine.low %v311_v43, %v315_v0 }
 0x1fb   :  { %3809 = vmatpush1.bf16.msra.mxu0 %v6908_v5  ;;  %v443_v49 = vld [vmem:[#allocation3 + $0x7b8] sm:$0xff] }
 0x1fc   :  { %3810 = vmatprep.subr.bf16.mxu0 %v6901_v62  ;;  %v7117_v52 = vcombine.high %v439_v48, %v443_v49  ;;  %v303_v53 = vld [vmem:[#allocation3 + $0x358] sm:$0xff]  ;;  %v7116_v5 = vcombine.low %v439_v48, %v443_v49 }
 0x1fd   :  { %3850 = vmatpush1.bf16.msra.mxu1 %v7036_v17  ;;  %v307_v56 = vld [vmem:[#allocation3 + $0x378] sm:$0xff] }
 0x1fe   :  { %3851 = vmatprep.subr.bf16.mxu1 %v7029_v63  ;;  %v431_v12 = vld [vmem:[#allocation3 + $0x758] sm:$0xff]  ;;  %v6981_v17 = vcombine.high %v303_v53, %v307_v56  ;;  %v6980_v23 = vcombine.low %v303_v53, %v307_v56 }
 0x1ff   :  { %3811 = vmatpush1.bf16.msra.mxu0 %v6900_v26  ;;  %v7109_v62 = vcombine.high %v431_v12, %v435_v57  ;;  %v295_v63 = vld [vmem:[#allocation3 + $0x318] sm:$0xff]  ;;  %v7108_v26 = vcombine.low %v431_v12, %v435_v57 }
 0x200   :  { %3812 = vmatprep.subr.bf16.mxu0 %v6893_v9  ;;  %v299_v1 = vld [vmem:[#allocation3 + $0x338] sm:$0xff] }
 0x201   :  { %3852 = vmatpush1.bf16.msra.mxu1 %v7028_v8  ;;  %v423_v2 = vld [vmem:[#allocation3 + $0x718] sm:$0xff]  ;;  %v6973_v8 = vcombine.high %v295_v63, %v299_v1  ;;  %v6972_v15 = vcombine.low %v295_v63, %v299_v1 }
 0x202   :  { %3853 = vmatprep.subr.bf16.mxu1 %v7021_v10  ;;  %v427_v4 = vld [vmem:[#allocation3 + $0x738] sm:$0xff] }
 0x203   :  { %3813 = vmatpush1.bf16.msra.mxu0 %v6892_v16  ;;  %v7101_v9 = vcombine.high %v423_v2, %v427_v4  ;;  %v287_v10 = vld [vmem:[#allocation3 + $0x2d8] sm:$0xff]  ;;  %v7100_v16 = vcombine.low %v423_v2, %v427_v4 }
 0x204   :  { %3814 = vmatprep.subr.bf16.mxu0 %v6885_v19  ;;  %v291_v11 = vld [vmem:[#allocation3 + $0x2f8] sm:$0xff] }
 0x205   :  { %3854 = vmatpush1.bf16.msra.mxu1 %v7020_v18  ;;  %v415_v13 = vld [vmem:[#allocation3 + $0x6d8] sm:$0xff]  ;;  %v6965_v18 = vcombine.high %v287_v10, %v291_v11  ;;  %v6964_v25 = vcombine.low %v287_v10, %v291_v11 }
 0x206   :  { %3855 = vmatprep.subr.bf16.mxu1 %v7013_v20  ;;  %v419_v14 = vld [vmem:[#allocation3 + $0x6f8] sm:$0xff] }
 0x207   :  { %3815 = vmatpush1.bf16.msra.mxu0 %v6884_v27  ;;  %v7093_v19 = vcombine.high %v415_v13, %v419_v14  ;;  %v279_v20 = vld [vmem:[#allocation3 + $0x298] sm:$0xff]  ;;  %v7092_v27 = vcombine.low %v415_v13, %v419_v14 }
 0x208   :  { %3816 = vmatprep.subr.bf16.mxu0 %v6877_v30  ;;  %v283_v21 = vld [vmem:[#allocation3 + $0x2b8] sm:$0xff] }
 0x209   :  { %3856 = vmatpush1.bf16.msra.mxu1 %v7012_v28  ;;  %v407_v22 = vld [vmem:[#allocation3 + $0x698] sm:$0xff]  ;;  %v6957_v28 = vcombine.high %v279_v20, %v283_v21  ;;  %v6956_v38 = vcombine.low %v279_v20, %v283_v21 }
 0x20a   :  { %3857 = vmatprep.subr.bf16.mxu1 %v7005_v32  ;;  %v411_v24 = vld [vmem:[#allocation3 + $0x6b8] sm:$0xff] }
 0x20b   :  { %3817 = vmatpush1.bf16.msra.mxu0 %v6876_v39  ;;  %v7085_v30 = vcombine.high %v407_v22, %v411_v24  ;;  %v271_v32 = vld [vmem:[#allocation3 + $0x258] sm:$0xff]  ;;  %v7084_v39 = vcombine.low %v407_v22, %v411_v24 }
 0x20c   :  { %3818 = vmatprep.subr.bf16.mxu0 %v6997_v41  ;;  %v275_v33 = vld [vmem:[#allocation3 + $0x278] sm:$0xff] }
 0x20d   :  { %3858 = vmatpush1.bf16.msra.mxu1 %v7004_v40  ;;  %v399_v54 = vld [vmem:[#allocation3 + $0x658] sm:$0xff]  ;;  %v6949_v40 = vcombine.high %v271_v32, %v275_v33  ;;  %v6948_v49 = vcombine.low %v271_v32, %v275_v33 }
 0x20e   :  { %3859 = vmatprep.subr.bf16.mxu1 %v7125_v42  ;;  %v403_v36 = vld [vmem:[#allocation3 + $0x678] sm:$0xff] }
 0x20f   :  { %3819 = vmatpush2.bf16.msra.mxu0 %v6996_v50  ;;  %v7077_v41 = vcombine.high %v399_v54, %v403_v36  ;;  %v263_v42 = vld [vmem:[#allocation3 + $0x218] sm:$0xff]  ;;  %v7076_v50 = vcombine.low %v399_v54, %v403_v36 }
 0x210   :  { %3820 = vmatprep.subr.bf16.mxu0 %v6989_v61  ;;  %v267_v43 = vld [vmem:[#allocation3 + $0x238] sm:$0xff] }
 0x211   :  { %3860 = vmatpush2.bf16.msra.mxu1 %v7124_v51  ;;  %v391_v0 = vld [vmem:[#allocation3 + $0x618] sm:$0xff]  ;;  %v6941_v51 = vcombine.high %v263_v42, %v267_v43  ;;  %v6940_v57 = vcombine.low %v263_v42, %v267_v43 }
 0x212   :  { %3861 = vmatprep.subr.bf16.mxu1 %v7117_v52  ;;  %v395_v48 = vld [vmem:[#allocation3 + $0x638] sm:$0xff] }
 0x213   :  { %3821 = vmatpush2.bf16.msra.mxu0 %v6988_v60  ;;  %v7069_v61 = vcombine.high %v391_v0, %v395_v48  ;;  %v511_v52 = vld [vmem:[#allocation3 + $0x9d8] sm:$0xff]  ;;  %v7068_v60 = vcombine.low %v391_v0, %v395_v48 }
 0x214   :  { %3822 = vmatprep.subr.bf16.mxu0 %v6981_v17  ;;  %v515_v53 = vld [vmem:[#allocation3 + $0x9f8] sm:$0xff] }
 0x215   :  { %3862 = vmatpush2.bf16.msra.mxu1 %v7116_v5  ;;  %v639_v56 = vld [vmem:[#allocation3 + $0xdd8] sm:$0xff]  ;;  %v7189_v5 = vcombine.high %v511_v52, %v515_v53  ;;  %v7188_v4 = vcombine.low %v511_v52, %v515_v53 }
 0x216   :  { %3863 = vmatprep.subr.bf16.mxu1 %v7109_v62  ;;  %v643_v12 = vld [vmem:[#allocation3 + $0xdf8] sm:$0xff] }
 0x217   :  { %3823 = vmatpush2.bf16.msra.mxu0 %v6980_v23  ;;  %v7317_v17 = vcombine.high %v639_v56, %v643_v12  ;;  %v503_v62 = vld [vmem:[#allocation3 + $0x998] sm:$0xff]  ;;  %v7316_v23 = vcombine.low %v639_v56, %v643_v12 }
 0x218   :  { %3824 = vmatprep.subr.bf16.mxu0 %v6973_v8  ;;  %v507_v63 = vld [vmem:[#allocation3 + $0x9b8] sm:$0xff] }
 0x219   :  { %3864 = vmatpush2.bf16.msra.mxu1 %v7108_v26  ;;  %v631_v1 = vld [vmem:[#allocation3 + $0xd98] sm:$0xff]  ;;  %v7181_v26 = vcombine.high %v503_v62, %v507_v63 }
 0x21a   :  { %3865 = vmatprep.subr.bf16.mxu1 %v7101_v9  ;;  %v635_v2 = vld [vmem:[#allocation3 + $0xdb8] sm:$0xff] }
 0x21b   :  { %3825 = vmatpush2.bf16.msra.mxu0 %v6972_v15  ;;  %v7309_v8 = vcombine.high %v631_v1, %v635_v2  ;;  %v495_v9 = vld [vmem:[#allocation3 + $0x958] sm:$0xff]  ;;  %v7308_v20 = vcombine.low %v631_v1, %v635_v2 }
 0x21c   :  { %3826 = vmatprep.subr.bf16.mxu0 %v6965_v18  ;;  %v499_v10 = vld [vmem:[#allocation3 + $0x978] sm:$0xff]  ;;  %v7180_v18 = vcombine.low %v503_v62, %v507_v63 }
 0x21d   :  { %3866 = vmatpush2.bf16.msra.mxu1 %v7100_v16  ;;  %v623_v13 = vld [vmem:[#allocation3 + $0xd58] sm:$0xff]  ;;  %v7173_v21 = vcombine.high %v495_v9, %v499_v10  ;;  %v7172_v32 = vcombine.low %v495_v9, %v499_v10 }
 0x21e   :  { %3867 = vmatprep.subr.bf16.mxu1 %v7093_v19  ;;  %v627_v14 = vld [vmem:[#allocation3 + $0xd78] sm:$0xff] }
 0x21f   :  { %3827 = vmatpush2.bf16.msra.mxu0 %v6964_v25  ;;  %v487_v25 = vld [vmem:[#allocation3 + $0x918] sm:$0xff]  ;;  %v7300_v54 = vcombine.low %v623_v13, %v627_v14 }
 0x220   :  { %3828 = vmatprep.subr.bf16.mxu0 %v6957_v28  ;;  %v619_v28 = vld [vmem:[#allocation3 + $0xd38] sm:$0xff] }
 0x221   :  { %3868 = vmatpush2.bf16.msra.mxu1 %v7092_v27  ;;  %v491_v27 = vld [vmem:[#allocation3 + $0x938] sm:$0xff] }
 0x222   :  { %3869 = vmatprep.subr.bf16.mxu1 %v7085_v30  ;;  %v7165_v36 = vcombine.high %v487_v25, %v491_v27  ;;  %v607_v42 = vld [vmem:[#allocation3 + $0xcd8] sm:$0xff]  ;;  %v7164_v43 = vcombine.low %v487_v25, %v491_v27 }
 0x223   :  { %3829 = vmatpush2.bf16.msra.mxu0 %v6956_v38  ;;  %v567_v27 = vld [vmem:[#allocation3 + $0xb98] sm:$0xff] }
 0x224   :  { %3830 = vmatprep.subr.bf16.mxu0 %v6949_v40  ;;  %v479_v40 = vld [vmem:[#allocation3 + $0x8d8] sm:$0xff] }
 0x225   :  { %3870 = vmatpush2.bf16.msra.mxu1 %v7084_v39 }
 0x226   :  { %3871 = vmatprep.subr.bf16.mxu1 %v7077_v41  ;;  %v483_v41 = vld [vmem:[#allocation3 + $0x8f8] sm:$0xff] }
 0x227   :  { %3831 = vmatpush2.bf16.msra.mxu0 %v6948_v49  ;;  %v7157_v0 = vcombine.high %v479_v40, %v483_v41  ;;  %v471_v49 = vld [vmem:[#allocation3 + $0x898] sm:$0xff]  ;;  %v7156_v52 = vcombine.low %v479_v40, %v483_v41 }
 0x228   :  { %3832 = vmatprep.subr.bf16.mxu0 %v6941_v51  ;;  %v599_v51 = vld [vmem:[#allocation3 + $0xc98] sm:$0xff] }
 0x229   :  { %3872 = vmatpush2.bf16.msra.mxu1 %v7076_v50  ;;  %v475_v50 = vld [vmem:[#allocation3 + $0x8b8] sm:$0xff] }
 0x22a   :  { %3873 = vmatprep.subr.bf16.mxu1 %v7069_v61  ;;  %v603_v61 = vld [vmem:[#allocation3 + $0xcb8] sm:$0xff]  ;;  %v7149_v56 = vcombine.high %v471_v49, %v475_v50  ;;  %v7148_v62 = vcombine.low %v471_v49, %v475_v50 }
 0x22b   :  { %3833 = vmatpush2.bf16.msra.mxu0 %v6940_v57  ;;  %v7277_v12 = vcombine.high %v599_v51, %v603_v61  ;;  %v463_v57 = vld [vmem:[#allocation3 + $0x858] sm:$0xff]  ;;  %v7276_v63 = vcombine.low %v599_v51, %v603_v61 }
 0x22c   :  { %3884 = vmatprep.subr.bf16.mxu0 %v7189_v5  ;;  %v591_v5 = vld [vmem:[#allocation3 + $0xc58] sm:$0xff] }
 0x22d   :  { %3874 = vmatpush2.bf16.msra.mxu1 %v7068_v60  ;;  %v467_v60 = vld [vmem:[#allocation3 + $0x878] sm:$0xff] }
 0x22e   :  { %3925 = vmatprep.subr.bf16.mxu1 %v7317_v17  ;;  %v3590_v11 = vpop.f32.mrf.mxu0  ;;  %3835 = vmatmul.mubr.bf16.vlgmr.msra.gmra.mxu0 %v8631_v34  ;;  %v7301_v34 = vcombine.high %v623_v13, %v627_v14  ;;  %v595_v17 = vld [vmem:[#allocation3 + $0xc78] sm:$0xff]  ;;  %v7141_v1 = vcombine.high %v463_v57, %v467_v60  ;;  %v7140_v9 = vcombine.low %v463_v57, %v467_v60 }
 0x22f   :  { %v3591_v15 = vadd.f32 %v3590_v11, %v8705_v31  ;;  %3885 = vmatpush1.bf16.msra.mxu0 %v7188_v4  ;;  %3916 = vmatprep.mubr.bf16.mxu0 %v8639_v46  ;;  %v611_v46 = vld [vmem:[#allocation3 + $0xcf8] sm:$0xff]  ;;  %v7269_v2 = vcombine.high %v591_v5, %v595_v17  ;;  %v7268_v10 = vcombine.low %v591_v5, %v595_v17 }
 0x230   :  { %v3631_v16 = vpop.f32.mrf.mxu1  ;;  %3876 = vmatmul.mubr.bf16.vlgmr.msra.gmra.mxu1 %v8637_v37  ;;  %v8714_v19 = vpop.f32.mrf.mxu0  ;;  %3886 = vmatprep.subr.bf16.mxu0 %v7181_v26  ;;  %v615_v37 = vld [vmem:[#allocation3 + $0xd18] sm:$0xff]  ;;  %v7285_v48 = vcombine.high %v607_v42, %v611_v46  ;;  %v7284_v53 = vcombine.low %v607_v42, %v611_v46 }
 0x231   :  { %3926 = vmatpush1.bf16.msra.mxu1 %v7316_v23  ;;  %v8716_v22 = vadd.f32 %v3631_v16, %v3591_v15  ;;  %3957 = vmatprep.mubr.bf16.mxu1 %v8642_v47  ;;  %v7293_v39 = vcombine.high %v615_v37, %v619_v28  ;;  %v7292_v47 = vcombine.low %v615_v37, %v619_v28  ;;  %v455_v4 = vld [vmem:[#allocation3 + $0x818] sm:$0xff] }
 0x232   :  { %v8718_v24 = vpop.f32.mrf.mxu1  ;;  %3927 = vmatprep.subr.bf16.mxu1 %v7309_v8  ;;  %v3594_v31 = vpop.f32.mrf.mxu0  ;;  %v459_v23 = vld [vmem:[#allocation3 + $0x838] sm:$0xff]  ;;  %v3593_v5 = vadd.f32 %v8714_v19, %v8709_v6 }
 0x233   :  { %3887 = vmatpush1.bf16.msra.mxu0 %v7180_v18  ;;  %v583_v26 = vld [vmem:[#allocation3 + $0xc18] sm:$0xff]  ;;  %v7133_v11 = vcombine.high %v455_v4, %v459_v23  ;;  %vm3968_vm3 = vcmp.ge.f32.partialorder %v8716_v22, 0.0 }
 0x234   :  { %v3635_v30 = vpop.f32.mrf.mxu1  ;;  %v3595_v33 = vpop.f32.mrf.mxu0  ;;  %3888 = vmatprep.subr.bf16.mxu0 %v7173_v21  ;;  %v587_v8 = vld [vmem:[#allocation3 + $0xc38] sm:$0xff] }
 0x235   :  { %3928 = vmatpush1.bf16.msra.mxu1 %v7308_v20  ;;  %v7261_v13 = vcombine.high %v583_v26, %v587_v8  ;;  %v575_v14 = vld [vmem:[#allocation3 + $0xbd8] sm:$0xff]  ;;  %v7132_v20 = vcombine.low %v455_v4, %v459_v23  ;;  %v7260_v21 = vcombine.low %v583_v26, %v587_v8  ;;  %v3634_v8 = vadd.f32 %v8718_v24, %v3593_v5  ;;  %v7828_v5 = vld [vmem:[#allocation5 + $0x2c4] ss:$16 sps:$4 sm:$0xff]  }
 0x236   :  { %v3636_v38 = vpop.f32.mrf.mxu1  ;;  %3929 = vmatprep.subr.bf16.mxu1 %v7301_v34  ;;  %v579_v15 = vld [vmem:[#allocation3 + $0xbf8] sm:$0xff] }
 0x237   :  { %3889 = vmatpush1.bf16.msra.mxu0 %v7172_v32  ;;  %v703_v16 = vld [vmem:[#allocation3 + $0xfd8] sm:$0xff]  ;;  %v7253_v34 = vcombine.high %v575_v14, %v579_v15  ;;  %v7252_v30 = vcombine.low %v575_v14, %v579_v15  ;;  %v3975_v15 = vmul.f32 0.2, %v8691_v55  ;;  %vm3969_vm1 = vcmp.ge.f32.partialorder %v3634_v8, 0.0 }
 0x238   :  { %3890 = vmatprep.subr.bf16.mxu0 %v7165_v36  ;;  %v707_v18 = vld [vmem:[#allocation3 + $0xff8] sm:$0xff] }
 0x239   :  { %3930 = vmatpush1.bf16.msra.mxu1 %v7300_v54  ;;  %v7381_v25 = vcombine.high %v703_v16, %v707_v18  ;;  %v571_v31 = vld [vmem:[#allocation3 + $0xbb8] sm:$0xff]  ;;  %v7380_v32 = vcombine.low %v703_v16, %v707_v18  ;;  %v3977_v18 = vmul.f32 0.2, %v3634_v8 }
 0x23a   :  { %3931 = vmatprep.subr.bf16.mxu1 %v7293_v39  ;;  %v695_v37 = vld [vmem:[#allocation3 + $0xf98] sm:$0xff]  ;;  %v7245_v33 = vcombine.high %v567_v27, %v571_v31  ;;  %v7244_v41 = vcombine.low %v567_v27, %v571_v31 }
 0x23b   :  { %3891 = vmatpush1.bf16.msra.mxu0 %v7164_v43  ;;  %v699_v28 = vld [vmem:[#allocation3 + $0xfb8] sm:$0xff] }
 0x23c   :  { %3892 = vmatprep.subr.bf16.mxu0 %v7157_v0  ;;  %v7373_v54 = vcombine.high %v695_v37, %v699_v28  ;;  %v559_v36 = vld [vmem:[#allocation3 + $0xb58] sm:$0xff]  ;;  %v7372_v42 = vcombine.low %v695_v37, %v699_v28 }
 0x23d   :  { %3932 = vmatpush1.bf16.msra.mxu1 %v7292_v47  ;;  %v563_v38 = vld [vmem:[#allocation3 + $0xb78] sm:$0xff] }
 0x23e   :  { %3933 = vmatprep.subr.bf16.mxu1 %v7285_v48  ;;  %v687_v39 = vld [vmem:[#allocation3 + $0xf58] sm:$0xff]  ;;  %v7237_v46 = vcombine.high %v559_v36, %v563_v38  ;;  %v7236_v50 = vcombine.low %v559_v36, %v563_v38 }
 0x23f   :  { %3893 = vmatpush1.bf16.msra.mxu0 %v7156_v52  ;;  %v691_v40 = vld [vmem:[#allocation3 + $0xf78] sm:$0xff] }
 0x240   :  { %3894 = vmatprep.subr.bf16.mxu0 %v7149_v56  ;;  %v7365_v43 = vcombine.high %v687_v39, %v691_v40  ;;  %v551_v47 = vld [vmem:[#allocation3 + $0xb18] sm:$0xff]  ;;  %v7364_v51 = vcombine.low %v687_v39, %v691_v40 }
 0x241   :  { %3934 = vmatpush1.bf16.msra.mxu1 %v7284_v53  ;;  %v555_v0 = vld [vmem:[#allocation3 + $0xb38] sm:$0xff] }
 0x242   :  { %3935 = vmatprep.subr.bf16.mxu1 %v7277_v12  ;;  %v679_v48 = vld [vmem:[#allocation3 + $0xf18] sm:$0xff]  ;;  %v7229_v61 = vcombine.high %v551_v47, %v555_v0  ;;  %v7228_v60 = vcombine.low %v551_v47, %v555_v0 }
 0x243   :  { %3895 = vmatpush1.bf16.msra.mxu0 %v7148_v62  ;;  %v683_v49 = vld [vmem:[#allocation3 + $0xf38] sm:$0xff] }
 0x244   :  { %3896 = vmatprep.subr.bf16.mxu0 %v7141_v1  ;;  %v7357_v52 = vcombine.high %v679_v48, %v683_v49  ;;  %v543_v53 = vld [vmem:[#allocation3 + $0xad8] sm:$0xff]  ;;  %v7356_v17 = vcombine.low %v679_v48, %v683_v49  ;;  %v7819_v48 = vld [vmem:[#allocation5 + $0xe4] ss:$16 sps:$4 sm:$0xff]  }
 0x245   :  { %3936 = vmatpush1.bf16.msra.mxu1 %v7276_v63  ;;  %v547_v56 = vld [vmem:[#allocation3 + $0xaf8] sm:$0xff]  ;;  %v7822_v49 = vld [vmem:[#allocation5 + $0x2e4] ss:$16 sps:$4 sm:$0xff]  }
 0x246   :  { %3937 = vmatprep.subr.bf16.mxu1 %v7269_v2  ;;  %v671_v12 = vld [vmem:[#allocation3 + $0xed8] sm:$0xff]  ;;  %v7221_v62 = vcombine.high %v543_v53, %v547_v56  ;;  %v7220_v26 = vcombine.low %v543_v53, %v547_v56  ;;  %v7820_v56 = vld [vmem:[#allocation5 + $0x2e0] ss:$16 sps:$4 sm:$0xff]  }
 0x247   :  { %3897 = vmatpush1.bf16.msra.mxu0 %v7140_v9  ;;  %v675_v57 = vld [vmem:[#allocation3 + $0xef8] sm:$0xff] }
 0x248   :  { %3898 = vmatprep.subr.bf16.mxu0 %v7133_v11  ;;  %v7349_v63 = vcombine.high %v671_v12, %v675_v57  ;;  %v535_v1 = vld [vmem:[#allocation3 + $0xa98] sm:$0xff]  ;;  %v7348_v9 = vcombine.low %v671_v12, %v675_v57  ;;  %v7825_v12 = vld [vmem:[#allocation5 + $0xc4] ss:$16 sps:$4 sm:$0xff]  }
 0x249   :  { %3938 = vmatpush1.bf16.msra.mxu1 %v7268_v10  ;;  %v539_v2 = vld [vmem:[#allocation3 + $0xab8] sm:$0xff] }
 0x24a   :  { %3939 = vmatprep.subr.bf16.mxu1 %v7261_v13  ;;  %v663_v4 = vld [vmem:[#allocation3 + $0xe98] sm:$0xff]  ;;  %v7213_v10 = vcombine.high %v535_v1, %v539_v2  ;;  %v7212_v16 = vcombine.low %v535_v1, %v539_v2  ;;  %v7823_v1 = vld [vmem:[#allocation5 + $0xc0] ss:$16 sps:$4 sm:$0xff]  }
 0x24b   :  { %3899 = vmatpush1.bf16.msra.mxu0 %v7132_v20  ;;  %v667_v23 = vld [vmem:[#allocation3 + $0xeb8] sm:$0xff] }
 0x24c   :  { %3900 = vmatprep.subr.bf16.mxu0 %v7253_v34  ;;  %v7341_v6 = vcombine.high %v663_v4, %v667_v23  ;;  %v527_v19 = vld [vmem:[#allocation3 + $0xa58] sm:$0xff]  ;;  %v7340_v24 = vcombine.low %v663_v4, %v667_v23  ;;  %v7826_v4 = vld [vmem:[#allocation5 + $0x2c0] ss:$16 sps:$4 sm:$0xff]   ;;  %v7831_v23 = vld [vmem:[#allocation5 + $0xa4] ss:$16 sps:$4 sm:$0xff]  }
 0x24d   :  { %3940 = vmatpush1.bf16.msra.mxu1 %v7260_v21  ;;  %v531_v11 = vld [vmem:[#allocation3 + $0xa78] sm:$0xff] }
 0x24e   :  { %3941 = vmatprep.subr.bf16.mxu1 %v7381_v25  ;;  %v655_v13 = vld [vmem:[#allocation3 + $0xe58] sm:$0xff]  ;;  %v7205_v20 = vcombine.high %v527_v19, %v531_v11 }
 0x24f   :  { %3901 = vmatpush2.bf16.msra.mxu0 %v7252_v30  ;;  %v659_v14 = vld [vmem:[#allocation3 + $0xe78] sm:$0xff]  ;;  %v3983_v30 = vsel %vm3967_vm0, %v8691_v55, %v3975_v15  ;;  %v7835_v15 = vld [vmem:[#allocation5 + $0x80] ss:$16 sps:$4 sm:$0xff]   ;;  %vm6859_vm0 = vcmask 1024  }
 0x250   :  { %3902 = vmatprep.subr.bf16.mxu0 %v7245_v33  ;;  %v8727_v21 = vld [vmem:[#allocation10 + $0x1] ss:$4 sm:$0xff]  ;;  %v7333_v34 = vcombine.high %v655_v13, %v659_v14  ;;  %v7204_v33 = vcombine.low %v527_v19, %v531_v11  ;;  %v7332_v36 = vcombine.low %v655_v13, %v659_v14  ;;  %v8734_v40 = vld [vmem:[#allocation10 + $0x2] ss:$4 sm:$0xff] }
 0x251   :  { %3942 = vmatpush2.bf16.msra.mxu1 %v7380_v32  ;;  %v519_v25 = vld [vmem:[#allocation3 + $0xa18] sm:$0xff]  ;;  %v4000_v31 = vrot.slane %v8727_v21, %v8669_v35  ;;  %v4008_v32 = vrot.slane %v8727_v21, %v8697_v7  ;;  %v4059_v47 = vrot.slane %v8734_v40, %v8697_v7  ;;  %v7832_v19 = vld [vmem:[#allocation5 + $0x2a0] ss:$16 sps:$4 sm:$0xff]   ;;  %v7837_v11 = vld [vmem:[#allocation5 + $0x84] ss:$16 sps:$4 sm:$0xff]  }
 0x252   :  { %3943 = vmatprep.subr.bf16.mxu1 %v7373_v54  ;;  %v523_v27 = vld [vmem:[#allocation3 + $0xa38] sm:$0xff]  ;;  %v3985_v54 = vsel %vm3969_vm1, %v3634_v8, %v3977_v18  ;;  %v7834_v8 = vld [vmem:[#allocation5 + $0x2a4] ss:$16 sps:$4 sm:$0xff]  }
 0x253   :  { %3903 = vmatpush2.bf16.msra.mxu0 %v7244_v41  ;;  %v647_v37 = vld [vmem:[#allocation3 + $0xe18] sm:$0xff]  ;;  %v7197_v38 = vcombine.high %v519_v25, %v523_v27  ;;  %v4034_v41 = vmul.f32 %v4000_v31, %v3983_v30  ;;  %v7196_v55 = vcombine.low %v519_v25, %v523_v27  ;;  %v7840_v14 = vld [vmem:[#allocation5 + $0x284] ss:$16 sps:$4 sm:$0xff]   ;;  %v7847_v31 = vld [vmem:[#allocation5 + $0x40] ss:$16 sps:$4 sm:$0xff]  }
 0x254   :  { %3904 = vmatprep.subr.bf16.mxu0 %v7237_v46  ;;  %v651_v28 = vld [vmem:[#allocation3 + $0xe38] sm:$0xff]  ;;  %v4036_v46 = vmul.f32 %v4008_v32, %v3985_v54  ;;  %v7843_v18 = vld [vmem:[#allocation5 + $0x64] ss:$16 sps:$4 sm:$0xff]   ;;  %v7853_v32 = vld [vmem:[#allocation5 + $0x20] ss:$16 sps:$4 sm:$0xff]  }
 0x255   :  { %3944 = vmatpush2.bf16.msra.mxu1 %v7372_v42  ;;  %v7325_v39 = vcombine.high %v647_v37, %v651_v28  ;;  %v4051_v42 = vrot.slane %v8734_v40, %v8669_v35  ;;  %v7324_v0 = vcombine.low %v647_v37, %v651_v28  ;;  %v7849_v25 = vld [vmem:[#allocation5 + $0x44] ss:$16 sps:$4 sm:$0xff]   ;;  %v7850_v37 = vld [vmem:[#allocation5 + $0x240] ss:$16 sps:$4 sm:$0xff]  }
 0x256   :  { %3945 = vmatprep.subr.bf16.mxu1 %v7365_v43  ;;  %v8739_v43 = vsub.s32 4, %v8594_v45  ;;  %v4087_v53 = vadd.f32 %v4059_v47, %v4036_v46  ;;  %v7852_v27 = vld [vmem:[#allocation5 + $0x244] ss:$16 sps:$4 sm:$0xff]   ;;  %v7865_v46 = vld [vmem:[#allocation5 + $0x1e0] ss:$16 sps:$4 sm:$0xff]  }
 0x257   :  { %3905 = vmatpush2.bf16.msra.mxu0 %v7236_v50  ;;  %v4085_v50 = vadd.f32 %v4051_v42, %v4034_v41  ;;  %v7855_v28 = vld [vmem:[#allocation5 + $0x24] ss:$16 sps:$4 sm:$0xff]  }
 0x258   :  { %3906 = vmatprep.subr.bf16.mxu0 %v7229_v61  ;;  %v7858_v30 = vld [vmem:[#allocation5 + $0x224] ss:$16 sps:$4 sm:$0xff]  }
 0x259   :  { %3946 = vmatpush2.bf16.msra.mxu1 %v7364_v51  ;;  %v8743_v51 = vld [vmem:[#allocation10] ss:$4 sm:$0xff] }
 0x25a   :  { %3947 = vmatprep.subr.bf16.mxu1 %v7357_v52  ;;  %v729_v61 = vrot.slane %v8743_v51, %v8739_v43  ;;  %v7817_v52 = vld [vmem:[#allocation5 + $0xe0] ss:$16 sps:$4 sm:$0xff]   ;;  %v7861_v54 = vld [vmem:[#allocation5 + $0x4] ss:$16 sps:$4 sm:$0xff]  }
 0x25b   :  { %3907 = vmatpush2.bf16.msra.mxu0 %v7228_v60  ;;  %v8748_v60 = vpack.c.bf16 %v4085_v50, %v4085_v50  ;;  %v7867_v41 = vld [vmem:[#allocation5 + $0x1e4] ss:$16 sps:$4 sm:$0xff]  }
 0x25c   :  { %3908 = vmatprep.subr.bf16.mxu0 %v7221_v62  ;;  %v7870_v42 = vld [vmem:[#allocation5 + $0x3e4] ss:$16 sps:$4 sm:$0xff]  }
 0x25d   :  { %3948 = vmatpush2.bf16.msra.mxu1 %v7356_v17  ;;  %v7873_v47 = vld [vmem:[#allocation5 + $0x1c4] ss:$16 sps:$4 sm:$0xff]  }
 0x25e   :  { %3949 = vmatprep.subr.bf16.mxu1 %v7349_v63  ;;  %v8751_v63 = vpack.c.bf16 %v4087_v53, %v4087_v53  ;;  %v7879_v50 = vld [vmem:[#allocation5 + $0x1a4] ss:$16 sps:$4 sm:$0xff]   ;;  %v7880_v53 = vld [vmem:[#allocation5 + $0x3a0] ss:$16 sps:$4 sm:$0xff]  }
 0x25f   :  { %3909 = vmatpush2.bf16.msra.mxu0 %v7220_v26 }
 0x260   :  { %3910 = vmatprep.subr.bf16.mxu0 %v7213_v10  ;;  %v7829_v10 = vld [vmem:[#allocation5 + $0xa0] ss:$16 sps:$4 sm:$0xff]  }
 0x261   :  { %3950 = vmatpush2.bf16.msra.mxu1 %v7348_v9 }
 0x262   :  { %3951 = vmatprep.subr.bf16.mxu1 %v7341_v6 }
 0x263   :  { %3911 = vmatpush2.bf16.msra.mxu0 %v7212_v16  ;;  %v7838_v16 = vld [vmem:[#allocation5 + $0x280] ss:$16 sps:$4 sm:$0xff]  }
 0x264   :  { %3912 = vmatprep.subr.bf16.mxu0 %v7205_v20  ;;  %v7841_v20 = vld [vmem:[#allocation5 + $0x60] ss:$16 sps:$4 sm:$0xff]  }
 0x265   :  { %3952 = vmatpush2.bf16.msra.mxu1 %v7340_v24  ;;  %v7846_v24 = vld [vmem:[#allocation5 + $0x264] ss:$16 sps:$4 sm:$0xff]  }
 0x266   :  { %3953 = vmatprep.subr.bf16.mxu1 %v7333_v34  ;;  %v7844_v34 = vld [vmem:[#allocation5 + $0x260] ss:$16 sps:$4 sm:$0xff]  }
 0x267   :  { %3913 = vmatpush2.bf16.msra.mxu0 %v7204_v33  ;;  %v7856_v33 = vld [vmem:[#allocation5 + $0x220] ss:$16 sps:$4 sm:$0xff]  }
 0x268   :  { %3914 = vmatprep.subr.bf16.mxu0 %v7197_v38  ;;  %v7859_v38 = vld [vmem:[#allocation5] ss:$16 sps:$4 sm:$0xff]  }
 0x269   :  { %3954 = vmatpush2.bf16.msra.mxu1 %v7332_v36  ;;  %v7864_v36 = vld [vmem:[#allocation5 + $0x204] ss:$16 sps:$4 sm:$0xff]  }
 0x26a   :  { %3955 = vmatprep.subr.bf16.mxu1 %v7325_v39  ;;  %v7862_v39 = vld [vmem:[#allocation5 + $0x200] ss:$16 sps:$4 sm:$0xff]  }
 0x26b   :  { %3915 = vmatpush2.bf16.msra.mxu0 %v7196_v55  ;;  %v7868_v55 = vld [vmem:[#allocation5 + $0x3e0] ss:$16 sps:$4 sm:$0xff]  }
 0x26c   :  { %5658 = vmatprep.subr.bf16.mxu0 %v7819_v48  ;;  %v7871_v48 = vld [vmem:[#allocation5 + $0x1c0] ss:$16 sps:$4 sm:$0xff]  }
 0x26d   :  { %3956 = vmatpush2.bf16.msra.mxu1 %v7324_v0  ;;  %v7876_v0 = vld [vmem:[#allocation5 + $0x3c4] ss:$16 sps:$4 sm:$0xff]  }
 0x26e   :  { %5699 = vmatprep.subr.bf16.mxu1 %v7822_v49  ;;  %v3672_v57 = vpop.f32.mrf.mxu0  ;;  %3917 = vmatmul.mubr.bf16.vlgmr.msra.gmra.mxu0 %v8649_v58  ;;  %v7874_v49 = vld [vmem:[#allocation5 + $0x3c0] ss:$16 sps:$4 sm:$0xff]  }
 0x26f   :  { %v3673_v17 = vadd.f32 %v3672_v57, %v729_v61  ;;  %5659 = vmatpush1.bf16.msra.mxu0 %v7817_v52  ;;  %5690 = vmatprep.mubr.bf16.mxu0 %v8748_v60  ;;  %v7882_v61 = vld [vmem:[#allocation5 + $0x3a4] ss:$16 sps:$4 sm:$0xff]   ;;  %v7877_v52 = vld [vmem:[#allocation5 + $0x1a0] ss:$16 sps:$4 sm:$0xff]  }
 0x270   :  { %v3713_v62 = vpop.f32.mrf.mxu1  ;;  %3958 = vmatmul.mubr.bf16.vlgmr.msra.gmra.mxu1 %v8653_v59  ;;  %v8754_v2 = vpop.f32.mrf.mxu0  ;;  %5660 = vmatprep.subr.bf16.mxu0 %v7825_v12  ;;  %v7888_v12 = vld [vmem:[#allocation5 + $0x384] ss:$16 sps:$4 sm:$0xff]   ;;  %v7883_v57 = vld [vmem:[#allocation5 + $0x180] ss:$16 sps:$4 sm:$0xff]  }
 0x271   :  { %5700 = vmatpush1.bf16.msra.mxu1 %v7820_v56  ;;  %v8756_v26 = vadd.f32 %v3713_v62, %v3673_v17  ;;  %5731 = vmatprep.mubr.bf16.mxu1 %v8751_v63  ;;  %v7885_v56 = vld [vmem:[#allocation5 + $0x184] ss:$16 sps:$4 sm:$0xff]  }
 0x272   :  { %v8759_v58 = vpop.f32.mrf.mxu1  ;;  %v3676_v59 = vpop.f32.mrf.mxu0  ;;  %5701 = vmatprep.subr.bf16.mxu1 %v7828_v5  ;;  %v7886_v5 = vld [vmem:[#allocation5 + $0x380] ss:$16 sps:$4 sm:$0xff]   ;;  %v7891_v17 = vld [vmem:[#allocation5 + $0x164] ss:$16 sps:$4 sm:$0xff]  }
 0x273   :  { %5661 = vmatpush1.bf16.msra.mxu0 %v7823_v1  ;;  %v7894_v62 = vld [vmem:[#allocation5 + $0x364] ss:$16 sps:$4 sm:$0xff]   ;;  %v7889_v1 = vld [vmem:[#allocation5 + $0x160] ss:$16 sps:$4 sm:$0xff]  }
 0x274   :  { %v3717_v9 = vpop.f32.mrf.mxu1  ;;  %v3677_v6 = vpop.f32.mrf.mxu0  ;;  %5662 = vmatprep.subr.bf16.mxu0 %v7831_v23  ;;  %v7897_v23 = vld [vmem:[#allocation5 + $0x144] ss:$16 sps:$4 sm:$0xff]  }
 0x275   :  { %5702 = vmatpush1.bf16.msra.mxu1 %v7826_v4  ;;  %v7892_v4 = vld [vmem:[#allocation5 + $0x360] ss:$16 sps:$4 sm:$0xff]   ;;  %v7900_v59 = vld [vmem:[#allocation5 + $0x344] ss:$16 sps:$4 sm:$0xff]   ;;  %v3976_v9 = vmul.f32 0.2, %v8716_v22  ;;  %v3996_v6 = vrot.slane %v8727_v21, %v8664_v29 }
 0x276   :  { %v3718_v13 = vpop.f32.mrf.mxu1  ;;  %5703 = vmatprep.subr.bf16.mxu1 %v7834_v8  ;;  %v3974_v8 = vmul.f32 0.2, %v8686_v44 }
 0x277   :  { %5663 = vmatpush1.bf16.msra.mxu0 %v7829_v10  ;;  %v7895_v10 = vld [vmem:[#allocation5 + $0x140] ss:$16 sps:$4 sm:$0xff]  }
 0x278   :  { %5664 = vmatprep.subr.bf16.mxu0 %v7837_v11  ;;  %v7903_v11 = vld [vmem:[#allocation5 + $0x124] ss:$16 sps:$4 sm:$0xff]   ;;  %v3982_v13 = vsel %vm3966_vm2, %v8686_v44, %v3974_v8  ;;  %v4047_v44 = vrot.slane %v8734_v40, %v8664_v29 }
 0x279   :  { %5704 = vmatpush1.bf16.msra.mxu1 %v7832_v19  ;;  %v7898_v19 = vld [vmem:[#allocation5 + $0x340] ss:$16 sps:$4 sm:$0xff]  }
 0x27a   :  { %5705 = vmatprep.subr.bf16.mxu1 %v7840_v14  ;;  %v4004_v14 = vrot.slane %v8727_v21, %v8694_v3 }
 0x27b   :  { %5665 = vmatpush1.bf16.msra.mxu0 %v7835_v15  ;;  %v7906_v15 = vld [vmem:[#allocation5 + $0x324] ss:$16 sps:$4 sm:$0xff]  }
 0x27c   :  { %5666 = vmatprep.subr.bf16.mxu0 %v7843_v18  ;;  %v8772_v18 = vsub.s32 5, %v8594_v45 }
 0x27d   :  { %5706 = vmatpush1.bf16.msra.mxu1 %v7838_v16  ;;  %v3984_v16 = vsel %vm3968_vm3, %v8716_v22, %v3976_v9  ;;  %v7993_v9 = vld [vmem:[#allocation5 + $0x684] ss:$16 sps:$4 sm:$0xff]  }
 0x27e   :  { %5707 = vmatprep.subr.bf16.mxu1 %v7846_v24  ;;  %v7901_v24 = vld [vmem:[#allocation5 + $0x120] ss:$16 sps:$4 sm:$0xff]   ;;  %v733_v22 = vrot.slane %v8743_v51, %v8772_v18 }
 0x27f   :  { %5667 = vmatpush1.bf16.msra.mxu0 %v7841_v20  ;;  %v4033_v20 = vmul.f32 %v3996_v6, %v3982_v13  ;;  %v7927_v13 = vld [vmem:[#allocation5 + $0x464] ss:$16 sps:$4 sm:$0xff]  }
 0x280   :  { %5668 = vmatprep.subr.bf16.mxu0 %v7849_v25  ;;  %v7909_v25 = vld [vmem:[#allocation5 + $0x104] ss:$16 sps:$4 sm:$0xff]  }
 0x281   :  { %5708 = vmatpush1.bf16.msra.mxu1 %v7844_v34  ;;  %v7904_v34 = vld [vmem:[#allocation5 + $0x320] ss:$16 sps:$4 sm:$0xff]  }
 0x282   :  { %5709 = vmatprep.subr.bf16.mxu1 %v7852_v27  ;;  %v4035_v27 = vmul.f32 %v4004_v14, %v3984_v16  ;;  %v7991_v14 = vld [vmem:[#allocation5 + $0x680] ss:$16 sps:$4 sm:$0xff]  }
 0x283   :  { %5669 = vmatpush1.bf16.msra.mxu0 %v7847_v31  ;;  %v7912_v31 = vld [vmem:[#allocation5 + $0x304] ss:$16 sps:$4 sm:$0xff]  }
 0x284   :  { %5670 = vmatprep.subr.bf16.mxu0 %v7855_v28  ;;  %v7907_v28 = vld [vmem:[#allocation5 + $0x100] ss:$16 sps:$4 sm:$0xff]  }
 0x285   :  { %5710 = vmatpush1.bf16.msra.mxu1 %v7850_v37  ;;  %v4055_v37 = vrot.slane %v8734_v40, %v8694_v3 }
 0x286   :  { %5711 = vmatprep.subr.bf16.mxu1 %v7858_v30  ;;  %v7910_v30 = vld [vmem:[#allocation5 + $0x300] ss:$16 sps:$4 sm:$0xff]  }
 0x287   :  { %5671 = vmatpush1.bf16.msra.mxu0 %v7853_v32  ;;  %v4084_v32 = vadd.f32 %v4047_v44, %v4033_v20  ;;  %v7928_v44 = vld [vmem:[#allocation5 + $0x440] ss:$16 sps:$4 sm:$0xff]  }
 0x288   :  { %5672 = vmatprep.subr.bf16.mxu0 %v7861_v54  ;;  %v4086_v54 = vadd.f32 %v4055_v37, %v4035_v27  ;;  %v7933_v27 = vld [vmem:[#allocation5 + $0x424] ss:$16 sps:$4 sm:$0xff]  }
 0x289   :  { %5712 = vmatpush1.bf16.msra.mxu1 %v7856_v33  ;;  %v7915_v33 = vld [vmem:[#allocation5 + $0x4e4] ss:$16 sps:$4 sm:$0xff]  }
 0x28a   :  { %5713 = vmatprep.subr.bf16.mxu1 %v7864_v36  ;;  %v7975_v36 = vld [vmem:[#allocation5 + $0x6e4] ss:$16 sps:$4 sm:$0xff]  }
 0x28b   :  { %5673 = vmatpush1.bf16.msra.mxu0 %v7859_v38  ;;  %v3675_v38 = vadd.f32 %v8754_v2, %v733_v22  ;;  %v7916_v2 = vld [vmem:[#allocation5 + $0x4c0] ss:$16 sps:$4 sm:$0xff]   ;;  %v8011_v37 = vld [vmem:[#allocation5 + $0x624] ss:$16 sps:$4 sm:$0xff]  }
 0x28c   :  { %5674 = vmatprep.subr.bf16.mxu0 %v7867_v41  ;;  %v8781_v41 = vpack.c.bf16 %v4084_v32, %v4084_v32  ;;  %v7931_v22 = vld [vmem:[#allocation5 + $0x420] ss:$16 sps:$4 sm:$0xff]   ;;  %v8017_v32 = vld [vmem:[#allocation5 + $0x604] ss:$16 sps:$4 sm:$0xff]  }
 0x28d   :  { %5714 = vmatpush1.bf16.msra.mxu1 %v7862_v39  ;;  %v7913_v39 = vld [vmem:[#allocation5 + $0x4e0] ss:$16 sps:$4 sm:$0xff]  }
 0x28e   :  { %5715 = vmatprep.subr.bf16.mxu1 %v7870_v42  ;;  %v7918_v42 = vld [vmem:[#allocation5 + $0x4c4] ss:$16 sps:$4 sm:$0xff]  }
 0x28f   :  { %5675 = vmatpush2.bf16.msra.mxu0 %v7865_v46  ;;  %v7973_v46 = vld [vmem:[#allocation5 + $0x6e0] ss:$16 sps:$4 sm:$0xff]  }
 0x290   :  { %5676 = vmatprep.subr.bf16.mxu0 %v7873_v47  ;;  %v7981_v47 = vld [vmem:[#allocation5 + $0x6c4] ss:$16 sps:$4 sm:$0xff]  }
 0x291   :  { %5716 = vmatpush2.bf16.msra.mxu1 %v7868_v55  ;;  %v8783_v55 = vpack.c.bf16 %v4086_v54, %v4086_v54  ;;  %v7939_v54 = vld [vmem:[#allocation5 + $0x5e4] ss:$16 sps:$4 sm:$0xff]  }
 0x292   :  { %5717 = vmatprep.subr.bf16.mxu1 %v7876_v0 }
 0x293   :  { %5677 = vmatpush2.bf16.msra.mxu0 %v7871_v48  ;;  %v3716_v48 = vadd.f32 %v8759_v58, %v3675_v38  ;;  %v7919_v58 = vld [vmem:[#allocation5 + $0x4a0] ss:$16 sps:$4 sm:$0xff]   ;;  %v8023_v38 = vld [vmem:[#allocation5 + $0x7e4] ss:$16 sps:$4 sm:$0xff]  }
 0x294   :  { %5678 = vmatprep.subr.bf16.mxu0 %v7879_v50 }
 0x295   :  { %5718 = vmatpush2.bf16.msra.mxu1 %v7874_v49 }
 0x296   :  { %5719 = vmatprep.subr.bf16.mxu1 %v7882_v61  ;;  %v7921_v61 = vld [vmem:[#allocation5 + $0x4a4] ss:$16 sps:$4 sm:$0xff]  }
 0x297   :  { %5679 = vmatpush2.bf16.msra.mxu0 %v7877_v52  ;;  %v7979_v52 = vld [vmem:[#allocation5 + $0x6c0] ss:$16 sps:$4 sm:$0xff]  }
 0x298   :  { %5680 = vmatprep.subr.bf16.mxu0 %v7885_v56 }
 0x299   :  { %5720 = vmatpush2.bf16.msra.mxu1 %v7880_v53 }
 0x29a   :  { %5721 = vmatprep.subr.bf16.mxu1 %v7888_v12  ;;  %v7987_v12 = vld [vmem:[#allocation5 + $0x6a4] ss:$16 sps:$4 sm:$0xff]  }
 0x29b   :  { %5681 = vmatpush2.bf16.msra.mxu0 %v7883_v57 }
 0x29c   :  { %5682 = vmatprep.subr.bf16.mxu0 %v7891_v17 }
 0x29d   :  { %5722 = vmatpush2.bf16.msra.mxu1 %v7886_v5 }
 0x29e   :  { %5723 = vmatprep.subr.bf16.mxu1 %v7894_v62  ;;  %v4016_v62 = vrot.slane %v8727_v21, %v8772_v18 }
 0x29f   :  { %5683 = vmatpush2.bf16.msra.mxu0 %v7889_v1 }
 0x2a0   :  { %5684 = vmatprep.subr.bf16.mxu0 %v7897_v23  ;;  %v7985_v23 = vld [vmem:[#allocation5 + $0x6a0] ss:$16 sps:$4 sm:$0xff]  }
 0x2a1   :  { %5724 = vmatpush2.bf16.msra.mxu1 %v7892_v4  ;;  %v7924_v4 = vld [vmem:[#allocation5 + $0x484] ss:$16 sps:$4 sm:$0xff]  }
 0x2a2   :  { %5725 = vmatprep.subr.bf16.mxu1 %v7900_v59 }
 0x2a3   :  { %5685 = vmatpush2.bf16.msra.mxu0 %v7895_v10  ;;  %v4067_v10 = vrot.slane %v8734_v40, %v8772_v18  ;;  %v8005_v18 = vld [vmem:[#allocation5 + $0x644] ss:$16 sps:$4 sm:$0xff]  }
 0x2a4   :  { %5686 = vmatprep.subr.bf16.mxu0 %v7903_v11 }
 0x2a5   :  { %5726 = vmatpush2.bf16.msra.mxu1 %v7898_v19  ;;  %v7922_v19 = vld [vmem:[#allocation5 + $0x480] ss:$16 sps:$4 sm:$0xff]  }
 0x2a6   :  { %5727 = vmatprep.subr.bf16.mxu1 %v7906_v15  ;;  %v7999_v15 = vld [vmem:[#allocation5 + $0x664] ss:$16 sps:$4 sm:$0xff]  }
 0x2a7   :  { %5687 = vmatpush2.bf16.msra.mxu0 %v7901_v24  ;;  %v7925_v24 = vld [vmem:[#allocation5 + $0x460] ss:$16 sps:$4 sm:$0xff]  }
 0x2a8   :  { %5688 = vmatprep.subr.bf16.mxu0 %v7909_v25  ;;  %v7997_v25 = vld [vmem:[#allocation5 + $0x660] ss:$16 sps:$4 sm:$0xff]  }
 0x2a9   :  { %5728 = vmatpush2.bf16.msra.mxu1 %v7904_v34  ;;  %v7930_v34 = vld [vmem:[#allocation5 + $0x444] ss:$16 sps:$4 sm:$0xff]  }
 0x2aa   :  { %5729 = vmatprep.subr.bf16.mxu1 %v7912_v31  ;;  %v8003_v31 = vld [vmem:[#allocation5 + $0x640] ss:$16 sps:$4 sm:$0xff]  }
 0x2ab   :  { %5689 = vmatpush2.bf16.msra.mxu0 %v7907_v28  ;;  %v7936_v28 = vld [vmem:[#allocation5 + $0x404] ss:$16 sps:$4 sm:$0xff]  }
 0x2ac   :  { %5740 = vmatprep.subr.bf16.mxu0 %v7915_v33  ;;  %v7934_v33 = vld [vmem:[#allocation5 + $0x400] ss:$16 sps:$4 sm:$0xff]  }
 0x2ad   :  { %5730 = vmatpush2.bf16.msra.mxu1 %v7910_v30  ;;  %v8009_v30 = vld [vmem:[#allocation5 + $0x620] ss:$16 sps:$4 sm:$0xff]  }
 0x2ae   :  { %5781 = vmatprep.subr.bf16.mxu1 %v7975_v36  ;;  %v8785_v0 = vpop.f32.mrf.mxu0  ;;  %5691 = vmatmul.mubr.bf16.vlgmr.msra.gmra.mxu0 %v8781_v41  ;;  %v8015_v36 = vld [vmem:[#allocation5 + $0x600] ss:$16 sps:$4 sm:$0xff]  }
 0x2af   :  { %5741 = vmatpush1.bf16.msra.mxu0 %v7913_v39  ;;  %v7937_v39 = vld [vmem:[#allocation5 + $0x5e0] ss:$16 sps:$4 sm:$0xff]  }
 0x2b0   :  { %v8789_v49 = vpop.f32.mrf.mxu1  ;;  %5732 = vmatmul.mubr.bf16.vlgmr.msra.gmra.mxu1 %v8783_v55  ;;  %v3756_v50 = vpop.f32.mrf.mxu0  ;;  %5742 = vmatprep.subr.bf16.mxu0 %v7918_v42  ;;  %v7942_v42 = vld [vmem:[#allocation5 + $0x5c4] ss:$16 sps:$4 sm:$0xff]  }
 0x2b1   :  { %5782 = vmatpush1.bf16.msra.mxu1 %v7973_v46  ;;  %v3757_v53 = vadd.f32 %v3756_v50, %v3716_v48  ;;  %v8021_v46 = vld [vmem:[#allocation5 + $0x7e0] ss:$16 sps:$4 sm:$0xff]  }
 0x2b2   :  { %v3797_v56 = vpop.f32.mrf.mxu1  ;;  %5783 = vmatprep.subr.bf16.mxu1 %v7981_v47  ;;  %v3758_v57 = vpop.f32.mrf.mxu0  ;;  %v8029_v47 = vld [vmem:[#allocation5 + $0x7c4] ss:$16 sps:$4 sm:$0xff]   ;;  %v7940_v48 = vld [vmem:[#allocation5 + $0x5c0] ss:$16 sps:$4 sm:$0xff]  }
 0x2b3   :  { %v3798_v5 = vadd.f32 %v3797_v56, %v3757_v53  ;;  %5743 = vmatpush1.bf16.msra.mxu0 %v7916_v2  ;;  %v7945_v2 = vld [vmem:[#allocation5 + $0x5a4] ss:$16 sps:$4 sm:$0xff]   ;;  %v8027_v50 = vld [vmem:[#allocation5 + $0x7c0] ss:$16 sps:$4 sm:$0xff]  }
 0x2b4   :  { %v3799_v17 = vpop.f32.mrf.mxu1  ;;  %v3759_v1 = vpop.f32.mrf.mxu0  ;;  %5744 = vmatprep.subr.bf16.mxu0 %v7921_v61  ;;  %v8035_v61 = vld [vmem:[#allocation5 + $0x7a4] ss:$16 sps:$4 sm:$0xff]   ;;  %v8033_v56 = vld [vmem:[#allocation5 + $0x7a0] ss:$16 sps:$4 sm:$0xff]  }
 0x2b5   :  { %5784 = vmatpush1.bf16.msra.mxu1 %v7979_v52  ;;  %vm3971_vm4 = vcmp.ge.f32.partialorder %v3798_v5, 0.0  ;;  %v3979_v8 = vmul.f32 0.2, %v3798_v5  ;;  %v7943_v52 = vld [vmem:[#allocation5 + $0x5a0] ss:$16 sps:$4 sm:$0xff]  }
 0x2b6   :  { %v3800_v59 = vpop.f32.mrf.mxu1  ;;  %5785 = vmatprep.subr.bf16.mxu1 %v7987_v12  ;;  %v7948_v53 = vld [vmem:[#allocation5 + $0x584] ss:$16 sps:$4 sm:$0xff]   ;;  %v3755_v12 = vadd.f32 %v8785_v0, %v8756_v26  ;;  %v7952_v0 = vld [vmem:[#allocation5 + $0x540] ss:$16 sps:$4 sm:$0xff]  }
 0x2b7   :  { %v3987_v6 = vsel %vm3971_vm4, %v3798_v5, %v3979_v8  ;;  %5745 = vmatpush1.bf16.msra.mxu0 %v7919_v58  ;;  %v8041_v57 = vld [vmem:[#allocation5 + $0x784] ss:$16 sps:$4 sm:$0xff]   ;;  %v7946_v5 = vld [vmem:[#allocation5 + $0x580] ss:$16 sps:$4 sm:$0xff]  }
 0x2b8   :  { %v4038_v11 = vmul.f32 %v4016_v62, %v3987_v6  ;;  %5746 = vmatprep.subr.bf16.mxu0 %v7924_v4  ;;  %v7951_v17 = vld [vmem:[#allocation5 + $0x564] ss:$16 sps:$4 sm:$0xff]   ;;  %v8039_v58 = vld [vmem:[#allocation5 + $0x780] ss:$16 sps:$4 sm:$0xff]   ;;  %v3796_v62 = vadd.f32 %v8789_v49, %v3755_v12  ;;  %v7994_v12 = vld [vmem:[#allocation5 + $0x8] ss:$16 sps:$4 sm:$0xff]  }
 0x2b9   :  { %5786 = vmatpush1.bf16.msra.mxu1 %v7985_v23  ;;  %v8047_v1 = vld [vmem:[#allocation5 + $0x764] ss:$16 sps:$4 sm:$0xff]   ;;  %v7949_v4 = vld [vmem:[#allocation5 + $0x560] ss:$16 sps:$4 sm:$0xff]  }
 0x2ba   :  { %5787 = vmatprep.subr.bf16.mxu1 %v7993_v9  ;;  %v4089_v16 = vadd.f32 %v4067_v10, %v4038_v11  ;;  %v7954_v23 = vld [vmem:[#allocation5 + $0x544] ss:$16 sps:$4 sm:$0xff]   ;;  %v8045_v8 = vld [vmem:[#allocation5 + $0x760] ss:$16 sps:$4 sm:$0xff]   ;;  %v3978_v59 = vmul.f32 0.2, %v3796_v62  ;;  %v4012_v9 = vrot.slane %v8727_v21, %v8739_v43 }
 0x2bb   :  { %5747 = vmatpush1.bf16.msra.mxu0 %v7922_v19  ;;  %v8053_v26 = vld [vmem:[#allocation5 + $0x744] ss:$16 sps:$4 sm:$0xff]   ;;  %vm3970_vm5 = vcmp.ge.f32.partialorder %v3796_v62, 0.0  ;;  %v8051_v49 = vld [vmem:[#allocation5 + $0x740] ss:$16 sps:$4 sm:$0xff]  }
 0x2bc   :  { %5748 = vmatprep.subr.bf16.mxu0 %v7927_v13  ;;  %v8796_v20 = vpack.c.bf16 %v4089_v16, %v4089_v16  ;;  %v7957_v10 = vld [vmem:[#allocation5 + $0x524] ss:$16 sps:$4 sm:$0xff]   ;;  %v3986_v6 = vsel %vm3970_vm5, %v3796_v62, %v3978_v59  ;;  %v7955_v11 = vld [vmem:[#allocation5 + $0x520] ss:$16 sps:$4 sm:$0xff]   ;;  %v8014_v62 = vld [vmem:[#allocation5 + $0x1ac] ss:$16 sps:$4 sm:$0xff]  }
 0x2bd   :  { %5788 = vmatpush1.bf16.msra.mxu1 %v7991_v14  ;;  %v8059_v19 = vld [vmem:[#allocation5 + $0x724] ss:$16 sps:$4 sm:$0xff]   ;;  %v4037_v13 = vmul.f32 %v4012_v9, %v3986_v6  ;;  %v8057_v16 = vld [vmem:[#allocation5 + $0x720] ss:$16 sps:$4 sm:$0xff]   ;;  %v8024_v59 = vld [vmem:[#allocation5 + $0x168] ss:$16 sps:$4 sm:$0xff]  }
 0x2be   :  { %5789 = vmatprep.subr.bf16.mxu1 %v7999_v15  ;;  %5772 = vmatprep.mubr.bf16.mxu0 %v8796_v20  ;;  %v7960_v14 = vld [vmem:[#allocation5 + $0x504] ss:$16 sps:$4 sm:$0xff]   ;;  %v4063_v15 = vrot.slane %v8734_v40, %v8739_v43  ;;  %v8038_v9 = vld [vmem:[#allocation5 + $0x12c] ss:$16 sps:$4 sm:$0xff]   ;;  %v8036_v6 = vld [vmem:[#allocation5 + $0x128] ss:$16 sps:$4 sm:$0xff]  }
 0x2bf   :  { %5749 = vmatpush1.bf16.msra.mxu0 %v7925_v24  ;;  %v8065_v24 = vld [vmem:[#allocation5 + $0x704] ss:$16 sps:$4 sm:$0xff]  }
 0x2c0   :  { %5750 = vmatprep.subr.bf16.mxu0 %v7930_v34  ;;  %v7958_v34 = vld [vmem:[#allocation5 + $0x500] ss:$16 sps:$4 sm:$0xff]  }
 0x2c1   :  { %5790 = vmatpush1.bf16.msra.mxu1 %v7997_v25  ;;  %v4088_v25 = vadd.f32 %v4063_v15, %v4037_v13  ;;  %v8050_v15 = vld [vmem:[#allocation5 + $0x4ec] ss:$16 sps:$4 sm:$0xff]  }
 0x2c2   :  { %5791 = vmatprep.subr.bf16.mxu1 %v8005_v18  ;;  %v7963_v18 = vld [vmem:[#allocation5 + $0xec] ss:$16 sps:$4 sm:$0xff]  }
 0x2c3   :  { %5751 = vmatpush1.bf16.msra.mxu0 %v7928_v44  ;;  %v8063_v44 = vld [vmem:[#allocation5 + $0x700] ss:$16 sps:$4 sm:$0xff]  }
 0x2c4   :  { %5752 = vmatprep.subr.bf16.mxu0 %v7933_v27  ;;  %v8071_v27 = vld [vmem:[#allocation5 + $0x2ec] ss:$16 sps:$4 sm:$0xff]  }
 0x2c5   :  { %5792 = vmatpush1.bf16.msra.mxu1 %v8003_v31  ;;  %v7961_v31 = vld [vmem:[#allocation5 + $0xe8] ss:$16 sps:$4 sm:$0xff]  }
 0x2c6   :  { %5793 = vmatprep.subr.bf16.mxu1 %v8011_v37  ;;  %v8806_v37 = vpack.c.bf16 %v4088_v25, %v4088_v25 }
 0x2c7   :  { %5753 = vmatpush1.bf16.msra.mxu0 %v7931_v22  ;;  %v7966_v22 = vld [vmem:[#allocation5 + $0xcc] ss:$16 sps:$4 sm:$0xff]  }
 0x2c8   :  { %5754 = vmatprep.subr.bf16.mxu0 %v7936_v28 }
 0x2c9   :  { %5794 = vmatpush1.bf16.msra.mxu1 %v8009_v30  ;;  %v7964_v30 = vld [vmem:[#allocation5 + $0xc8] ss:$16 sps:$4 sm:$0xff]  }
 0x2ca   :  { %5795 = vmatprep.subr.bf16.mxu1 %v8017_v32 }
 0x2cb   :  { %5755 = vmatpush1.bf16.msra.mxu0 %v7934_v33  ;;  %v7969_v33 = vld [vmem:[#allocation5 + $0xac] ss:$16 sps:$4 sm:$0xff]  }
 0x2cc   :  { %5756 = vmatprep.subr.bf16.mxu0 %v7939_v54 }
 0x2cd   :  { %5796 = vmatpush1.bf16.msra.mxu1 %v8015_v36 }
 0x2ce   :  { %5797 = vmatprep.subr.bf16.mxu1 %v8023_v38 }
 0x2cf   :  { %5757 = vmatpush2.bf16.msra.mxu0 %v7937_v39  ;;  %v7967_v39 = vld [vmem:[#allocation5 + $0xa8] ss:$16 sps:$4 sm:$0xff]  }
 0x2d0   :  { %5758 = vmatprep.subr.bf16.mxu0 %v7942_v42 }
 0x2d1   :  { %5798 = vmatpush2.bf16.msra.mxu1 %v8021_v46  ;;  %v7972_v46 = vld [vmem:[#allocation5 + $0x8c] ss:$16 sps:$4 sm:$0xff]  }
 0x2d2   :  { %5799 = vmatprep.subr.bf16.mxu1 %v8029_v47 }
 0x2d3   :  { %5759 = vmatpush2.bf16.msra.mxu0 %v7940_v48  ;;  %v7970_v48 = vld [vmem:[#allocation5 + $0x88] ss:$16 sps:$4 sm:$0xff]  }
 0x2d4   :  { %5760 = vmatprep.subr.bf16.mxu0 %v7945_v2  ;;  %v7978_v2 = vld [vmem:[#allocation5 + $0x6c] ss:$16 sps:$4 sm:$0xff]  }
 0x2d5   :  { %5800 = vmatpush2.bf16.msra.mxu1 %v8027_v50  ;;  %v7984_v50 = vld [vmem:[#allocation5 + $0x4c] ss:$16 sps:$4 sm:$0xff]  }
 0x2d6   :  { %5801 = vmatprep.subr.bf16.mxu1 %v8035_v61  ;;  %v7982_v61 = vld [vmem:[#allocation5 + $0x48] ss:$16 sps:$4 sm:$0xff]  }
 0x2d7   :  { %5761 = vmatpush2.bf16.msra.mxu0 %v7943_v52  ;;  %v7990_v52 = vld [vmem:[#allocation5 + $0x2c] ss:$16 sps:$4 sm:$0xff]  }
 0x2d8   :  { %5762 = vmatprep.subr.bf16.mxu0 %v7948_v53  ;;  %v7988_v53 = vld [vmem:[#allocation5 + $0x28] ss:$16 sps:$4 sm:$0xff]  }
 0x2d9   :  { %5802 = vmatpush2.bf16.msra.mxu1 %v8033_v56  ;;  %v7996_v56 = vld [vmem:[#allocation5 + $0xc] ss:$16 sps:$4 sm:$0xff]  }
 0x2da   :  { %5803 = vmatprep.subr.bf16.mxu1 %v8041_v57  ;;  %v8002_v57 = vld [vmem:[#allocation5 + $0x1ec] ss:$16 sps:$4 sm:$0xff]  }
 0x2db   :  { %5763 = vmatpush2.bf16.msra.mxu0 %v7946_v5  ;;  %v8000_v5 = vld [vmem:[#allocation5 + $0x1e8] ss:$16 sps:$4 sm:$0xff]  }
 0x2dc   :  { %5764 = vmatprep.subr.bf16.mxu0 %v7951_v17  ;;  %v8008_v17 = vld [vmem:[#allocation5 + $0x1cc] ss:$16 sps:$4 sm:$0xff]  }
 0x2dd   :  { %5804 = vmatpush2.bf16.msra.mxu1 %v8039_v58  ;;  %v8006_v58 = vld [vmem:[#allocation5 + $0x1c8] ss:$16 sps:$4 sm:$0xff]  }
 0x2de   :  { %5805 = vmatprep.subr.bf16.mxu1 %v8047_v1  ;;  %v8012_v1 = vld [vmem:[#allocation5 + $0x1a8] ss:$16 sps:$4 sm:$0xff]  }
 0x2df   :  { %5765 = vmatpush2.bf16.msra.mxu0 %v7949_v4  ;;  %v8020_v4 = vld [vmem:[#allocation5 + $0x18c] ss:$16 sps:$4 sm:$0xff]  }
 0x2e0   :  { %5766 = vmatprep.subr.bf16.mxu0 %v7954_v23  ;;  %v8018_v23 = vld [vmem:[#allocation5 + $0x188] ss:$16 sps:$4 sm:$0xff]  }
 0x2e1   :  { %5806 = vmatpush2.bf16.msra.mxu1 %v8045_v8  ;;  %v8026_v8 = vld [vmem:[#allocation5 + $0x16c] ss:$16 sps:$4 sm:$0xff]  }
 0x2e2   :  { %5807 = vmatprep.subr.bf16.mxu1 %v8053_v26  ;;  %v8032_v26 = vld [vmem:[#allocation5 + $0x14c] ss:$16 sps:$4 sm:$0xff]  }
 0x2e3   :  { %5767 = vmatpush2.bf16.msra.mxu0 %v7952_v0  ;;  %v8030_v0 = vld [vmem:[#allocation5 + $0x148] ss:$16 sps:$4 sm:$0xff]  }
 0x2e4   :  { %5768 = vmatprep.subr.bf16.mxu0 %v7957_v10  ;;  %v736_v10 = vsub.s32 6, %v8594_v45 }
 0x2e5   :  { %5808 = vmatpush2.bf16.msra.mxu1 %v8051_v49  ;;  %v740_v49 = vsub.s32 7, %v8594_v45  ;;  %v8056_v45 = vld [vmem:[#allocation5 + $0x4cc] ss:$16 sps:$4 sm:$0xff]  }
 0x2e6   :  { %5809 = vmatprep.subr.bf16.mxu1 %v8059_v19  ;;  %v8044_v19 = vld [vmem:[#allocation5 + $0x10c] ss:$16 sps:$4 sm:$0xff]  }
 0x2e7   :  { %5769 = vmatpush2.bf16.msra.mxu0 %v7955_v11  ;;  %v737_v11 = vrot.slane %v8743_v51, %v736_v10  ;;  %v741_v13 = vrot.slane %v8743_v51, %v740_v49 }
 0x2e8   :  { %5770 = vmatprep.subr.bf16.mxu0 %v7960_v14  ;;  %v8042_v14 = vld [vmem:[#allocation5 + $0x108] ss:$16 sps:$4 sm:$0xff]  }
 0x2e9   :  { %5810 = vmatpush2.bf16.msra.mxu1 %v8057_v16 }
 0x2ea   :  { %5811 = vmatprep.subr.bf16.mxu1 %v8065_v24 }
 0x2eb   :  { %5771 = vmatpush2.bf16.msra.mxu0 %v7958_v34  ;;  %v8048_v34 = vld [vmem:[#allocation5 + $0x4e8] ss:$16 sps:$4 sm:$0xff]  }
 0x2ec   :  { %5822 = vmatprep.subr.bf16.mxu0 %v7963_v18 }
 0x2ed   :  { %5812 = vmatpush2.bf16.msra.mxu1 %v8063_v44 }
 0x2ee   :  { %5863 = vmatprep.subr.bf16.mxu1 %v8071_v27  ;;  %v8808_v43 = vpop.f32.mrf.mxu0  ;;  %5773 = vmatmul.mubr.bf16.vlgmr.msra.gmra.mxu0 %v8806_v37 }
 0x2ef   :  { %5823 = vmatpush1.bf16.msra.mxu0 %v7961_v31  ;;  %5854 = vmatprep.mubr.bf16.mxu0 %v8748_v60  ;;  %v7976_v60 = vld [vmem:[#allocation5 + $0x68] ss:$16 sps:$4 sm:$0xff]   ;;  %v3837_v16 = vadd.f32 %v8808_v43, %v737_v11  ;;  %v8062_v43 = vld [vmem:[#allocation5 + $0x4ac] ss:$16 sps:$4 sm:$0xff]  }
 0x2f0   :  { %v8811_v28 = vpop.f32.mrf.mxu1  ;;  %v8814_v32 = vpop.f32.mrf.mxu0  ;;  %5824 = vmatprep.subr.bf16.mxu0 %v7966_v22  ;;  %v8054_v31 = vld [vmem:[#allocation5 + $0x4c8] ss:$16 sps:$4 sm:$0xff]  }
 0x2f1   :  { %v3839_v24 = vadd.f32 %v8814_v32, %v741_v13  ;;  %v3878_v25 = vadd.f32 %v8811_v28, %v3837_v16  ;;  %v8096_v11 = vld [vmem:[#allocation5 + $0x5e8] ss:$16 sps:$4 sm:$0xff]  }
 0x2f2   :  { %v8816_v54 = vpop.f32.mrf.mxu1  ;;  %v3840_v36 = vpop.f32.mrf.mxu0  ;;  %v8093_v13 = vld [vmem:[#allocation5 + $0x268] ss:$16 sps:$4 sm:$0xff]  }
 0x2f3   :  { %5825 = vmatpush1.bf16.msra.mxu0 %v7964_v30  ;;  %v3880_v44 = vadd.f32 %v8816_v54, %v3839_v24  ;;  %v4020_v36 = vrot.slane %v8727_v21, %v736_v10  ;;  %v8060_v54 = vld [vmem:[#allocation5 + $0x4a8] ss:$16 sps:$4 sm:$0xff]  }
 0x2f4   :  { %v3881_v38 = vpop.f32.mrf.mxu1  ;;  %v3841_v42 = vpop.f32.mrf.mxu0  ;;  %5826 = vmatprep.subr.bf16.mxu0 %v7969_v33  ;;  %v8102_v16 = vld [vmem:[#allocation5 + $0x5c8] ss:$16 sps:$4 sm:$0xff]  }
 0x2f5   :  { %v4024_v42 = vrot.slane %v8727_v21, %v740_v49  ;;  %v8099_v24 = vld [vmem:[#allocation5 + $0x248] ss:$16 sps:$4 sm:$0xff]  }
 0x2f6   :  { %v3882_v47 = vpop.f32.mrf.mxu1 }
 0x2f7   :  { %5827 = vmatpush1.bf16.msra.mxu0 %v7967_v39 }
 0x2f8   :  { %5828 = vmatprep.subr.bf16.mxu0 %v7972_v46 }
 0x2fb   :  { %5829 = vmatpush1.bf16.msra.mxu0 %v7970_v48 }
 0x2fc   :  { %5830 = vmatprep.subr.bf16.mxu0 %v7978_v2 }
 0x2ff   :  { %5831 = vmatpush1.bf16.msra.mxu0 %v7976_v60  ;;  %v4071_v60 = vrot.slane %v8734_v40, %v736_v10  ;;  %v8089_v10 = vld [vmem:[#allocation5 + $0x28c] ss:$16 sps:$4 sm:$0xff]  }
 0x300   :  { %5832 = vmatprep.subr.bf16.mxu0 %v7984_v50 }
 0x303   :  { %5833 = vmatpush1.bf16.msra.mxu0 %v7982_v61  ;;  %v4075_v61 = vrot.slane %v8734_v40, %v740_v49  ;;  %v8078_v40 = vld [vmem:[#allocation5 + $0x448] ss:$16 sps:$4 sm:$0xff]  }
 0x304   :  { %5834 = vmatprep.subr.bf16.mxu0 %v7990_v52  ;;  %v8090_v49 = vld [vmem:[#allocation5 + $0x408] ss:$16 sps:$4 sm:$0xff]  }
 0x307   :  { %5835 = vmatpush1.bf16.msra.mxu0 %v7988_v53  ;;  %v8066_v53 = vld [vmem:[#allocation5 + $0x488] ss:$16 sps:$4 sm:$0xff]  }
 0x308   :  { %5836 = vmatprep.subr.bf16.mxu0 %v7996_v56 }
 0x30b   :  { %5837 = vmatpush1.bf16.msra.mxu0 %v7994_v12  ;;  %v8074_v12 = vld [vmem:[#allocation5 + $0x46c] ss:$16 sps:$4 sm:$0xff]  }
 0x30c   :  { %5838 = vmatprep.subr.bf16.mxu0 %v8002_v57 }
 0x30f   :  { %5839 = vmatpush2.bf16.msra.mxu0 %v8000_v5  ;;  %v8072_v5 = vld [vmem:[#allocation5 + $0x468] ss:$16 sps:$4 sm:$0xff]  }
 0x310   :  { %5840 = vmatprep.subr.bf16.mxu0 %v8008_v17 }
 0x313   :  { %5841 = vmatpush2.bf16.msra.mxu0 %v8006_v58  ;;  %v8069_v58 = vld [vmem:[#allocation5 + $0x2e8] ss:$16 sps:$4 sm:$0xff]  }
 0x314   :  { %5842 = vmatprep.subr.bf16.mxu0 %v8014_v62 }
 0x317   :  { %5843 = vmatpush2.bf16.msra.mxu0 %v8012_v1  ;;  %v8077_v1 = vld [vmem:[#allocation5 + $0x2cc] ss:$16 sps:$4 sm:$0xff]  }
 0x318   :  { %5844 = vmatprep.subr.bf16.mxu0 %v8020_v4  ;;  %v8080_v4 = vld [vmem:[#allocation5 + $0x44c] ss:$16 sps:$4 sm:$0xff]  }
 0x31b   :  { %5845 = vmatpush2.bf16.msra.mxu0 %v8018_v23  ;;  %v8075_v23 = vld [vmem:[#allocation5 + $0x2c8] ss:$16 sps:$4 sm:$0xff]  }
 0x31c   :  { %5846 = vmatprep.subr.bf16.mxu0 %v8026_v8  ;;  %v8086_v8 = vld [vmem:[#allocation5 + $0x42c] ss:$16 sps:$4 sm:$0xff]  }
 0x31f   :  { %5847 = vmatpush2.bf16.msra.mxu0 %v8024_v59  ;;  %v8083_v59 = vld [vmem:[#allocation5 + $0x2ac] ss:$16 sps:$4 sm:$0xff]  }
 0x320   :  { %5848 = vmatprep.subr.bf16.mxu0 %v8032_v26  ;;  %v8084_v26 = vld [vmem:[#allocation5 + $0x428] ss:$16 sps:$4 sm:$0xff]  }
 0x323   :  { %5849 = vmatpush2.bf16.msra.mxu0 %v8030_v0  ;;  %v8081_v0 = vld [vmem:[#allocation5 + $0x2a8] ss:$16 sps:$4 sm:$0xff]  }
 0x324   :  { %5850 = vmatprep.subr.bf16.mxu0 %v8038_v9  ;;  %v8092_v9 = vld [vmem:[#allocation5 + $0x40c] ss:$16 sps:$4 sm:$0xff]  }
 0x327   :  { %5851 = vmatpush2.bf16.msra.mxu0 %v8036_v6  ;;  %v8087_v6 = vld [vmem:[#allocation5 + $0x288] ss:$16 sps:$4 sm:$0xff]  }
 0x328   :  { %5852 = vmatprep.subr.bf16.mxu0 %v8044_v19  ;;  %v8098_v19 = vld [vmem:[#allocation5 + $0x5ec] ss:$16 sps:$4 sm:$0xff]  }
 0x32b   :  { %5853 = vmatpush2.bf16.msra.mxu0 %v8042_v14  ;;  %v8104_v14 = vld [vmem:[#allocation5 + $0x5cc] ss:$16 sps:$4 sm:$0xff]  }
 0x32c   :  { %5904 = vmatprep.subr.bf16.mxu0 %v8050_v15  ;;  %v8101_v15 = vld [vmem:[#allocation5 + $0x24c] ss:$16 sps:$4 sm:$0xff]  }
 0x32e   :  { %v3918_v18 = vpop.f32.mrf.mxu0  ;;  %5855 = vmatmul.mubr.bf16.vlgmr.msra.gmra.mxu0 %v8781_v41 }
 0x32f   :  { %v3919_v51 = vadd.f32 %v3918_v18, %v3878_v25  ;;  %5905 = vmatpush1.bf16.msra.mxu0 %v8048_v34  ;;  %5936 = vmatprep.mubr.bf16.mxu0 %v8796_v20  ;;  %v8068_v20 = vld [vmem:[#allocation5 + $0x48c] ss:$16 sps:$4 sm:$0xff]   ;;  %v8108_v25 = vld [vmem:[#allocation5 + $0x5a8] ss:$16 sps:$4 sm:$0xff]  }
 0x330   :  { %v3959_v27 = vpop.f32.mrf.mxu1  ;;  %v3920_v22 = vpop.f32.mrf.mxu0  ;;  %5906 = vmatprep.subr.bf16.mxu0 %v8056_v45  ;;  %v8110_v34 = vld [vmem:[#allocation5 + $0x5ac] ss:$16 sps:$4 sm:$0xff]   ;;  %v8105_v18 = vld [vmem:[#allocation5 + $0x228] ss:$16 sps:$4 sm:$0xff]  }
 0x331   :  { %v3960_v30 = vadd.f32 %v3959_v27, %v3919_v51  ;;  %v3921_v32 = vadd.f32 %v3920_v22, %v3880_v44  ;;  %v8107_v45 = vld [vmem:[#allocation5 + $0x22c] ss:$16 sps:$4 sm:$0xff]   ;;  %v8114_v27 = vld [vmem:[#allocation5 + $0x588] ss:$16 sps:$4 sm:$0xff]  }
 0x332   :  { %v3961_v33 = vpop.f32.mrf.mxu1  ;;  %v3922_v28 = vpop.f32.mrf.mxu0  ;;  %v8116_v44 = vld [vmem:[#allocation5 + $0x58c] ss:$16 sps:$4 sm:$0xff]  }
 0x333   :  { %vm3972_vm6 = vcmp.ge.f32.partialorder %v3960_v30, 0.0  ;;  %v3980_v38 = vmul.f32 0.2, %v3960_v30  ;;  %v3962_v41 = vadd.f32 %v3961_v33, %v3921_v32  ;;  %5907 = vmatpush1.bf16.msra.mxu0 %v8054_v31  ;;  %v8113_v51 = vld [vmem:[#allocation5 + $0x20c] ss:$16 sps:$4 sm:$0xff]  }
 0x334   :  { %v3963_v39 = vpop.f32.mrf.mxu1  ;;  %v3923_v46 = vpop.f32.mrf.mxu0  ;;  %5908 = vmatprep.subr.bf16.mxu0 %v8062_v43  ;;  %v8111_v31 = vld [vmem:[#allocation5 + $0x208] ss:$16 sps:$4 sm:$0xff]   ;;  %v8122_v22 = vld [vmem:[#allocation5 + $0x56c] ss:$16 sps:$4 sm:$0xff]  }
 0x335   :  { %v3988_v47 = vsel %vm3972_vm6, %v3960_v30, %v3980_v38  ;;  %vm3973_vm7 = vcmp.ge.f32.partialorder %v3962_v41, 0.0  ;;  %v3981_v48 = vmul.f32 0.2, %v3962_v41  ;;  %v8119_v43 = vld [vmem:[#allocation5 + $0x3ec] ss:$16 sps:$4 sm:$0xff]  }
 0x336   :  { %v3964_v2 = vpop.f32.mrf.mxu1  ;;  %v4039_v50 = vmul.f32 %v4020_v36, %v3988_v47  ;;  %v8120_v30 = vld [vmem:[#allocation5 + $0x568] ss:$16 sps:$4 sm:$0xff]   ;;  %v8128_v33 = vld [vmem:[#allocation5 + $0x54c] ss:$16 sps:$4 sm:$0xff]  }
 0x337   :  { %v3989_v52 = vsel %vm3973_vm7, %v3962_v41, %v3981_v48  ;;  %5909 = vmatpush1.bf16.msra.mxu0 %v8060_v54  ;;  %v8117_v32 = vld [vmem:[#allocation5 + $0x3e8] ss:$16 sps:$4 sm:$0xff]   ;;  %v8125_v36 = vld [vmem:[#allocation5 + $0x3cc] ss:$16 sps:$4 sm:$0xff]  }
 0x338   :  { %v4040_v56 = vmul.f32 %v4024_v42, %v3989_v52  ;;  %5910 = vmatprep.subr.bf16.mxu0 %v8068_v20  ;;  %v4090_v57 = vadd.f32 %v4071_v60, %v4039_v50  ;;  %v8126_v28 = vld [vmem:[#allocation5 + $0x548] ss:$16 sps:$4 sm:$0xff]   ;;  %v8134_v41 = vld [vmem:[#allocation5 + $0x52c] ss:$16 sps:$4 sm:$0xff]  }
 0x339   :  { %v8123_v38 = vld [vmem:[#allocation5 + $0x3c8] ss:$16 sps:$4 sm:$0xff]   ;;  %v8131_v39 = vld [vmem:[#allocation5 + $0x3ac] ss:$16 sps:$4 sm:$0xff]  }
 0x33a   :  { %v4091_v21 = vadd.f32 %v4075_v61, %v4040_v56  ;;  %v8834_v62 = vpack.c.bf16 %v4090_v57, %v4090_v57  ;;  %v8132_v54 = vld [vmem:[#allocation5 + $0x528] ss:$16 sps:$4 sm:$0xff]   ;;  %v8140_v46 = vld [vmem:[#allocation5 + $0x50c] ss:$16 sps:$4 sm:$0xff]  }
 0x33b   :  { %5911 = vmatpush1.bf16.msra.mxu0 %v8066_v53  ;;  %v8129_v42 = vld [vmem:[#allocation5 + $0x3a8] ss:$16 sps:$4 sm:$0xff]   ;;  %v8137_v20 = vld [vmem:[#allocation5 + $0x38c] ss:$16 sps:$4 sm:$0xff]  }
 0x33c   :  { %v8832_v17 = vpack.c.bf16 %v4091_v21, %v4091_v21  ;;  %5912 = vmatprep.subr.bf16.mxu0 %v8074_v12  ;;  %v8135_v47 = vld [vmem:[#allocation5 + $0x388] ss:$16 sps:$4 sm:$0xff]   ;;  %v8203_v60 = vld [vmem:[#allocation7 + $0x74] ss:$8 sps:$4 sm:$0xff]   ;;  %v8206_v56 = vld [vmem:[#allocation7 + $0x64] ss:$8 sps:$4 sm:$0xff]  }
 0x33d   :  { %v8138_v48 = vld [vmem:[#allocation5 + $0x508] ss:$16 sps:$4 sm:$0xff]   ;;  %v8143_v50 = vld [vmem:[#allocation5 + $0x36c] ss:$16 sps:$4 sm:$0xff]  }
 0x33e   :  { %5813 = vmatprep.mubr.bf16.mxu1 %v8832_v17  ;;  %v8839_v2 = vld [vmem:[#allocation11] ss:$4 sm:$0xf]  ;;  %v8201_v52 = vld [vmem:[#allocation7 + $0x70] ss:$8 sps:$4 sm:$0xff]  }
 0x33f   :  { %5814 = vmatmul.mubr.bf16.vlgmr.msra.gmra.mxu1 %v8834_v62  ;;  %5913 = vmatpush1.bf16.msra.mxu0 %v8072_v5  ;;  %v4361_v61 = vrot.slane %v8839_v2, %v8664_v29  ;;  %v8141_v53 = vld [vmem:[#allocation5 + $0x368] ss:$16 sps:$4 sm:$0xff]   ;;  %v4365_v12 = vrot.slane %v8839_v2, %v8669_v35  ;;  %v8146_v57 = vld [vmem:[#allocation5 + $0x34c] ss:$16 sps:$4 sm:$0xff]  }
 0x340   :  { %5864 = vmatpush1.bf16.msra.mxu1 %v8069_v58  ;;  %5895 = vmatprep.mubr.bf16.mxu1 %v8751_v63  ;;  %v8095_v63 = vld [vmem:[#allocation5 + $0x26c] ss:$16 sps:$4 sm:$0xff]  }
 0x341   :  { %5865 = vmatprep.subr.bf16.mxu1 %v8077_v1  ;;  %5914 = vmatprep.subr.bf16.mxu0 %v8080_v4  ;;  %v8204_v1 = vld [vmem:[#allocation7 + $0x60] ss:$8 sps:$4 sm:$0xff]  }
 0x343   :  { %5915 = vmatpush1.bf16.msra.mxu0 %v8078_v40  ;;  %v8144_v40 = vld [vmem:[#allocation5 + $0x348] ss:$16 sps:$4 sm:$0xff]  }
 0x344   :  { %5866 = vmatpush1.bf16.msra.mxu1 %v8075_v23  ;;  %5916 = vmatprep.subr.bf16.mxu0 %v8086_v8  ;;  %v8209_v23 = vld [vmem:[#allocation7 + $0x54] ss:$8 sps:$4 sm:$0xff]  }
 0x345   :  { %5867 = vmatprep.subr.bf16.mxu1 %v8083_v59 }
 0x347   :  { %5917 = vmatpush1.bf16.msra.mxu0 %v8084_v26 }
 0x348   :  { %5868 = vmatpush1.bf16.msra.mxu1 %v8081_v0  ;;  %5918 = vmatprep.subr.bf16.mxu0 %v8092_v9  ;;  %v8149_v0 = vld [vmem:[#allocation5 + $0x32c] ss:$16 sps:$4 sm:$0xff]  }
 0x349   :  { %5869 = vmatprep.subr.bf16.mxu1 %v8089_v10 }
 0x34b   :  { %5919 = vmatpush1.bf16.msra.mxu0 %v8090_v49 }
 0x34c   :  { %5870 = vmatpush1.bf16.msra.mxu1 %v8087_v6  ;;  %5920 = vmatprep.subr.bf16.mxu0 %v8098_v19  ;;  %v8147_v19 = vld [vmem:[#allocation5 + $0x328] ss:$16 sps:$4 sm:$0xff]  }
 0x34d   :  { %5871 = vmatprep.subr.bf16.mxu1 %v8095_v63  ;;  %v8212_v63 = vld [vmem:[#allocation7 + $0x44] ss:$8 sps:$4 sm:$0xff]  }
 0x34f   :  { %5921 = vmatpush2.bf16.msra.mxu0 %v8096_v11 }
 0x350   :  { %5872 = vmatpush1.bf16.msra.mxu1 %v8093_v13  ;;  %5922 = vmatprep.subr.bf16.mxu0 %v8104_v14  ;;  %v8152_v13 = vld [vmem:[#allocation5 + $0x30c] ss:$16 sps:$4 sm:$0xff]   ;;  %v8210_v14 = vld [vmem:[#allocation7 + $0x40] ss:$8 sps:$4 sm:$0xff]  }
 0x351   :  { %5873 = vmatprep.subr.bf16.mxu1 %v8101_v15  ;;  %v8150_v15 = vld [vmem:[#allocation5 + $0x308] ss:$16 sps:$4 sm:$0xff]  }
 0x353   :  { %5923 = vmatpush2.bf16.msra.mxu0 %v8102_v16  ;;  %v8215_v16 = vld [vmem:[#allocation7 + $0x34] ss:$8 sps:$4 sm:$0xff]  }
 0x354   :  { %5874 = vmatpush1.bf16.msra.mxu1 %v8099_v24  ;;  %5924 = vmatprep.subr.bf16.mxu0 %v8110_v34  ;;  %v8155_v24 = vld [vmem:[#allocation5 + $0x6ec] ss:$16 sps:$4 sm:$0xff]   ;;  %v8213_v34 = vld [vmem:[#allocation7 + $0x30] ss:$8 sps:$4 sm:$0xff]  }
 0x355   :  { %5875 = vmatprep.subr.bf16.mxu1 %v8107_v45  ;;  %v8153_v45 = vld [vmem:[#allocation5 + $0x6e8] ss:$16 sps:$4 sm:$0xff]  }
 0x357   :  { %5925 = vmatpush2.bf16.msra.mxu0 %v8108_v25  ;;  %v8158_v25 = vld [vmem:[#allocation5 + $0x6cc] ss:$16 sps:$4 sm:$0xff]  }
 0x358   :  { %5876 = vmatpush1.bf16.msra.mxu1 %v8105_v18  ;;  %5926 = vmatprep.subr.bf16.mxu0 %v8116_v44  ;;  %v8218_v18 = vld [vmem:[#allocation7 + $0x24] ss:$8 sps:$4 sm:$0xff]   ;;  %v8216_v44 = vld [vmem:[#allocation7 + $0x20] ss:$8 sps:$4 sm:$0xff]  }
 0x359   :  { %5877 = vmatprep.subr.bf16.mxu1 %v8113_v51  ;;  %v8156_v51 = vld [vmem:[#allocation5 + $0x6c8] ss:$16 sps:$4 sm:$0xff]  }
 0x35b   :  { %5927 = vmatpush2.bf16.msra.mxu0 %v8114_v27  ;;  %v8221_v27 = vld [vmem:[#allocation7 + $0x14] ss:$8 sps:$4 sm:$0xff]  }
 0x35c   :  { %5878 = vmatpush1.bf16.msra.mxu1 %v8111_v31  ;;  %5928 = vmatprep.subr.bf16.mxu0 %v8122_v22  ;;  %v8161_v31 = vld [vmem:[#allocation5 + $0x6ac] ss:$16 sps:$4 sm:$0xff]   ;;  %v8219_v22 = vld [vmem:[#allocation7 + $0x10] ss:$8 sps:$4 sm:$0xff]  }
 0x35d   :  { %5879 = vmatprep.subr.bf16.mxu1 %v8119_v43  ;;  %v8159_v43 = vld [vmem:[#allocation5 + $0x6a8] ss:$16 sps:$4 sm:$0xff]  }
 0x35f   :  { %5929 = vmatpush2.bf16.msra.mxu0 %v8120_v30  ;;  %v8224_v30 = vld [vmem:[#allocation7 + $0x4] ss:$8 sps:$4 sm:$0xff]  }
 0x360   :  { %5880 = vmatpush2.bf16.msra.mxu1 %v8117_v32  ;;  %5930 = vmatprep.subr.bf16.mxu0 %v8128_v33  ;;  %v8164_v32 = vld [vmem:[#allocation5 + $0x68c] ss:$16 sps:$4 sm:$0xff]   ;;  %v8162_v33 = vld [vmem:[#allocation5 + $0x688] ss:$16 sps:$4 sm:$0xff]  }
 0x361   :  { %5881 = vmatprep.subr.bf16.mxu1 %v8125_v36  ;;  %v8227_v36 = vld [vmem:[#allocation7 + $0xf4] ss:$8 sps:$4 sm:$0xff]  }
 0x363   :  { %5931 = vmatpush2.bf16.msra.mxu0 %v8126_v28  ;;  %v8225_v28 = vld [vmem:[#allocation7 + $0xf0] ss:$8 sps:$4 sm:$0xff]  }
 0x364   :  { %5882 = vmatpush2.bf16.msra.mxu1 %v8123_v38  ;;  %5932 = vmatprep.subr.bf16.mxu0 %v8134_v41  ;;  %v8165_v38 = vld [vmem:[#allocation5 + $0x668] ss:$16 sps:$4 sm:$0xff]   ;;  %v8230_v41 = vld [vmem:[#allocation7 + $0xe4] ss:$8 sps:$4 sm:$0xff]  }
 0x365   :  { %5883 = vmatprep.subr.bf16.mxu1 %v8131_v39  ;;  %v8170_v39 = vld [vmem:[#allocation5 + $0x64c] ss:$16 sps:$4 sm:$0xff]  }
 0x367   :  { %5933 = vmatpush2.bf16.msra.mxu0 %v8132_v54  ;;  %v8228_v54 = vld [vmem:[#allocation7 + $0xe0] ss:$8 sps:$4 sm:$0xff]  }
 0x368   :  { %5884 = vmatpush2.bf16.msra.mxu1 %v8129_v42  ;;  %5934 = vmatprep.subr.bf16.mxu0 %v8140_v46  ;;  %v8168_v42 = vld [vmem:[#allocation5 + $0x648] ss:$16 sps:$4 sm:$0xff]   ;;  %v8233_v46 = vld [vmem:[#allocation7 + $0xd4] ss:$8 sps:$4 sm:$0xff]  }
 0x369   :  { %5885 = vmatprep.subr.bf16.mxu1 %v8137_v20  ;;  %v8173_v20 = vld [vmem:[#allocation5 + $0x62c] ss:$16 sps:$4 sm:$0xff]  }
 0x36b   :  { %5935 = vmatpush2.bf16.msra.mxu0 %v8138_v48  ;;  %v8171_v48 = vld [vmem:[#allocation5 + $0x628] ss:$16 sps:$4 sm:$0xff]  }
 0x36c   :  { %5886 = vmatpush2.bf16.msra.mxu1 %v8135_v47  ;;  %6452 = vmatprep.subr.bf16.mxu0 %v8203_v60  ;;  %v8231_v47 = vld [vmem:[#allocation7 + $0xd0] ss:$8 sps:$4 sm:$0xff]   ;;  %v8236_v60 = vld [vmem:[#allocation7 + $0xc4] ss:$8 sps:$4 sm:$0xff]  }
 0x36d   :  { %5887 = vmatprep.subr.bf16.mxu1 %v8143_v50  ;;  %v8176_v50 = vld [vmem:[#allocation5 + $0x60c] ss:$16 sps:$4 sm:$0xff]  }
 0x36e   :  { %v5692_v21 = vpop.f32.mrf.mxu0  ;;  %5937 = vmatmul.mubr.bf16.vlgmr.msra.gmra.mxu0 %v8806_v37  ;;  %v8207_v37 = vld [vmem:[#allocation7 + $0x50] ss:$8 sps:$4 sm:$0xff]  }
 0x36f   :  { %v5693_v5 = vadd.f32 %v5692_v21, %v4361_v61  ;;  %6453 = vmatpush1.bf16.msra.mxu0 %v8201_v52  ;;  %v8234_v61 = vld [vmem:[#allocation7 + $0xc0] ss:$8 sps:$4 sm:$0xff]   ;;  %v8242_v21 = vld [vmem:[#allocation7 + $0xa4] ss:$8 sps:$4 sm:$0xff]  }
 0x370   :  { %v5733_v58 = vpop.f32.mrf.mxu1  ;;  %5888 = vmatpush2.bf16.msra.mxu1 %v8141_v53  ;;  %v5694_v4 = vpop.f32.mrf.mxu0  ;;  %6454 = vmatprep.subr.bf16.mxu0 %v8206_v56  ;;  %v8174_v52 = vld [vmem:[#allocation5 + $0x608] ss:$16 sps:$4 sm:$0xff]   ;;  %v8239_v53 = vld [vmem:[#allocation7 + $0xb4] ss:$8 sps:$4 sm:$0xff]  }
 0x371   :  { %v8846_v8 = vadd.f32 %v5733_v58, %v5693_v5  ;;  %v5695_v59 = vadd.f32 %v5694_v4, %v4365_v12  ;;  %5889 = vmatprep.subr.bf16.mxu1 %v8146_v57  ;;  %v8179_v56 = vld [vmem:[#allocation5 + $0x7ec] ss:$16 sps:$4 sm:$0xff]   ;;  %v8237_v12 = vld [vmem:[#allocation7 + $0xb0] ss:$8 sps:$4 sm:$0xff]   ;;  %v8240_v58 = vld [vmem:[#allocation7 + $0xa0] ss:$8 sps:$4 sm:$0xff]  }
 0x372   :  { %v5735_v26 = vpop.f32.mrf.mxu1  ;;  %v5696_v9 = vpop.f32.mrf.mxu0  ;;  %v8177_v57 = vld [vmem:[#allocation5 + $0x7e8] ss:$16 sps:$4 sm:$0xff]   ;;  %v8182_v5 = vld [vmem:[#allocation5 + $0x7cc] ss:$16 sps:$4 sm:$0xff]  }
 0x373   :  { %v8848_v10 = vadd.f32 %v5735_v26, %v5695_v59  ;;  %6455 = vmatpush1.bf16.msra.mxu0 %v8204_v1  ;;  %v8180_v1 = vld [vmem:[#allocation5 + $0x7c8] ss:$16 sps:$4 sm:$0xff]   ;;  %v8245_v4 = vld [vmem:[#allocation7 + $0x94] ss:$8 sps:$4 sm:$0xff]   ;;  %v8248_v26 = vld [vmem:[#allocation7 + $0x84] ss:$8 sps:$4 sm:$0xff]  }
 0x374   :  { %v5737_v49 = vpop.f32.mrf.mxu1  ;;  %5890 = vmatpush2.bf16.msra.mxu1 %v8144_v40  ;;  %v5697_v6 = vpop.f32.mrf.mxu0  ;;  %6456 = vmatprep.subr.bf16.mxu0 %v8209_v23  ;;  %v8185_v40 = vld [vmem:[#allocation5 + $0x7ac] ss:$16 sps:$4 sm:$0xff]   ;;  %v8243_v23 = vld [vmem:[#allocation7 + $0x90] ss:$8 sps:$4 sm:$0xff]   ;;  %v8246_v9 = vld [vmem:[#allocation7 + $0x80] ss:$8 sps:$4 sm:$0xff]  }
 0x375   :  { %5891 = vmatprep.subr.bf16.mxu1 %v8149_v0  ;;  %v8183_v59 = vld [vmem:[#allocation5 + $0x7a8] ss:$16 sps:$4 sm:$0xff]   ;;  %v8188_v0 = vld [vmem:[#allocation5 + $0x78c] ss:$16 sps:$4 sm:$0xff]  }
 0x376   :  { %v5738_v11 = vpop.f32.mrf.mxu1  ;;  %v8186_v49 = vld [vmem:[#allocation5 + $0x788] ss:$16 sps:$4 sm:$0xff]  }
 0x377   :  { %6457 = vmatpush1.bf16.msra.mxu0 %v8207_v37  ;;  %v8191_v37 = vld [vmem:[#allocation5 + $0x76c] ss:$16 sps:$4 sm:$0xff]   ;;  %v8189_v6 = vld [vmem:[#allocation5 + $0x768] ss:$16 sps:$4 sm:$0xff]  }
 0x378   :  { %5892 = vmatpush2.bf16.msra.mxu1 %v8147_v19  ;;  %6458 = vmatprep.subr.bf16.mxu0 %v8212_v63  ;;  %v8194_v19 = vld [vmem:[#allocation5 + $0x74c] ss:$16 sps:$4 sm:$0xff]  }
 0x379   :  { %5893 = vmatprep.subr.bf16.mxu1 %v8152_v13 }
 0x37b   :  { %6459 = vmatpush1.bf16.msra.mxu0 %v8210_v14  ;;  %v8192_v14 = vld [vmem:[#allocation5 + $0x748] ss:$16 sps:$4 sm:$0xff]  }
 0x37c   :  { %5894 = vmatpush2.bf16.msra.mxu1 %v8150_v15  ;;  %6460 = vmatprep.subr.bf16.mxu0 %v8215_v16  ;;  %v8197_v16 = vld [vmem:[#allocation5 + $0x72c] ss:$16 sps:$4 sm:$0xff]  }
 0x37d   :  { %5945 = vmatprep.subr.bf16.mxu1 %v8155_v24 }
 0x37f   :  { %5896 = vmatmul.mubr.bf16.vlgmr.msra.gmra.mxu1 %v8783_v55  ;;  %6461 = vmatpush1.bf16.msra.mxu0 %v8213_v34  ;;  %v8222_v55 = vld [vmem:[#allocation7] ss:$8 sps:$4 sm:$0xff]  }
 0x380   :  { %5946 = vmatpush1.bf16.msra.mxu1 %v8153_v45  ;;  %5977 = vmatprep.mubr.bf16.mxu1 %v8832_v17  ;;  %v8167_v17 = vld [vmem:[#allocation5 + $0x66c] ss:$16 sps:$4 sm:$0xff]   ;;  %v8195_v45 = vld [vmem:[#allocation5 + $0x728] ss:$16 sps:$4 sm:$0xff]  }
 0x381   :  { %5947 = vmatprep.subr.bf16.mxu1 %v8158_v25  ;;  %6462 = vmatprep.subr.bf16.mxu0 %v8218_v18  ;;  %v8200_v25 = vld [vmem:[#allocation5 + $0x70c] ss:$16 sps:$4 sm:$0xff]   ;;  %v8198_v18 = vld [vmem:[#allocation5 + $0x708] ss:$16 sps:$4 sm:$0xff]  }
 0x383   :  { %6463 = vmatpush1.bf16.msra.mxu0 %v8216_v44  ;;  %v8251_v44 = vld [vmem:[#allocation7 + $0x174] ss:$8 sps:$4 sm:$0xff]  }
 0x384   :  { %5948 = vmatpush1.bf16.msra.mxu1 %v8156_v51  ;;  %6464 = vmatprep.subr.bf16.mxu0 %v8221_v27  ;;  %v8254_v51 = vld [vmem:[#allocation7 + $0x164] ss:$8 sps:$4 sm:$0xff]   ;;  %v8257_v27 = vld [vmem:[#allocation7 + $0x154] ss:$8 sps:$4 sm:$0xff]  }
 0x385   :  { %5949 = vmatprep.subr.bf16.mxu1 %v8161_v31  ;;  %v8255_v31 = vld [vmem:[#allocation7 + $0x150] ss:$8 sps:$4 sm:$0xff]  }
 0x387   :  { %6465 = vmatpush1.bf16.msra.mxu0 %v8219_v22  ;;  %v8260_v22 = vld [vmem:[#allocation7 + $0x144] ss:$8 sps:$4 sm:$0xff]  }
 0x388   :  { %5950 = vmatpush1.bf16.msra.mxu1 %v8159_v43  ;;  %6466 = vmatprep.subr.bf16.mxu0 %v8224_v30  ;;  %v8258_v43 = vld [vmem:[#allocation7 + $0x140] ss:$8 sps:$4 sm:$0xff]   ;;  %v8263_v30 = vld [vmem:[#allocation7 + $0x134] ss:$8 sps:$4 sm:$0xff]  }
 0x389   :  { %5951 = vmatprep.subr.bf16.mxu1 %v8164_v32  ;;  %v8261_v32 = vld [vmem:[#allocation7 + $0x130] ss:$8 sps:$4 sm:$0xff]  }
 0x38b   :  { %6467 = vmatpush1.bf16.msra.mxu0 %v8222_v55  ;;  %v8264_v55 = vld [vmem:[#allocation7 + $0x120] ss:$8 sps:$4 sm:$0xff]  }
 0x38c   :  { %5952 = vmatpush1.bf16.msra.mxu1 %v8162_v33  ;;  %6468 = vmatprep.subr.bf16.mxu0 %v8227_v36  ;;  %v8269_v33 = vld [vmem:[#allocation7 + $0x114] ss:$8 sps:$4 sm:$0xff]   ;;  %v8267_v36 = vld [vmem:[#allocation7 + $0x110] ss:$8 sps:$4 sm:$0xff]  }
 0x38d   :  { %5953 = vmatprep.subr.bf16.mxu1 %v8167_v17  ;;  %v8272_v17 = vld [vmem:[#allocation7 + $0x104] ss:$8 sps:$4 sm:$0xff]  }
 0x38f   :  { %6469 = vmatpush2.bf16.msra.mxu0 %v8225_v28  ;;  %v8270_v28 = vld [vmem:[#allocation7 + $0x100] ss:$8 sps:$4 sm:$0xff]  }
 0x390   :  { %5954 = vmatpush1.bf16.msra.mxu1 %v8165_v38  ;;  %6470 = vmatprep.subr.bf16.mxu0 %v8230_v41  ;;  %v8275_v38 = vld [vmem:[#allocation7 + $0x1f4] ss:$8 sps:$4 sm:$0xff]   ;;  %v8273_v41 = vld [vmem:[#allocation7 + $0x1f0] ss:$8 sps:$4 sm:$0xff]  }
 0x391   :  { %5955 = vmatprep.subr.bf16.mxu1 %v8170_v39  ;;  %v8278_v39 = vld [vmem:[#allocation7 + $0x1e4] ss:$8 sps:$4 sm:$0xff]  }
 0x393   :  { %6471 = vmatpush2.bf16.msra.mxu0 %v8228_v54  ;;  %v8276_v54 = vld [vmem:[#allocation7 + $0x1e0] ss:$8 sps:$4 sm:$0xff]  }
 0x394   :  { %5956 = vmatpush1.bf16.msra.mxu1 %v8168_v42  ;;  %6472 = vmatprep.subr.bf16.mxu0 %v8233_v46  ;;  %v8281_v42 = vld [vmem:[#allocation7 + $0x1d4] ss:$8 sps:$4 sm:$0xff]   ;;  %v8279_v46 = vld [vmem:[#allocation7 + $0x1d0] ss:$8 sps:$4 sm:$0xff]  }
 0x395   :  { %5957 = vmatprep.subr.bf16.mxu1 %v8173_v20  ;;  %v8284_v20 = vld [vmem:[#allocation7 + $0x1c4] ss:$8 sps:$4 sm:$0xff]  }
 0x397   :  { %6473 = vmatpush2.bf16.msra.mxu0 %v8231_v47 }
 0x398   :  { %5958 = vmatpush1.bf16.msra.mxu1 %v8171_v48  ;;  %6474 = vmatprep.subr.bf16.mxu0 %v8236_v60  ;;  %v8282_v60 = vld [vmem:[#allocation7 + $0x1c0] ss:$8 sps:$4 sm:$0xff]  }
 0x399   :  { %5959 = vmatprep.subr.bf16.mxu1 %v8176_v50  ;;  %v8287_v50 = vld [vmem:[#allocation7 + $0x1b4] ss:$8 sps:$4 sm:$0xff]  }
 0x39b   :  { %6475 = vmatpush2.bf16.msra.mxu0 %v8234_v61 }
 0x39c   :  { %5960 = vmatpush1.bf16.msra.mxu1 %v8174_v52  ;;  %6476 = vmatprep.subr.bf16.mxu0 %v8239_v53  ;;  %v8285_v53 = vld [vmem:[#allocation7 + $0x1b0] ss:$8 sps:$4 sm:$0xff]  }
 0x39d   :  { %5961 = vmatprep.subr.bf16.mxu1 %v8179_v56  ;;  %v8859_v56 = vld [vmem:[#allocation11 + $0x1] ss:$4 sm:$0xf] }
 0x39f   :  { %6477 = vmatpush2.bf16.msra.mxu0 %v8237_v12 }
 0x3a0   :  { %5962 = vmatpush2.bf16.msra.mxu1 %v8177_v57  ;;  %6478 = vmatprep.subr.bf16.mxu0 %v8242_v21  ;;  %v6004_v21 = vrot.slane %v8859_v56, %v8664_v29 }
 0x3a1   :  { %5963 = vmatprep.subr.bf16.mxu1 %v8182_v5 }
 0x3a3   :  { %6479 = vmatpush2.bf16.msra.mxu0 %v8240_v58  ;;  %v8864_v58 = vld [vmem:[#allocation11 + $0x2] ss:$4 sm:$0xf] }
 0x3a4   :  { %5964 = vmatpush2.bf16.msra.mxu1 %v8180_v1  ;;  %6480 = vmatprep.subr.bf16.mxu0 %v8245_v4  ;;  %v8290_v1 = vld [vmem:[#allocation7 + $0x1a4] ss:$8 sps:$4 sm:$0xff]  }
 0x3a5   :  { %5965 = vmatprep.subr.bf16.mxu1 %v8185_v40 }
 0x3a7   :  { %6481 = vmatpush2.bf16.msra.mxu0 %v8243_v23  ;;  %v8288_v23 = vld [vmem:[#allocation7 + $0x1a0] ss:$8 sps:$4 sm:$0xff]  }
 0x3a8   :  { %5966 = vmatpush2.bf16.msra.mxu1 %v8183_v59  ;;  %6482 = vmatprep.subr.bf16.mxu0 %v8248_v26  ;;  %v6008_v59 = vrot.slane %v8859_v56, %v8669_v35 }
 0x3a9   :  { %5967 = vmatprep.subr.bf16.mxu1 %v8188_v0 }
 0x3ab   :  { %6483 = vmatpush2.bf16.msra.mxu0 %v8246_v9 }
 0x3ac   :  { %5968 = vmatpush2.bf16.msra.mxu1 %v8186_v49  ;;  %v6031_v49 = vrot.slane %v8864_v58, %v8664_v29 }
 0x3ad   :  { %5969 = vmatprep.subr.bf16.mxu1 %v8191_v37 }
 0x3ae   :  { %v5774_v63 = vpop.f32.mrf.mxu0 }
 0x3af   :  { %v8853_v11 = vadd.f32 %v5774_v63, %v8846_v8  ;;  %v8249_v8 = vld [vmem:[#allocation7 + $0x170] ss:$8 sps:$4 sm:$0xff]   ;;  %v8293_v63 = vld [vmem:[#allocation7 + $0x194] ss:$8 sps:$4 sm:$0xff]  }
 0x3b0   :  { %5970 = vmatpush2.bf16.msra.mxu1 %v8189_v6  ;;  %v5776_v13 = vpop.f32.mrf.mxu0 }
 0x3b1   :  { %v8856_v15 = vadd.f32 %v5776_v13, %v8848_v10  ;;  %5971 = vmatprep.subr.bf16.mxu1 %v8194_v19  ;;  %v8252_v10 = vld [vmem:[#allocation7 + $0x160] ss:$8 sps:$4 sm:$0xff]   ;;  %v6035_v19 = vrot.slane %v8864_v58, %v8669_v35  ;;  %v8291_v13 = vld [vmem:[#allocation7 + $0x190] ss:$8 sps:$4 sm:$0xff]  }
 0x3b2   :  { %v5778_v24 = vpop.f32.mrf.mxu0 }
 0x3b3   :  { %v8294_v24 = vld [vmem:[#allocation7 + $0x180] ss:$8 sps:$4 sm:$0xff]  }
 0x3b4   :  { %5972 = vmatpush2.bf16.msra.mxu1 %v8192_v14  ;;  %v5779_v34 = vpop.f32.mrf.mxu0 }
 0x3b5   :  { %5973 = vmatprep.subr.bf16.mxu1 %v8197_v16 }
 0x3b8   :  { %5974 = vmatpush2.bf16.msra.mxu1 %v8195_v45 }
 0x3b9   :  { %5975 = vmatprep.subr.bf16.mxu1 %v8200_v25 }
 0x3bc   :  { %5976 = vmatpush2.bf16.msra.mxu1 %v8198_v18 }
 0x3bd   :  { %6493 = vmatprep.subr.bf16.mxu1 %v8251_v44 }
 0x3bf   :  { %5978 = vmatmul.mubr.bf16.vlgmr.msra.gmra.mxu1 %v8834_v62  ;;  %v8266_v62 = vld [vmem:[#allocation7 + $0x124] ss:$8 sps:$4 sm:$0xff]  }
 0x3c0   :  { %6494 = vmatpush1.bf16.msra.mxu1 %v8249_v8 }
 0x3c1   :  { %6495 = vmatprep.subr.bf16.mxu1 %v8254_v51 }
 0x3c4   :  { %6496 = vmatpush1.bf16.msra.mxu1 %v8252_v10  ;;  %v4369_v10 = vrot.slane %v8839_v2, %v8694_v3 }
 0x3c5   :  { %6497 = vmatprep.subr.bf16.mxu1 %v8257_v27  ;;  %v4373_v27 = vrot.slane %v8839_v2, %v8697_v7  ;;  %v8302_v2 = vld [vmem:[#allocation8 + $0x28] sm:$0xff]  }
 0x3c8   :  { %6498 = vmatpush1.bf16.msra.mxu1 %v8255_v31 }
 0x3c9   :  { %6499 = vmatprep.subr.bf16.mxu1 %v8260_v22 }
 0x3cc   :  { %6500 = vmatpush1.bf16.msra.mxu1 %v8258_v43 }
 0x3cd   :  { %6501 = vmatprep.subr.bf16.mxu1 %v8263_v30 }
 0x3d0   :  { %6502 = vmatpush1.bf16.msra.mxu1 %v8261_v32 }
 0x3d1   :  { %6503 = vmatprep.subr.bf16.mxu1 %v8266_v62 }
 0x3d4   :  { %6504 = vmatpush1.bf16.msra.mxu1 %v8264_v55 }
 0x3d5   :  { %6505 = vmatprep.subr.bf16.mxu1 %v8269_v33 }
 0x3d8   :  { %6506 = vmatpush1.bf16.msra.mxu1 %v8267_v36 }
 0x3d9   :  { %6507 = vmatprep.subr.bf16.mxu1 %v8272_v17 }
 0x3dc   :  { %6508 = vmatpush1.bf16.msra.mxu1 %v8270_v28  ;;  %v8297_v28 = vld [vmem:[#allocation8 + $0x78] sm:$0xff]  }
 0x3dd   :  { %6509 = vmatprep.subr.bf16.mxu1 %v8275_v38  ;;  %v8298_v38 = vld [vmem:[#allocation8 + $0x38] sm:$0xff]   ;;  %7722 = vmatprep.subr.bf16.mxu0 %v8297_v28 }
 0x3e0   :  { %6510 = vmatpush2.bf16.msra.mxu1 %v8273_v41  ;;  %v8299_v41 = vld [vmem:[#allocation8 + $0x70] sm:$0xff]  }
 0x3e1   :  { %6511 = vmatprep.subr.bf16.mxu1 %v8278_v39  ;;  %v8300_v39 = vld [vmem:[#allocation8 + $0x30] sm:$0xff]  }
 0x3e4   :  { %6512 = vmatpush2.bf16.msra.mxu1 %v8276_v54  ;;  %v8301_v54 = vld [vmem:[#allocation8 + $0x68] sm:$0xff]  }
 0x3e5   :  { %6513 = vmatprep.subr.bf16.mxu1 %v8281_v42  ;;  %v8303_v42 = vld [vmem:[#allocation8 + $0x60] sm:$0xff]  }
 0x3e8   :  { %6514 = vmatpush2.bf16.msra.mxu1 %v8279_v46  ;;  %v8304_v46 = vld [vmem:[#allocation8 + $0x20] sm:$0xff]  }
 0x3e9   :  { %6515 = vmatprep.subr.bf16.mxu1 %v8284_v20  ;;  %v8305_v20 = vld [vmem:[#allocation8 + $0x58] sm:$0xff]  }
 0x3ec   :  { %6516 = vmatpush2.bf16.msra.mxu1 %v8282_v60  ;;  %v6012_v60 = vrot.slane %v8859_v56, %v8694_v3 }
 0x3ed   :  { %6517 = vmatprep.subr.bf16.mxu1 %v8287_v50 }
 0x3ee   :  { %v5856_v47 = vpop.f32.mrf.mxu0 }
 0x3ef   :  { %v5857_v31 = vadd.f32 %v5856_v47, %v4369_v10  ;;  %v6120_v10 = vld [vmem:[#allocation13] ss:$4 sm:$0x3] }
 0x3f0   :  { %v5858_v48 = vpop.f32.mrf.mxu0  ;;  %6518 = vmatpush2.bf16.msra.mxu1 %v8285_v53  ;;  %v6016_v53 = vrot.slane %v8859_v56, %v8697_v7  ;;  %v8306_v56 = vld [vmem:[#allocation8 + $0x18] sm:$0xff]  }
 0x3f1   :  { %6519 = vmatprep.subr.bf16.mxu1 %v8290_v1  ;;  %v5859_v43 = vadd.f32 %v5858_v48, %v4373_v27  ;;  %v6125_v27 = vrot.slane %v6120_v10, %v8664_v29 }
 0x3f2   :  { %v5860_v61 = vpop.f32.mrf.mxu0 }
 0x3f4   :  { %v5861_v52 = vpop.f32.mrf.mxu0  ;;  %6520 = vmatpush2.bf16.msra.mxu1 %v8288_v23 }
 0x3f5   :  { %6521 = vmatprep.subr.bf16.mxu1 %v8293_v63  ;;  %v8308_v63 = vld [vmem:[#allocation8 + $0x10] sm:$0xff]  }
 0x3f8   :  { %6522 = vmatpush2.bf16.msra.mxu1 %v8291_v13  ;;  %v8309_v13 = vld [vmem:[#allocation8 + $0x48] sm:$0xff]  }
 0x3ff   :  { %v5815_v12 = vpop.f32.mrf.mxu1 }
 0x400   :  { %v5816_v57 = vadd.f32 %v5815_v12, %v8853_v11 }
 0x401   :  { %v5817_v5 = vpop.f32.mrf.mxu1 }
 0x402   :  { %vm5986_vm8 = vcmp.ge.f32.partialorder %v5816_v57, 0.0  ;;  %v5990_v4 = vmul.f32 0.2, %v5816_v57  ;;  %v5818_v40 = vadd.f32 %v5817_v5, %v8856_v15  ;;  %v8296_v15 = vld [vmem:[#allocation7 + $0x184] ss:$8 sps:$4 sm:$0xff]   ;;  %v6039_v5 = vrot.slane %v8864_v58, %v8694_v3 }
 0x403   :  { %v5819_v26 = vpop.f32.mrf.mxu1  ;;  %6523 = vmatprep.subr.bf16.mxu1 %v8296_v15  ;;  %v6775_v15 = vld [vmem:[%s8968_s9 + $0x78] sm:$0xff] }
 0x404   :  { %v5994_v0 = vsel %vm5986_vm8, %v5816_v57, %v5990_v4  ;;  %vm5987_vm9 = vcmp.ge.f32.partialorder %v5818_v40, 0.0  ;;  %v5991_v9 = vmul.f32 0.2, %v5818_v40  ;;  %6524 = vmatpush2.bf16.msra.mxu1 %v8294_v24  ;;  %v6774_v24 = vld [vmem:[%s8968_s9 + $0x70] sm:$0xff] }
 0x405   :  { %v6021_v37 = vmul.f32 %v6004_v21, %v5994_v0  ;;  %v5820_v6 = vpop.f32.mrf.mxu1 }
 0x406   :  { %v5995_v11 = vsel %vm5987_vm9, %v5818_v40, %v5991_v9  ;;  %v6043_v40 = vrot.slane %v8864_v58, %v8697_v7  ;;  %v8310_v7 = vld [vmem:[#allocation8 + $0x8] sm:$0xff]   ;;  %v8311_v58 = vld [vmem:[#allocation8 + $0x40] sm:$0xff]  }
 0x407   :  { %v6022_v14 = vmul.f32 %v6008_v59, %v5995_v11  ;;  %v6048_v16 = vadd.f32 %v6031_v49, %v6021_v37 }
 0x409   :  { %v6049_v34 = vadd.f32 %v6035_v19, %v6022_v14  ;;  %v6052_v25 = vpack.c.bf16 %v6048_v16, %v6048_v16  ;;  %v8307_v19 = vld [vmem:[#allocation8 + $0x50] sm:$0xff]   ;;  %v8312_v14 = vld [vmem:[#allocation8] sm:$0xff]   ;;  %v8505_v16 = vmov 0.0  }
 0x40a   :  { %7761 = vmatprep.subr.mxu1 %v8505_v16 }
 0x40b   :  { %v6053_v45 = vpack.c.bf16 %v6049_v34, %v6049_v34  ;;  %v6773_v34 = vld [vmem:[%s8968_s9 + $0x68] sm:$0xff] }
 0x40d   :  { %6484 = vmatprep.mubr.bf16.mxu0 %v6053_v45  ;;  %v6772_v45 = vld [vmem:[%s8968_s9 + $0x60] sm:$0xff] }
 0x40e   :  { %6485 = vmatmul.mubr.bf16.vlgmr.msra.gmra.mxu0 %v6052_v25  ;;  %v6771_v25 = vld [vmem:[%s8968_s9 + $0x58] sm:$0xff] }
 0x40f   :  { %7723 = vmatpush3.bf16.msra.mxu0 %v8298_v38 }
 0x410   :  { %7724 = vmatprep.subr.bf16.mxu0 %v8299_v41 }
 0x413   :  { %7725 = vmatpush3.bf16.msra.mxu0 %v8300_v39 }
 0x414   :  { %7726 = vmatprep.subr.bf16.mxu0 %v8301_v54 }
 0x417   :  { %7727 = vmatpush3.bf16.msra.mxu0 %v8302_v2 }
 0x418   :  { %7728 = vmatprep.subr.bf16.mxu0 %v8303_v42 }
 0x41b   :  { %7729 = vmatpush3.bf16.msra.mxu0 %v8304_v46 }
 0x41c   :  { %7730 = vmatprep.subr.bf16.mxu0 %v8305_v20 }
 0x41f   :  { %7731 = vmatpush3.bf16.msra.mxu0 %v8306_v56 }
 0x420   :  { %7732 = vmatprep.subr.bf16.mxu0 %v8307_v19 }
 0x423   :  { %7733 = vmatpush3.bf16.msra.mxu0 %v8308_v63  ;;  %v7721_v63 = vld [vmem:[#allocation2] ss:$0 sm:$0xff] }
 0x424   :  { %7734 = vmatprep.subr.bf16.mxu0 %v8309_v13 }
 0x427   :  { %7735 = vmatpush3.bf16.msra.mxu0 %v8310_v7 }
 0x428   :  { %7736 = vmatprep.subr.bf16.mxu0 %v8311_v58 }
 0x42b   :  { %7737 = vmatpush3.bf16.msra.mxu0 %v8312_v14 }
 0x42e   :  { %v5938_v18 = vpop.f32.mrf.mxu0 }
 0x430   :  { %v5940_v8 = vpop.f32.mrf.mxu0 }
 0x432   :  { %v5942_v44 = vpop.f32.mrf.mxu0 }
 0x433   :  { %v6768_v44 = vld [vmem:[%s8968_s9 + $0x40] sm:$0xff] }
 0x434   :  { %v5943_v51 = vpop.f32.mrf.mxu0 }
 0x435   :  { %v6767_v51 = vld [vmem:[%s8968_s9 + $0x38] sm:$0xff] }
 0x43f   :  { %v5897_v22 = vpop.f32.mrf.mxu1 }
 0x440   :  { %v5898_v30 = vadd.f32 %v5897_v22, %v5857_v31  ;;  %v6129_v31 = vrot.slane %v6120_v10, %v8669_v35 }
 0x441   :  { %v5899_v32 = vpop.f32.mrf.mxu1 }
 0x442   :  { %v5900_v62 = vadd.f32 %v5899_v32, %v5859_v43  ;;  %v5939_v55 = vadd.f32 %v5938_v18, %v5898_v30  ;;  %v6770_v18 = vld [vmem:[%s8968_s9 + $0x50] sm:$0xff] }
 0x443   :  { %v5901_v33 = vpop.f32.mrf.mxu1  ;;  %v6541_v43 = vld [vmem:[#allocation13 + $0x1] ss:$4 sm:$0x3] }
 0x444   :  { %v5941_v36 = vadd.f32 %v5940_v8, %v5900_v62  ;;  %v6769_v8 = vld [vmem:[%s8968_s9 + $0x48] sm:$0xff]  ;;  %v6550_v38 = vrot.slane %v6541_v43, %v8669_v35 }
 0x445   :  { %v5902_v17 = vpop.f32.mrf.mxu1 }
 0x47f   :  { %v5979_v47 = vpop.f32.mrf.mxu1 }
 0x480   :  { %v5980_v48 = vadd.f32 %v5979_v47, %v5939_v55  ;;  %v6546_v55 = vrot.slane %v6541_v43, %v8664_v29 }
 0x481   :  { %v5981_v50 = vpop.f32.mrf.mxu1 }
 0x482   :  { %vm5988_vm10 = vcmp.ge.f32.partialorder %v5980_v48, 0.0  ;;  %v5992_v61 = vmul.f32 0.2, %v5980_v48  ;;  %v5982_v52 = vadd.f32 %v5981_v50, %v5941_v36  ;;  %v6556_v36 = vld [vmem:[#allocation13 + $0x2] ss:$4 sm:$0x3] }
 0x483   :  { %v5983_v12 = vpop.f32.mrf.mxu1  ;;  %v6561_v2 = vrot.slane %v6556_v36, %v8664_v29  ;;  %v6565_v20 = vrot.slane %v6556_v36, %v8669_v35  ;;  %v6765_v29 = vld [vmem:[%s8968_s9 + $0x28] sm:$0xff]  ;;  %v6764_v35 = vld [vmem:[%s8968_s9 + $0x20] sm:$0xff] }
 0x484   :  { %v5996_v57 = vsel %vm5988_vm10, %v5980_v48, %v5992_v61  ;;  %vm5989_vm11 = vcmp.ge.f32.partialorder %v5982_v52, 0.0  ;;  %v5993_v21 = vmul.f32 0.2, %v5982_v52  ;;  %v6763_v12 = vld [vmem:[%s8968_s9 + $0x18] sm:$0xff] }
 0x485   :  { %v6023_v1 = vmul.f32 %v6012_v60, %v5996_v57  ;;  %v5984_v4 = vpop.f32.mrf.mxu1  ;;  %v6762_v57 = vld [vmem:[%s8968_s9 + $0x10] sm:$0xff] }
 0x486   :  { %v5997_v23 = vsel %vm5989_vm11, %v5982_v52, %v5993_v21  ;;  %v6761_v21 = vld [vmem:[%s8968_s9 + $0x8] sm:$0xff]  ;;  %v7702_v4 = vld [vmem:[#allocation14] ss:$0 sm:$0xff] }
 0x487   :  { %v6024_v59 = vmul.f32 %v6016_v53, %v5997_v23  ;;  %v6050_v26 = vadd.f32 %v6039_v5, %v6023_v1  ;;  %v6766_v53 = vld [vmem:[%s8968_s9 + $0x30] sm:$0xff]  ;;  %v6760_v5 = vld [vmem:[%s8968_s9] sm:$0xff] }
 0x489   :  { %v6051_v0 = vadd.f32 %v6043_v40, %v6024_v59  ;;  %v6054_v49 = vpack.c.bf16 %v6050_v26, %v6050_v26 }
 0x48b   :  { %v6055_v9 = vpack.c.bf16 %v6051_v0, %v6051_v0 }
 0x48d   :  { %6525 = vmatprep.mubr.bf16.mxu1 %v6055_v9 }
 0x48e   :  { %6526 = vmatmul.mubr.bf16.vlgmr.msra.gmra.mxu1 %v6054_v49  ;;  %v7719_v49 = vld [vmem:[#allocation14 + $0x1] ss:$0 sm:$0xff] }
 0x48f   :  { %7762 = vmatpush3.msra.mxu1 %v6775_v15  ;;  %7793 = vmatprep.mubr.msk.f32.mxu1 %vm8506_vm14, %v8505_v16 }
 0x490   :  { %7763 = vmatprep.subr.mxu1 %v8505_v16 }
 0x491   :  { %7764 = vmatpush3.msra.mxu1 %v6774_v24 }
 0x492   :  { %7765 = vmatprep.subr.mxu1 %v8505_v16 }
 0x493   :  { %7766 = vmatpush3.msra.mxu1 %v6773_v34 }
 0x494   :  { %7767 = vmatprep.subr.mxu1 %v8505_v16 }
 0x495   :  { %7768 = vmatpush3.msra.mxu1 %v6772_v45 }
 0x496   :  { %7769 = vmatprep.subr.mxu1 %v8505_v16 }
 0x497   :  { %7770 = vmatpush3.msra.mxu1 %v6771_v25 }
 0x498   :  { %7771 = vmatprep.subr.mxu1 %v8505_v16 }
 0x499   :  { %7772 = vmatpush3.msra.mxu1 %v6770_v18 }
 0x49a   :  { %7773 = vmatprep.subr.mxu1 %v8505_v16 }
 0x49b   :  { %7774 = vmatpush3.msra.mxu1 %v6769_v8 }
 0x49c   :  { %7775 = vmatprep.subr.mxu1 %v8505_v16 }
 0x49d   :  { %7776 = vmatpush3.msra.mxu1 %v6768_v44 }
 0x49e   :  { %7777 = vmatprep.subr.mxu1 %v8505_v16 }
 0x49f   :  { %7778 = vmatpush3.msra.mxu1 %v6767_v51 }
 0x4a0   :  { %7779 = vmatprep.subr.mxu1 %v8505_v16 }
 0x4a1   :  { %7780 = vmatpush3.msra.mxu1 %v6766_v53 }
 0x4a2   :  { %7781 = vmatprep.subr.mxu1 %v8505_v16 }
 0x4a3   :  { %7782 = vmatpush3.msra.mxu1 %v6765_v29 }
 0x4a4   :  { %7783 = vmatprep.subr.mxu1 %v8505_v16 }
 0x4a5   :  { %7784 = vmatpush3.msra.mxu1 %v6764_v35 }
 0x4a6   :  { %7785 = vmatprep.subr.mxu1 %v8505_v16 }
 0x4a7   :  { %7786 = vmatpush3.msra.mxu1 %v6763_v12 }
 0x4a8   :  { %7787 = vmatprep.subr.mxu1 %v8505_v16 }
 0x4a9   :  { %7788 = vmatpush3.msra.mxu1 %v6762_v57 }
 0x4aa   :  { %7789 = vmatprep.subr.mxu1 %v8505_v16 }
 0x4ab   :  { %7790 = vmatpush3.msra.mxu1 %v6761_v21 }
 0x4ac   :  { %7791 = vmatprep.subr.mxu1 %v8505_v16 }
 0x4ad   :  { %7792 = vmatpush3.msra.mxu1 %v6760_v5 }
 0x4ce   :  { %v6486_v37 = vpop.f32.mrf.mxu0 }
 0x4cf   :  { %v6487_v22 = vadd.f32 %v6486_v37, %v6125_v27  ;;  %v7720_v37 = vld [vmem:[#allocation14 + $0x2] ss:$0 sm:$0xff] }
 0x4d0   :  { %v6488_v6 = vpop.f32.mrf.mxu0 }
 0x4d1   :  { %v6489_v32 = vadd.f32 %v6488_v6, %v6129_v31 }
 0x4d2   :  { %v6490_v3 = vpop.f32.mrf.mxu0 }
 0x4d4   :  { %v6491_v11 = vpop.f32.mrf.mxu0 }
 0x54e   :  { %v6527_v30 = vpop.f32.mrf.mxu1 }
 0x54f   :  { %v6528_v62 = vadd.f32 %v6527_v30, %v6487_v22 }
 0x550   :  { %v6529_v33 = vpop.f32.mrf.mxu1 }
 0x551   :  { %vm6534_vm12 = vcmp.ge.f32.partialorder %v6528_v62, 0.0  ;;  %v6536_v17 = vmul.f32 0.2, %v6528_v62  ;;  %v6530_v28 = vadd.f32 %v6529_v33, %v6489_v32 }
 0x552   :  { %v6531_v41 = vpop.f32.mrf.mxu1 }
 0x553   :  { %v6538_v39 = vsel %vm6534_vm12, %v6528_v62, %v6536_v17  ;;  %vm6535_vm13 = vcmp.ge.f32.partialorder %v6530_v28, 0.0  ;;  %v6537_v54 = vmul.f32 0.2, %v6530_v28 }
 0x554   :  { %v6553_v42 = vmul.f32 %v6546_v55, %v6538_v39  ;;  %v6532_v46 = vpop.f32.mrf.mxu1 }
 0x555   :  { %v6539_v47 = vsel %vm6535_vm13, %v6530_v28, %v6537_v54 }
 0x556   :  { %v6554_v48 = vmul.f32 %v6550_v38, %v6539_v47  ;;  %v6568_v60 = vadd.f32 %v6561_v2, %v6553_v42 }
 0x558   :  { %v6569_v50 = vadd.f32 %v6565_v20, %v6554_v48  ;;  %v6570_v52 = vpack.c.bf16 %v6568_v60, %v6568_v60 }
 0x55a   :  { %v6571_v61 = vpack.c.bf16 %v6569_v50, %v6569_v50 }
 0x55c   :  { %6737 = vmatprep.mubr.bf16.mxu0 %v6571_v61 }
 0x55d   :  { %6738 = vmatmul.mubr.bf16.vlgmr.msra.gmra.mxu0 %v6570_v52 }
 0x61d   :  { %v7738_v1 = vpop.f32.mrf.mxu0 }
 0x61f   :  { %v7739_v40 = vpop.f32.mrf.mxu0 }
 0x620   :  { %v7740_v23 = vadd.f32 %v7739_v40, %v7738_v1 }
 0x621   :  { %v7741_v59 = vpop.f32.mrf.mxu0 }
 0x622   :  { %v6740_v26 = vadd.f32 %v7740_v23, %v7702_v4 }
 0x623   :  { %v7742_v0 = vpop.f32.mrf.mxu0 }
 0x624   :  { %vm6745_vm15 = vcmp.ge.f32.partialorder %v6740_v26, 0.0  ;;  %v6746_v9 = vmul.f32 0.2, %v6740_v26 }
 0x626   :  { %v6747_v56 = vsel %vm6745_vm15, %v6740_v26, %v6746_v9 }
 0x627   :  { %v6753_v6 = vmul.f32 %v7719_v49, %v6747_v56 }
 0x629   :  { %v6759_v19 = vadd.f32 %v7720_v37, %v6753_v6 }
 0x62b   :  { %7794 = vmatmul.mubr.f32.vlgmr.msra.gmra.mxu1 %v6759_v19 }
 0x6eb   :  { %v6849_v3 = vpop.f32.mrf.mxu1 }
 0x6ec   :  { %v6850_v11 = vadd.f32 %v7721_v63, %v6849_v3 }
 0x6ed   :  { %v7795_v13 = vpop.f32.mrf.mxu1 }
 0x6ee   :  { %v6853_v7 = vsub.f32 0.0, %v6850_v11 }
 0x6f0   :  { %v6854_v58 = vmul.f32 1.442695, %v6853_v7 }
 0x6f2   :  { %8313 = vpow2.f32 %v6854_v58 }
 0x6ff   :  { %v8314_v14 = vpop.eup %8313 }
 0x700   :  { %v6856_v15 = vadd.f32 1.0, %v8314_v14 }
 0x702   :  { %8315 = vrcp.f32 %v6856_v15 }
 0x70f   :  { %v8316_v16 = vpop.eup %8315 }
 0x710   :  { %6860 = vst.msk [vmem:[%s8970_s11] sm:$0x3] %vm6859_vm0, %v8316_v16 }
 0x711   :  { %6865 = vsyncpa [#allocation4], 1 }
 0x712   :  { %6866 = vsyncpa [#allocation6], 1 }
 0x713   :  { %6867 = vsyncpa [#allocation9], 1 }
 0x714   :  { %6868 = vsyncpa [#allocation12], 1 }
 0x715   :  { %6869 = vsyncpa [#allocation15], 1 }

</bundles_post_ra>
